<compile_context>
chip_gen: v5e
topology: v5e:2x2
jax: 0.10.0
libtpu: 0.0.40
codegen_flags: <defaults>
</compile_context>

<pallas_src>
import functools
import math

import jax
import jax.numpy as jnp
from jax import lax
from jax.experimental import pallas as pl
from jax.experimental.pallas import tpu as pltpu


# ----------------------------------------------------------------------------
# VMEM budgeting helper
# ----------------------------------------------------------------------------
def _vmem_limit(blocks, extra=0, cap=56 << 20):
    """Double-buffered block budget + live temporaries, clamped.

    cap defaults to 56 MiB (v7x has 64 MiB VMEM / TensorCore); on v5e/v6e the
    cap and the tile sizes below can be raised (128 MiB VMEM, tiles ~512).
    """
    total = sum(2 * math.prod(shape) * itemsize for shape, itemsize in blocks)
    total += extra + (4 << 20)
    return int(min(max(total, 16 << 20), cap))


# ----------------------------------------------------------------------------
# Kernel 1: f1 (Linear D -> 4D, chunk-tiled) + silu + split into u / v / q / k
# ----------------------------------------------------------------------------
def hstu_proj_kernel(x_ref, w1_ref, b1_ref, u_ref, v_ref, q_ref, k_ref,
                     *, num_heads):
    c = pl.program_id(2)                                   # chunk: 0=u,1=v,2=q,3=k
    x = x_ref[0].astype(jnp.bfloat16)                      # (TS, D) bf16 MXU operand
    y = jnp.dot(x, w1_ref[0], preferred_element_type=jnp.float32) + b1_ref[0]
    y = jax.nn.silu(y)                                     # (TS, D) f32
    D = y.shape[-1]
    hd = D // num_heads

    def write_heads(dst_ref):                              # head-major layout
        for h in range(num_heads):
            dst_ref[0, h] = y[:, h * hd:(h + 1) * hd].astype(dst_ref.dtype)

    @pl.when(c == 0)
    def _():
        u_ref[0] = y.astype(u_ref.dtype)

    @pl.when(c == 1)
    def _():
        write_heads(v_ref)

    @pl.when(c == 2)
    def _():
        write_heads(q_ref)

    @pl.when(c == 3)
    def _():
        write_heads(k_ref)


# ----------------------------------------------------------------------------
# Kernel 2: head-batched silu attention + gate + LayerNorm + f2 + residual
# ----------------------------------------------------------------------------
def hstu_attn_kernel(emb_ref, q_ref, k_ref, v_ref, u_ref, x_ref,
                     gamma_ref, beta_ref, w2_ref, b2_ref, out_ref, acc_ref,
                     *, num_heads, num_buckets, max_distance):
    qi = pl.program_id(1)
    ki = pl.program_id(2)
    nk = pl.num_programs(2)

    q = q_ref[0]                                           # (H, TQ, hd) bf16
    k = k_ref[0]                                           # (H, TK, hd) bf16
    v = v_ref[0]                                           # (H, TK, hd) bf16
    tq, hd = q.shape[1], q.shape[2]
    tk = k.shape[1]

    # ---- raw scores, head-batched on the MXU --------------------------------
    scores = jnp.einsum('hqd,hkd->hqk', q, k,
                        preferred_element_type=jnp.float32)    # (H,TQ,TK) f32

    # ---- relative attention bias, built in-kernel (no HBM stream) -----------
    row = qi * tq + lax.broadcasted_iota(jnp.int32, (tq, tk), 0)
    col = ki * tk + lax.broadcasted_iota(jnp.int32, (tq, tk), 1)
    dist = jnp.maximum(row - col, 0)                       # unidirectional T5
    max_exact = num_buckets // 2
    scale = (num_buckets - max_exact) / math.log(max_distance / max_exact)
    large = max_exact + (
        jnp.log(jnp.maximum(dist, 1).astype(jnp.float32) / max_exact) * scale
    ).astype(jnp.int32)
    bucket = jnp.where(dist < max_exact, dist,
                       jnp.minimum(large, num_buckets - 1))    # (TQ,TK) int32

    # small lookup: select-sum over the num_buckets-entry SMEM table
    bias_h = [jnp.zeros((tq, tk), jnp.float32) for _ in range(num_heads)]
    for b in range(num_buckets):
        maskf = (bucket == b).astype(jnp.float32)
        for h in range(num_heads):
            bias_h[h] = bias_h[h] + maskf * emb_ref[b * num_heads + h]
    bias = jnp.stack(bias_h, axis=0)                       # (H, TQ, TK) f32

    att = jax.nn.silu(scores + bias)
    contrib = jnp.einsum('hqk,hkd->hqd', att.astype(v.dtype), v,
                         preferred_element_type=jnp.float32)   # (H, TQ, hd) f32

    @pl.when(ki == 0)
    def _():
        acc_ref[...] = contrib                             # write, no zero-init

    @pl.when(ki > 0)
    def _():
        acc_ref[...] += contrib

    # ---- epilogue: gate, centered LayerNorm, f2, residual --------------------
    @pl.when(ki == nk - 1)
    def _():
        av = jnp.concatenate([acc_ref[h] for h in range(num_heads)], axis=-1)
        z = av * u_ref[0].astype(jnp.float32)              # (TQ, D)
        mean = jnp.mean(z, axis=-1, keepdims=True)
        zc = z - mean
        var = jnp.mean(zc * zc, axis=-1, keepdims=True)    # centered 2nd moment
        zn = zc * lax.rsqrt(var + 1e-5)
        zn = zn * gamma_ref[0] + beta_ref[0]
        y = jnp.dot(zn.astype(jnp.bfloat16), w2_ref[...],
                    preferred_element_type=jnp.float32) + b2_ref[0]
        out_ref[0] = (y + x_ref[0].astype(jnp.float32)).astype(out_ref.dtype)


# ----------------------------------------------------------------------------
# One HSTU block (+ residual)
# ----------------------------------------------------------------------------
def hstu_block_apply(x, layer_params, *, num_heads, max_distance=128,
                     seq_tile=256, q_tile=256, kv_tile=256):
    B, S, D = x.shape
    w1, b1, emb, gamma, beta, w2, b2 = layer_params
    H = num_heads
    hd = D // H
    num_buckets = emb.shape[0]

    ts = min(S, seq_tile)
    tq = min(S, q_tile)
    tk = min(S, kv_tile)
    assert S % ts == 0 and S % tq == 0 and S % tk == 0 and D % H == 0

    bf16, f32 = jnp.bfloat16, jnp.float32
    w1_4 = w1.reshape(D, 4, D).transpose(1, 0, 2).astype(bf16)   # (4, D, D)
    b1_4 = b1.reshape(4, 1, D).astype(f32)                       # (4, 1, D)
    w2_bf = w2.astype(bf16)
    gamma_2d = gamma.reshape(1, D).astype(f32)
    beta_2d = beta.reshape(1, D).astype(f32)
    b2_2d = b2.reshape(1, D).astype(f32)
    emb_flat = emb.reshape(-1).astype(f32)                       # (nb * H,)

    # ---------------- kernel 1: projection ----------------------------------
    proj_vmem = _vmem_limit(
        [((1, ts, D), 4), ((1, D, D), 2), ((1, 1, D), 4),
         ((1, ts, D), 2), ((1, H, ts, hd), 2), ((1, H, ts, hd), 2),
         ((1, H, ts, hd), 2)],
        extra=2 * ts * D * 4)

    u, v, q, k = pl.pallas_call(
        functools.partial(hstu_proj_kernel, num_heads=H),
        out_shape=(
            jax.ShapeDtypeStruct((B, S, D), bf16),         # u (gating)
            jax.ShapeDtypeStruct((B, H, S, hd), bf16),     # v head-major
            jax.ShapeDtypeStruct((B, H, S, hd), bf16),     # q head-major
            jax.ShapeDtypeStruct((B, H, S, hd), bf16),     # k head-major
        ),
        grid_spec=pltpu.PrefetchScalarGridSpec(
            num_scalar_prefetch=0,
            grid=(B, S // ts, 4),
            in_specs=[
                pl.BlockSpec((1, ts, D), lambda b, s, c: (b, s, 0)),   # x
                pl.BlockSpec((1, D, D), lambda b, s, c: (c, 0, 0)),    # W1 chunk
                pl.BlockSpec((1, 1, D), lambda b, s, c: (c, 0, 0)),    # b1 chunk
            ],
            out_specs=[
                pl.BlockSpec((1, ts, D), lambda b, s, c: (b, s, 0)),
                pl.BlockSpec((1, H, ts, hd), lambda b, s, c: (b, 0, s, 0)),
                pl.BlockSpec((1, H, ts, hd), lambda b, s, c: (b, 0, s, 0)),
                pl.BlockSpec((1, H, ts, hd), lambda b, s, c: (b, 0, s, 0)),
            ],
        ),
        compiler_params=pltpu.CompilerParams(
            dimension_semantics=("parallel", "parallel", "arbitrary"),
            vmem_limit_bytes=proj_vmem),
    )(x, w1_4, b1_4)

    # ---------------- kernel 2: attention + gate + LN + f2 + residual -------
    attn_vmem = _vmem_limit(
        [((1, H, tq, hd), 2), ((1, H, tk, hd), 2), ((1, H, tk, hd), 2),
         ((1, tq, D), 2), ((1, tq, D), 4),
         ((1, D), 4), ((1, D), 4), ((D, D), 2), ((1, D), 4),
         ((1, tq, D), 4)],
        extra=H * tq * hd * 4 + 4 * H * tq * tk * 4 + 2 * tq * tk * 4)

    attn_kernel = functools.partial(
        hstu_attn_kernel, num_heads=H,
        num_buckets=num_buckets, max_distance=max_distance)

    out = pl.pallas_call(
        attn_kernel,
        out_shape=jax.ShapeDtypeStruct((B, S, D), x.dtype),
        grid_spec=pltpu.PrefetchScalarGridSpec(
            num_scalar_prefetch=0,
            grid=(B, S // tq, S // tk),
            in_specs=[
                pl.BlockSpec(memory_space=pltpu.MemorySpace.SMEM),            # emb
                pl.BlockSpec((1, H, tq, hd), lambda b, qi, ki: (b, 0, qi, 0)),  # q
                pl.BlockSpec((1, H, tk, hd), lambda b, qi, ki: (b, 0, ki, 0)),  # k
                pl.BlockSpec((1, H, tk, hd), lambda b, qi, ki: (b, 0, ki, 0)),  # v
                pl.BlockSpec((1, tq, D), lambda b, qi, ki: (b, qi, 0)),         # u
                pl.BlockSpec((1, tq, D), lambda b, qi, ki: (b, qi, 0)),         # x
                pl.BlockSpec((1, D), lambda b, qi, ki: (0, 0)),                 # gamma
                pl.BlockSpec((1, D), lambda b, qi, ki: (0, 0)),                 # beta
                pl.BlockSpec((D, D), lambda b, qi, ki: (0, 0)),                 # W2
                pl.BlockSpec((1, D), lambda b, qi, ki: (0, 0)),                 # b2
            ],
            out_specs=pl.BlockSpec((1, tq, D), lambda b, qi, ki: (b, qi, 0)),
            scratch_shapes=[pltpu.VMEM((H, tq, hd), jnp.float32)],
        ),
        compiler_params=pltpu.CompilerParams(
            dimension_semantics=("parallel", "parallel", "arbitrary"),
            vmem_limit_bytes=attn_vmem),
    )(emb_flat, q, k, v, u, x, gamma_2d, beta_2d, w2_bf, b2_2d)
    return out


# ----------------------------------------------------------------------------
# Parameters (deterministic, synthetic) + full forward
# ----------------------------------------------------------------------------
def init_genrec_params(key, d_model, num_heads, num_layers, num_buckets=32):
    params = []
    for _ in range(num_layers):
        key, k1, k2, k3, k4, k5 = jax.random.split(key, 6)
        bound1 = 1.0 / math.sqrt(d_model)
        w1 = jax.random.uniform(k1, (d_model, 4 * d_model), jnp.float32, -bound1, bound1)
        b1 = jax.random.uniform(k2, (4 * d_model,), jnp.float32, -bound1, bound1)
        emb = jax.random.normal(k3, (num_buckets, num_heads), jnp.float32)
        gamma = jnp.ones((d_model,), jnp.float32)
        beta = jnp.zeros((d_model,), jnp.float32)
        w2 = jax.random.uniform(k4, (d_model, d_model), jnp.float32, -bound1, bound1)
        b2 = jax.random.uniform(k5, (d_model,), jnp.float32, -bound1, bound1)
        params.append((w1, b1, emb, gamma, beta, w2, b2))
    return params


def genrec_forward(x, params, *, num_heads):
    for layer_params in params:
        x = hstu_block_apply(x, layer_params, num_heads=num_heads)
    return x


# ----------------------------------------------------------------------------
# Pure-JAX reference (same bf16 rounding points as the kernels) for validation
# ----------------------------------------------------------------------------
def relative_position_bucket_table(q_len, k_len, num_buckets=32, max_distance=128):
    ctx = jnp.arange(q_len, dtype=jnp.int32)[:, None]
    mem = jnp.arange(k_len, dtype=jnp.int32)[None, :]
    rel = mem - ctx
    rp = -jnp.minimum(rel, 0)
    max_exact = num_buckets // 2
    is_small = rp < max_exact
    rp_f = jnp.maximum(rp, 1).astype(jnp.float32)
    val_if_large = max_exact + (
        jnp.log(rp_f / max_exact) / math.log(max_distance / max_exact)
        * (num_buckets - max_exact)).astype(jnp.int32)
    val_if_large = jnp.minimum(val_if_large, num_buckets - 1)
    return jnp.where(is_small, rp, val_if_large)


def genrec_reference(x, params, *, num_heads, max_distance=128):
    B, S, D = x.shape
    H = num_heads
    hd = D // H
    bf16, f32 = jnp.bfloat16, jnp.float32
    out = x
    for (w1, b1, emb, gamma, beta, w2, b2) in params:
        nb = emb.shape[0]
        bucket = relative_position_bucket_table(S, S, nb, max_distance)
        xb = out.astype(bf16)
        xp = jax.nn.silu(
            jnp.einsum('bsd,df->bsf', xb, w1.astype(bf16),
                       preferred_element_type=f32) + b1)
        u = xp[..., 0 * D:1 * D].astype(bf16).astype(f32)
        v = xp[..., 1 * D:2 * D].astype(bf16)
        q = xp[..., 2 * D:3 * D].astype(bf16)
        k = xp[..., 3 * D:4 * D].astype(bf16)
        split = lambda t: t.reshape(B, S, H, hd).transpose(0, 2, 1, 3)
        qh, kh, vh = split(q), split(k), split(v)
        scores = jnp.einsum('bhqd,bhkd->bhqk', qh, kh, preferred_element_type=f32)
        bias = jnp.transpose(emb[bucket], (2, 0, 1))              # (H, S, S)
        att = jax.nn.silu(scores + bias[None])
        av = jnp.einsum('bhqk,bhkd->bhqd', att.astype(bf16), vh,
                        preferred_element_type=f32)
        av = av.transpose(0, 2, 1, 3).reshape(B, S, D)
        z = av * u
        mean = jnp.mean(z, axis=-1, keepdims=True)
        zc = z - mean
        var = jnp.mean(zc * zc, axis=-1, keepdims=True)
        zn = zc * lax.rsqrt(var + 1e-5) * gamma + beta
        y = jnp.einsum('bsd,df->bsf', zn.astype(bf16), w2.astype(bf16),
                       preferred_element_type=f32) + b2
        out = out + y
    return out


# ----------------------------------------------------------------------------
if __name__ == "__main__":
    B, S, D, H, L = 2, 8, 32, 4, 2

    key = jax.random.PRNGKey(0)
    key, xkey = jax.random.split(key)
    x = jax.random.normal(xkey, (B, S, D), dtype=jnp.float32)
    params = init_genrec_params(key, D, H, L)

    fwd = jax.jit(functools.partial(genrec_forward, num_heads=H))
    out = fwd(x, params)
    jax.block_until_ready(out)
    assert out.shape == (B, S, D)

    ref = genrec_reference(x, params, num_heads=H)
    err = float(jnp.max(jnp.abs(out.astype(jnp.float32) - ref.astype(jnp.float32))))
    assert err < 5e-2, f"kernel/reference mismatch: max abs err = {err}"

    print("KERNEL_OK")
</pallas_src>

<mosaic_0001>
module attributes {stable_mosaic.version = 11 : i64} {
  func.func @hstu_proj_kernel(%arg0: i32, %arg1: i32, %arg2: i32, %arg3: memref<1x8x32xf32, #tpu.memory_space<vmem>>, %arg4: memref<1x32x32xbf16, #tpu.memory_space<vmem>>, %arg5: memref<1x1x32xf32, #tpu.memory_space<vmem>>, %arg6: memref<1x8x32xbf16, #tpu.memory_space<vmem>>, %arg7: memref<1x4x8x8xbf16, #tpu.memory_space<vmem>>, %arg8: memref<1x4x8x8xbf16, #tpu.memory_space<vmem>>, %arg9: memref<1x4x8x8xbf16, #tpu.memory_space<vmem>>) attributes {dimension_semantics = [#tpu.dimension_semantics<parallel>, #tpu.dimension_semantics<parallel>, #tpu.dimension_semantics<arbitrary>], iteration_bounds = array<i64: 2, 1, 4>, scalar_prefetch = 0 : i64, scratch_operands = 0 : i64, tpu.core_type = #tpu.core_type<tc>, window_params = [{transform_indices = @transform_0, window_bounds = array<i64: 1, 8, 32>}, {transform_indices = @transform_1, window_bounds = array<i64: 1, 32, 32>}, {transform_indices = @transform_2, window_bounds = array<i64: 1, 1, 32>}, {transform_indices = @transform_3, window_bounds = array<i64: 1, 8, 32>}, {transform_indices = @transform_4, window_bounds = array<i64: 1, 4, 8, 8>}, {transform_indices = @transform_5, window_bounds = array<i64: 1, 4, 8, 8>}, {transform_indices = @transform_6, window_bounds = array<i64: 1, 4, 8, 8>}]} {
    %c0 = arith.constant 0 : index
    %c0_0 = arith.constant 0 : index
    %c0_1 = arith.constant 0 : index
    %0 = vector.load %arg3[%c0, %c0_0, %c0_1] : memref<1x8x32xf32, #tpu.memory_space<vmem>>, vector<1x8x32xf32>
    %1 = vector.shape_cast %0 : vector<1x8x32xf32> to vector<8x32xf32>
    %2 = arith.truncf %1 : vector<8x32xf32> to vector<8x32xbf16>
    %c0_2 = arith.constant 0 : index
    %c0_3 = arith.constant 0 : index
    %c0_4 = arith.constant 0 : index
    %3 = vector.load %arg4[%c0_2, %c0_3, %c0_4] : memref<1x32x32xbf16, #tpu.memory_space<vmem>>, vector<1x32x32xbf16>
    %4 = vector.shape_cast %3 : vector<1x32x32xbf16> to vector<32x32xbf16>
    %cst = arith.constant dense<0.000000e+00> : vector<8x32xf32>
    %5 = tpu.matmul %2, %4, %cst {dimension_numbers = #tpu.dot_dimension_numbers<[1], [0], [0], [1], [0, 0, 1, 1], [], []>} : vector<8x32xbf16>, vector<32x32xbf16>, vector<8x32xf32> -> vector<8x32xf32>
    %c0_5 = arith.constant 0 : index
    %c0_6 = arith.constant 0 : index
    %c0_7 = arith.constant 0 : index
    %6 = vector.load %arg5[%c0_5, %c0_6, %c0_7] : memref<1x1x32xf32, #tpu.memory_space<vmem>>, vector<1x1x32xf32>
    %7 = vector.shape_cast %6 : vector<1x1x32xf32> to vector<1x32xf32>
    %8 = vector.broadcast %7 : vector<1x32xf32> to vector<8x32xf32>
    %9 = arith.addf %5, %8 : vector<8x32xf32>
    %10 = arith.negf %9 : vector<8x32xf32>
    %11 = math.exp %10 : vector<8x32xf32>
    %cst_8 = arith.constant 1.000000e+00 : f32
    %12 = vector.broadcast %cst_8 : f32 to vector<8x32xf32>
    %13 = arith.addf %12, %11 : vector<8x32xf32>
    %14 = arith.divf %12, %13 : vector<8x32xf32>
    %15 = arith.mulf %9, %14 : vector<8x32xf32>
    %c0_i32 = arith.constant 0 : i32
    %16 = arith.cmpi eq, %arg2, %c0_i32 : i32
    %17 = arith.extui %16 : i1 to i32
    %c0_i32_9 = arith.constant 0 : i32
    %18 = arith.cmpi ne, %17, %c0_i32_9 : i32
    scf.if %18 {
      %28 = arith.truncf %15 : vector<8x32xf32> to vector<8x32xbf16>
      %c0_13 = arith.constant 0 : index
      %c0_14 = arith.constant 0 : index
      %c0_15 = arith.constant 0 : index
      %29 = vector.load %arg6[%c0_13, %c0_14, %c0_15] : memref<1x8x32xbf16, #tpu.memory_space<vmem>>, vector<1x8x32xbf16>
      %30 = vector.shape_cast %29 : vector<1x8x32xbf16> to vector<8x32xbf16>
      %31 = vector.shape_cast %28 : vector<8x32xbf16> to vector<1x8x32xbf16>
      tpu.vector_store %arg6[%c0_13, %c0_14, %c0_15], %31 {strides = array<i32>} : memref<1x8x32xbf16, #tpu.memory_space<vmem>>, vector<1x8x32xbf16>,
    } else {
    }
    %c1_i32 = arith.constant 1 : i32
    %19 = arith.cmpi eq, %arg2, %c1_i32 : i32
    %20 = arith.extui %19 : i1 to i32
    %c0_i32_10 = arith.constant 0 : i32
    %21 = arith.cmpi ne, %20, %c0_i32_10 : i32
    scf.if %21 {
      %28 = vector.extract_strided_slice %15 {offsets = [0, 0], sizes = [8, 8], strides = [1, 1]} : vector<8x32xf32> to vector<8x8xf32>
      %29 = arith.truncf %28 : vector<8x8xf32> to vector<8x8xbf16>
      %c0_13 = arith.constant 0 : index
      %c0_14 = arith.constant 0 : index
      %c0_15 = arith.constant 0 : index
      %c0_16 = arith.constant 0 : index
      %30 = vector.load %arg7[%c0_13, %c0_14, %c0_15, %c0_16] : memref<1x4x8x8xbf16, #tpu.memory_space<vmem>>, vector<1x1x8x8xbf16>
      %31 = vector.shape_cast %30 : vector<1x1x8x8xbf16> to vector<8x8xbf16>
      %32 = vector.shape_cast %29 : vector<8x8xbf16> to vector<1x1x8x8xbf16>
      tpu.vector_store %arg7[%c0_13, %c0_14, %c0_15, %c0_16], %32 {strides = array<i32>} : memref<1x4x8x8xbf16, #tpu.memory_space<vmem>>, vector<1x1x8x8xbf16>,
      %33 = vector.extract_strided_slice %15 {offsets = [0, 8], sizes = [8, 8], strides = [1, 1]} : vector<8x32xf32> to vector<8x8xf32>
      %34 = arith.truncf %33 : vector<8x8xf32> to vector<8x8xbf16>
      %c0_17 = arith.constant 0 : index
      %c1 = arith.constant 1 : index
      %c0_18 = arith.constant 0 : index
      %c0_19 = arith.constant 0 : index
      %35 = vector.load %arg7[%c0_17, %c1, %c0_18, %c0_19] : memref<1x4x8x8xbf16, #tpu.memory_space<vmem>>, vector<1x1x8x8xbf16>
      %36 = vector.shape_cast %35 : vector<1x1x8x8xbf16> to vector<8x8xbf16>
      %37 = vector.shape_cast %34 : vector<8x8xbf16> to vector<1x1x8x8xbf16>
      tpu.vector_store %arg7[%c0_17, %c1, %c0_18, %c0_19], %37 {strides = array<i32>} : memref<1x4x8x8xbf16, #tpu.memory_space<vmem>>, vector<1x1x8x8xbf16>,
      %38 = vector.extract_strided_slice %15 {offsets = [0, 16], sizes = [8, 8], strides = [1, 1]} : vector<8x32xf32> to vector<8x8xf32>
      %39 = arith.truncf %38 : vector<8x8xf32> to vector<8x8xbf16>
      %c0_20 = arith.constant 0 : index
      %c2 = arith.constant 2 : index
      %c0_21 = arith.constant 0 : index
      %c0_22 = arith.constant 0 : index
      %40 = vector.load %arg7[%c0_20, %c2, %c0_21, %c0_22] : memref<1x4x8x8xbf16, #tpu.memory_space<vmem>>, vector<1x1x8x8xbf16>
      %41 = vector.shape_cast %40 : vector<1x1x8x8xbf16> to vector<8x8xbf16>
      %42 = vector.shape_cast %39 : vector<8x8xbf16> to vector<1x1x8x8xbf16>
      tpu.vector_store %arg7[%c0_20, %c2, %c0_21, %c0_22], %42 {strides = array<i32>} : memref<1x4x8x8xbf16, #tpu.memory_space<vmem>>, vector<1x1x8x8xbf16>,
      %43 = vector.extract_strided_slice %15 {offsets = [0, 24], sizes = [8, 8], strides = [1, 1]} : vector<8x32xf32> to vector<8x8xf32>
      %44 = arith.truncf %43 : vector<8x8xf32> to vector<8x8xbf16>
      %c0_23 = arith.constant 0 : index
      %c3 = arith.constant 3 : index
      %c0_24 = arith.constant 0 : index
      %c0_25 = arith.constant 0 : index
      %45 = vector.load %arg7[%c0_23, %c3, %c0_24, %c0_25] : memref<1x4x8x8xbf16, #tpu.memory_space<vmem>>, vector<1x1x8x8xbf16>
      %46 = vector.shape_cast %45 : vector<1x1x8x8xbf16> to vector<8x8xbf16>
      %47 = vector.shape_cast %44 : vector<8x8xbf16> to vector<1x1x8x8xbf16>
      tpu.vector_store %arg7[%c0_23, %c3, %c0_24, %c0_25], %47 {strides = array<i32>} : memref<1x4x8x8xbf16, #tpu.memory_space<vmem>>, vector<1x1x8x8xbf16>,
    } else {
    }
    %c2_i32 = arith.constant 2 : i32
    %22 = arith.cmpi eq, %arg2, %c2_i32 : i32
    %23 = arith.extui %22 : i1 to i32
    %c0_i32_11 = arith.constant 0 : i32
    %24 = arith.cmpi ne, %23, %c0_i32_11 : i32
    scf.if %24 {
      %28 = vector.extract_strided_slice %15 {offsets = [0, 0], sizes = [8, 8], strides = [1, 1]} : vector<8x32xf32> to vector<8x8xf32>
      %29 = arith.truncf %28 : vector<8x8xf32> to vector<8x8xbf16>
      %c0_13 = arith.constant 0 : index
      %c0_14 = arith.constant 0 : index
      %c0_15 = arith.constant 0 : index
      %c0_16 = arith.constant 0 : index
      %30 = vector.load %arg8[%c0_13, %c0_14, %c0_15, %c0_16] : memref<1x4x8x8xbf16, #tpu.memory_space<vmem>>, vector<1x1x8x8xbf16>
      %31 = vector.shape_cast %30 : vector<1x1x8x8xbf16> to vector<8x8xbf16>
      %32 = vector.shape_cast %29 : vector<8x8xbf16> to vector<1x1x8x8xbf16>
      tpu.vector_store %arg8[%c0_13, %c0_14, %c0_15, %c0_16], %32 {strides = array<i32>} : memref<1x4x8x8xbf16, #tpu.memory_space<vmem>>, vector<1x1x8x8xbf16>,
      %33 = vector.extract_strided_slice %15 {offsets = [0, 8], sizes = [8, 8], strides = [1, 1]} : vector<8x32xf32> to vector<8x8xf32>
      %34 = arith.truncf %33 : vector<8x8xf32> to vector<8x8xbf16>
      %c0_17 = arith.constant 0 : index
      %c1 = arith.constant 1 : index
      %c0_18 = arith.constant 0 : index
      %c0_19 = arith.constant 0 : index
      %35 = vector.load %arg8[%c0_17, %c1, %c0_18, %c0_19] : memref<1x4x8x8xbf16, #tpu.memory_space<vmem>>, vector<1x1x8x8xbf16>
      %36 = vector.shape_cast %35 : vector<1x1x8x8xbf16> to vector<8x8xbf16>
      %37 = vector.shape_cast %34 : vector<8x8xbf16> to vector<1x1x8x8xbf16>
      tpu.vector_store %arg8[%c0_17, %c1, %c0_18, %c0_19], %37 {strides = array<i32>} : memref<1x4x8x8xbf16, #tpu.memory_space<vmem>>, vector<1x1x8x8xbf16>,
      %38 = vector.extract_strided_slice %15 {offsets = [0, 16], sizes = [8, 8], strides = [1, 1]} : vector<8x32xf32> to vector<8x8xf32>
      %39 = arith.truncf %38 : vector<8x8xf32> to vector<8x8xbf16>
      %c0_20 = arith.constant 0 : index
      %c2 = arith.constant 2 : index
      %c0_21 = arith.constant 0 : index
      %c0_22 = arith.constant 0 : index
      %40 = vector.load %arg8[%c0_20, %c2, %c0_21, %c0_22] : memref<1x4x8x8xbf16, #tpu.memory_space<vmem>>, vector<1x1x8x8xbf16>
      %41 = vector.shape_cast %40 : vector<1x1x8x8xbf16> to vector<8x8xbf16>
      %42 = vector.shape_cast %39 : vector<8x8xbf16> to vector<1x1x8x8xbf16>
      tpu.vector_store %arg8[%c0_20, %c2, %c0_21, %c0_22], %42 {strides = array<i32>} : memref<1x4x8x8xbf16, #tpu.memory_space<vmem>>, vector<1x1x8x8xbf16>,
      %43 = vector.extract_strided_slice %15 {offsets = [0, 24], sizes = [8, 8], strides = [1, 1]} : vector<8x32xf32> to vector<8x8xf32>
      %44 = arith.truncf %43 : vector<8x8xf32> to vector<8x8xbf16>
      %c0_23 = arith.constant 0 : index
      %c3 = arith.constant 3 : index
      %c0_24 = arith.constant 0 : index
      %c0_25 = arith.constant 0 : index
      %45 = vector.load %arg8[%c0_23, %c3, %c0_24, %c0_25] : memref<1x4x8x8xbf16, #tpu.memory_space<vmem>>, vector<1x1x8x8xbf16>
      %46 = vector.shape_cast %45 : vector<1x1x8x8xbf16> to vector<8x8xbf16>
      %47 = vector.shape_cast %44 : vector<8x8xbf16> to vector<1x1x8x8xbf16>
      tpu.vector_store %arg8[%c0_23, %c3, %c0_24, %c0_25], %47 {strides = array<i32>} : memref<1x4x8x8xbf16, #tpu.memory_space<vmem>>, vector<1x1x8x8xbf16>,
    } else {
    }
    %c3_i32 = arith.constant 3 : i32
    %25 = arith.cmpi eq, %arg2, %c3_i32 : i32
    %26 = arith.extui %25 : i1 to i32
    %c0_i32_12 = arith.constant 0 : i32
    %27 = arith.cmpi ne, %26, %c0_i32_12 : i32
    scf.if %27 {
      %28 = vector.extract_strided_slice %15 {offsets = [0, 0], sizes = [8, 8], strides = [1, 1]} : vector<8x32xf32> to vector<8x8xf32>
      %29 = arith.truncf %28 : vector<8x8xf32> to vector<8x8xbf16>
      %c0_13 = arith.constant 0 : index
      %c0_14 = arith.constant 0 : index
      %c0_15 = arith.constant 0 : index
      %c0_16 = arith.constant 0 : index
      %30 = vector.load %arg9[%c0_13, %c0_14, %c0_15, %c0_16] : memref<1x4x8x8xbf16, #tpu.memory_space<vmem>>, vector<1x1x8x8xbf16>
      %31 = vector.shape_cast %30 : vector<1x1x8x8xbf16> to vector<8x8xbf16>
      %32 = vector.shape_cast %29 : vector<8x8xbf16> to vector<1x1x8x8xbf16>
      tpu.vector_store %arg9[%c0_13, %c0_14, %c0_15, %c0_16], %32 {strides = array<i32>} : memref<1x4x8x8xbf16, #tpu.memory_space<vmem>>, vector<1x1x8x8xbf16>,
      %33 = vector.extract_strided_slice %15 {offsets = [0, 8], sizes = [8, 8], strides = [1, 1]} : vector<8x32xf32> to vector<8x8xf32>
      %34 = arith.truncf %33 : vector<8x8xf32> to vector<8x8xbf16>
      %c0_17 = arith.constant 0 : index
      %c1 = arith.constant 1 : index
      %c0_18 = arith.constant 0 : index
      %c0_19 = arith.constant 0 : index
      %35 = vector.load %arg9[%c0_17, %c1, %c0_18, %c0_19] : memref<1x4x8x8xbf16, #tpu.memory_space<vmem>>, vector<1x1x8x8xbf16>
      %36 = vector.shape_cast %35 : vector<1x1x8x8xbf16> to vector<8x8xbf16>
      %37 = vector.shape_cast %34 : vector<8x8xbf16> to vector<1x1x8x8xbf16>
      tpu.vector_store %arg9[%c0_17, %c1, %c0_18, %c0_19], %37 {strides = array<i32>} : memref<1x4x8x8xbf16, #tpu.memory_space<vmem>>, vector<1x1x8x8xbf16>,
      %38 = vector.extract_strided_slice %15 {offsets = [0, 16], sizes = [8, 8], strides = [1, 1]} : vector<8x32xf32> to vector<8x8xf32>
      %39 = arith.truncf %38 : vector<8x8xf32> to vector<8x8xbf16>
      %c0_20 = arith.constant 0 : index
      %c2 = arith.constant 2 : index
      %c0_21 = arith.constant 0 : index
      %c0_22 = arith.constant 0 : index
      %40 = vector.load %arg9[%c0_20, %c2, %c0_21, %c0_22] : memref<1x4x8x8xbf16, #tpu.memory_space<vmem>>, vector<1x1x8x8xbf16>
      %41 = vector.shape_cast %40 : vector<1x1x8x8xbf16> to vector<8x8xbf16>
      %42 = vector.shape_cast %39 : vector<8x8xbf16> to vector<1x1x8x8xbf16>
      tpu.vector_store %arg9[%c0_20, %c2, %c0_21, %c0_22], %42 {strides = array<i32>} : memref<1x4x8x8xbf16, #tpu.memory_space<vmem>>, vector<1x1x8x8xbf16>,
      %43 = vector.extract_strided_slice %15 {offsets = [0, 24], sizes = [8, 8], strides = [1, 1]} : vector<8x32xf32> to vector<8x8xf32>
      %44 = arith.truncf %43 : vector<8x8xf32> to vector<8x8xbf16>
      %c0_23 = arith.constant 0 : index
      %c3 = arith.constant 3 : index
      %c0_24 = arith.constant 0 : index
      %c0_25 = arith.constant 0 : index
      %45 = vector.load %arg9[%c0_23, %c3, %c0_24, %c0_25] : memref<1x4x8x8xbf16, #tpu.memory_space<vmem>>, vector<1x1x8x8xbf16>
      %46 = vector.shape_cast %45 : vector<1x1x8x8xbf16> to vector<8x8xbf16>
      %47 = vector.shape_cast %44 : vector<8x8xbf16> to vector<1x1x8x8xbf16>
      tpu.vector_store %arg9[%c0_23, %c3, %c0_24, %c0_25], %47 {strides = array<i32>} : memref<1x4x8x8xbf16, #tpu.memory_space<vmem>>, vector<1x1x8x8xbf16>,
    } else {
    }
    return
  }
  func.func @transform_0(%arg0: i32, %arg1: i32, %arg2: i32) -> (i32, i32, i32) {
    %c0_i32 = arith.constant 0 : i32
    %c0_i32_0 = arith.constant 0 : i32
    return %arg0, %arg1, %c0_i32 : i32, i32, i32
  }
  func.func @transform_1(%arg0: i32, %arg1: i32, %arg2: i32) -> (i32, i32, i32) {
    %c0_i32 = arith.constant 0 : i32
    %c0_i32_0 = arith.constant 0 : i32
    %c0_i32_1 = arith.constant 0 : i32
    return %arg2, %c0_i32, %c0_i32_0 : i32, i32, i32
  }
  func.func @transform_2(%arg0: i32, %arg1: i32, %arg2: i32) -> (i32, i32, i32) {
    %c0_i32 = arith.constant 0 : i32
    %c0_i32_0 = arith.constant 0 : i32
    %c0_i32_1 = arith.constant 0 : i32
    return %arg2, %c0_i32, %c0_i32_0 : i32, i32, i32
  }
  func.func @transform_3(%arg0: i32, %arg1: i32, %arg2: i32) -> (i32, i32, i32) {
    %c0_i32 = arith.constant 0 : i32
    %c0_i32_0 = arith.constant 0 : i32
    return %arg0, %arg1, %c0_i32 : i32, i32, i32
  }
  func.func @transform_4(%arg0: i32, %arg1: i32, %arg2: i32) -> (i32, i32, i32, i32) {
    %c0_i32 = arith.constant 0 : i32
    %c0_i32_0 = arith.constant 0 : i32
    %c0_i32_1 = arith.constant 0 : i32
    return %arg0, %c0_i32, %arg1, %c0_i32_0 : i32, i32, i32, i32
  }
  func.func @transform_5(%arg0: i32, %arg1: i32, %arg2: i32) -> (i32, i32, i32, i32) {
    %c0_i32 = arith.constant 0 : i32
    %c0_i32_0 = arith.constant 0 : i32
    %c0_i32_1 = arith.constant 0 : i32
    return %arg0, %c0_i32, %arg1, %c0_i32_0 : i32, i32, i32, i32
  }
  func.func @transform_6(%arg0: i32, %arg1: i32, %arg2: i32) -> (i32, i32, i32, i32) {
    %c0_i32 = arith.constant 0 : i32
    %c0_i32_0 = arith.constant 0 : i32
    %c0_i32_1 = arith.constant 0 : i32
    return %arg0, %c0_i32, %arg1, %c0_i32_0 : i32, i32, i32, i32
  }
}

module attributes {stable_mosaic.version = 11 : i64} {
  func.func @hstu_attn_kernel(%arg0: i32, %arg1: i32, %arg2: i32, %arg3: memref<128xf32, #tpu.memory_space<smem>>, %arg4: memref<1x4x8x8xbf16, #tpu.memory_space<vmem>>, %arg5: memref<1x4x8x8xbf16, #tpu.memory_space<vmem>>, %arg6: memref<1x4x8x8xbf16, #tpu.memory_space<vmem>>, %arg7: memref<1x8x32xbf16, #tpu.memory_space<vmem>>, %arg8: memref<1x8x32xf32, #tpu.memory_space<vmem>>, %arg9: memref<1x32xf32, #tpu.memory_space<vmem>>, %arg10: memref<1x32xf32, #tpu.memory_space<vmem>>, %arg11: memref<32x32xbf16, #tpu.memory_space<vmem>>, %arg12: memref<1x32xf32, #tpu.memory_space<vmem>>, %arg13: memref<1x8x32xf32, #tpu.memory_space<vmem>>, %arg14: memref<4x8x8xf32, #tpu.memory_space<vmem>>) attributes {dimension_semantics = [#tpu.dimension_semantics<parallel>, #tpu.dimension_semantics<parallel>, #tpu.dimension_semantics<arbitrary>], iteration_bounds = array<i64: 2, 1, 1>, scalar_prefetch = 0 : i64, scratch_operands = 1 : i64, tpu.core_type = #tpu.core_type<tc>, window_params = [{transform_indices = @transform_0, window_bounds = array<i64: 128>}, {transform_indices = @transform_1, window_bounds = array<i64: 1, 4, 8, 8>}, {transform_indices = @transform_2, window_bounds = array<i64: 1, 4, 8, 8>}, {transform_indices = @transform_3, window_bounds = array<i64: 1, 4, 8, 8>}, {transform_indices = @transform_4, window_bounds = array<i64: 1, 8, 32>}, {transform_indices = @transform_5, window_bounds = array<i64: 1, 8, 32>}, {pipeline_mode = #tpu.pipeline_mode<synchronous>, transform_indices = @transform_6, window_bounds = array<i64: 1, 32>}, {pipeline_mode = #tpu.pipeline_mode<synchronous>, transform_indices = @transform_7, window_bounds = array<i64: 1, 32>}, {pipeline_mode = #tpu.pipeline_mode<synchronous>, transform_indices = @transform_8, window_bounds = array<i64: 32, 32>}, {pipeline_mode = #tpu.pipeline_mode<synchronous>, transform_indices = @transform_9, window_bounds = array<i64: 1, 32>}, {transform_indices = @transform_10, window_bounds = array<i64: 1, 8, 32>}]} {
    %c0 = arith.constant 0 : index
    %c0_0 = arith.constant 0 : index
    %c0_1 = arith.constant 0 : index
    %c0_2 = arith.constant 0 : index
    %0 = vector.load %arg4[%c0, %c0_0, %c0_1, %c0_2] : memref<1x4x8x8xbf16, #tpu.memory_space<vmem>>, vector<1x4x8x8xbf16>
    %1 = vector.shape_cast %0 : vector<1x4x8x8xbf16> to vector<4x8x8xbf16>
    %c0_3 = arith.constant 0 : index
    %c0_4 = arith.constant 0 : index
    %c0_5 = arith.constant 0 : index
    %c0_6 = arith.constant 0 : index
    %2 = vector.load %arg5[%c0_3, %c0_4, %c0_5, %c0_6] : memref<1x4x8x8xbf16, #tpu.memory_space<vmem>>, vector<1x4x8x8xbf16>
    %3 = vector.shape_cast %2 : vector<1x4x8x8xbf16> to vector<4x8x8xbf16>
    %c0_7 = arith.constant 0 : index
    %c0_8 = arith.constant 0 : index
    %c0_9 = arith.constant 0 : index
    %c0_10 = arith.constant 0 : index
    %4 = vector.load %arg6[%c0_7, %c0_8, %c0_9, %c0_10] : memref<1x4x8x8xbf16, #tpu.memory_space<vmem>>, vector<1x4x8x8xbf16>
    %5 = vector.shape_cast %4 : vector<1x4x8x8xbf16> to vector<4x8x8xbf16>
    "tpu.trace_start"() <{level = 10 : i32, message = "hqd,hkd->hqk"}> : () -> ()
    %cst = arith.constant dense<0.000000e+00> : vector<4x8x8xf32>
    %6 = tpu.matmul %1, %3, %cst {dimension_numbers = #tpu.dot_dimension_numbers<[2], [2], [1], [1], [0, 0, 0, 1, 1, 1], [0], [0]>} : vector<4x8x8xbf16>, vector<4x8x8xbf16>, vector<4x8x8xf32> -> vector<4x8x8xf32>
    "tpu.trace_stop"() : () -> ()
    %c8_i32 = arith.constant 8 : i32
    %7 = arith.muli %arg1, %c8_i32 : i32
    %8 = tpu.iota {dimensions = array<i32: 0>} : vector<8x8xi32>
    %9 = vector.broadcast %7 : i32 to vector<8x8xi32>
    %10 = arith.addi %9, %8 : vector<8x8xi32>
    %c8_i32_11 = arith.constant 8 : i32
    %11 = arith.muli %arg2, %c8_i32_11 : i32
    %12 = tpu.iota {dimensions = array<i32: 1>} : vector<8x8xi32>
    %13 = vector.broadcast %11 : i32 to vector<8x8xi32>
    %14 = arith.addi %13, %12 : vector<8x8xi32>
    %15 = arith.subi %10, %14 : vector<8x8xi32>
    %c0_i32 = arith.constant 0 : i32
    %16 = vector.broadcast %c0_i32 : i32 to vector<8x8xi32>
    %17 = arith.maxsi %15, %16 : vector<8x8xi32>
    %c1_i32 = arith.constant 1 : i32
    %18 = vector.broadcast %c1_i32 : i32 to vector<8x8xi32>
    %19 = arith.maxsi %17, %18 : vector<8x8xi32>
    %20 = arith.sitofp %19 : vector<8x8xi32> to vector<8x8xf32>
    %cst_12 = arith.constant 1.600000e+01 : f32
    %21 = vector.broadcast %cst_12 : f32 to vector<8x8xf32>
    %22 = arith.divf %20, %21 : vector<8x8xf32>
    %23 = math.log %22 : vector<8x8xf32>
    %cst_13 = arith.constant 7.69437361 : f32
    %24 = vector.broadcast %cst_13 : f32 to vector<8x8xf32>
    %25 = arith.mulf %23, %24 : vector<8x8xf32>
    %26 = arith.fptosi %25 : vector<8x8xf32> to vector<8x8xi32>
    %c16_i32 = arith.constant 16 : i32
    %27 = vector.broadcast %c16_i32 : i32 to vector<8x8xi32>
    %28 = arith.addi %27, %26 : vector<8x8xi32>
    %c16_i32_14 = arith.constant 16 : i32
    %29 = vector.broadcast %c16_i32_14 : i32 to vector<8x8xi32>
    %30 = arith.cmpi slt, %17, %29 : vector<8x8xi32>
    %c31_i32 = arith.constant 31 : i32
    %31 = vector.broadcast %c31_i32 : i32 to vector<8x8xi32>
    %32 = arith.minsi %28, %31 : vector<8x8xi32>
    %33 = arith.select %30, %17, %32 : vector<8x8xi1>, vector<8x8xi32>
    %cst_15 = arith.constant 0.000000e+00 : f32
    %34 = vector.broadcast %cst_15 : f32 to vector<8x8xf32>
    %cst_16 = arith.constant 0.000000e+00 : f32
    %35 = vector.broadcast %cst_16 : f32 to vector<8x8xf32>
    %cst_17 = arith.constant 0.000000e+00 : f32
    %36 = vector.broadcast %cst_17 : f32 to vector<8x8xf32>
    %cst_18 = arith.constant 0.000000e+00 : f32
    %37 = vector.broadcast %cst_18 : f32 to vector<8x8xf32>
    %c0_i32_19 = arith.constant 0 : i32
    %38 = vector.broadcast %c0_i32_19 : i32 to vector<8x8xi32>
    %39 = arith.cmpi eq, %33, %38 : vector<8x8xi32>
    %40 = arith.extui %39 : vector<8x8xi1> to vector<8x8xi32>
    %41 = arith.sitofp %40 : vector<8x8xi32> to vector<8x8xf32>
    %c0_20 = arith.constant 0 : index
    %42 = memref.load %arg3[%c0_20] : memref<128xf32, #tpu.memory_space<smem>>
    %43 = vector.broadcast %42 : f32 to vector<8x8xf32>
    %44 = arith.mulf %41, %43 : vector<8x8xf32>
    %45 = arith.addf %34, %44 : vector<8x8xf32>
    %c1 = arith.constant 1 : index
    %46 = memref.load %arg3[%c1] : memref<128xf32, #tpu.memory_space<smem>>
    %47 = vector.broadcast %46 : f32 to vector<8x8xf32>
    %48 = arith.mulf %41, %47 : vector<8x8xf32>
    %49 = arith.addf %35, %48 : vector<8x8xf32>
    %c2 = arith.constant 2 : index
    %50 = memref.load %arg3[%c2] : memref<128xf32, #tpu.memory_space<smem>>
    %51 = vector.broadcast %50 : f32 to vector<8x8xf32>
    %52 = arith.mulf %41, %51 : vector<8x8xf32>
    %53 = arith.addf %36, %52 : vector<8x8xf32>
    %c3 = arith.constant 3 : index
    %54 = memref.load %arg3[%c3] : memref<128xf32, #tpu.memory_space<smem>>
    %55 = vector.broadcast %54 : f32 to vector<8x8xf32>
    %56 = arith.mulf %41, %55 : vector<8x8xf32>
    %57 = arith.addf %37, %56 : vector<8x8xf32>
    %c1_i32_21 = arith.constant 1 : i32
    %58 = vector.broadcast %c1_i32_21 : i32 to vector<8x8xi32>
    %59 = arith.cmpi eq, %33, %58 : vector<8x8xi32>
    %60 = arith.extui %59 : vector<8x8xi1> to vector<8x8xi32>
    %61 = arith.sitofp %60 : vector<8x8xi32> to vector<8x8xf32>
    %c4 = arith.constant 4 : index
    %62 = memref.load %arg3[%c4] : memref<128xf32, #tpu.memory_space<smem>>
    %63 = vector.broadcast %62 : f32 to vector<8x8xf32>
    %64 = arith.mulf %61, %63 : vector<8x8xf32>
    %65 = arith.addf %45, %64 : vector<8x8xf32>
    %c5 = arith.constant 5 : index
    %66 = memref.load %arg3[%c5] : memref<128xf32, #tpu.memory_space<smem>>
    %67 = vector.broadcast %66 : f32 to vector<8x8xf32>
    %68 = arith.mulf %61, %67 : vector<8x8xf32>
    %69 = arith.addf %49, %68 : vector<8x8xf32>
    %c6 = arith.constant 6 : index
    %70 = memref.load %arg3[%c6] : memref<128xf32, #tpu.memory_space<smem>>
    %71 = vector.broadcast %70 : f32 to vector<8x8xf32>
    %72 = arith.mulf %61, %71 : vector<8x8xf32>
    %73 = arith.addf %53, %72 : vector<8x8xf32>
    %c7 = arith.constant 7 : index
    %74 = memref.load %arg3[%c7] : memref<128xf32, #tpu.memory_space<smem>>
    %75 = vector.broadcast %74 : f32 to vector<8x8xf32>
    %76 = arith.mulf %61, %75 : vector<8x8xf32>
    %77 = arith.addf %57, %76 : vector<8x8xf32>
    %c2_i32 = arith.constant 2 : i32
    %78 = vector.broadcast %c2_i32 : i32 to vector<8x8xi32>
    %79 = arith.cmpi eq, %33, %78 : vector<8x8xi32>
    %80 = arith.extui %79 : vector<8x8xi1> to vector<8x8xi32>
    %81 = arith.sitofp %80 : vector<8x8xi32> to vector<8x8xf32>
    %c8 = arith.constant 8 : index
    %82 = memref.load %arg3[%c8] : memref<128xf32, #tpu.memory_space<smem>>
    %83 = vector.broadcast %82 : f32 to vector<8x8xf32>
    %84 = arith.mulf %81, %83 : vector<8x8xf32>
    %85 = arith.addf %65, %84 : vector<8x8xf32>
    %c9 = arith.constant 9 : index
    %86 = memref.load %arg3[%c9] : memref<128xf32, #tpu.memory_space<smem>>
    %87 = vector.broadcast %86 : f32 to vector<8x8xf32>
    %88 = arith.mulf %81, %87 : vector<8x8xf32>
    %89 = arith.addf %69, %88 : vector<8x8xf32>
    %c10 = arith.constant 10 : index
    %90 = memref.load %arg3[%c10] : memref<128xf32, #tpu.memory_space<smem>>
    %91 = vector.broadcast %90 : f32 to vector<8x8xf32>
    %92 = arith.mulf %81, %91 : vector<8x8xf32>
    %93 = arith.addf %73, %92 : vector<8x8xf32>
    %c11 = arith.constant 11 : index
    %94 = memref.load %arg3[%c11] : memref<128xf32, #tpu.memory_space<smem>>
    %95 = vector.broadcast %94 : f32 to vector<8x8xf32>
    %96 = arith.mulf %81, %95 : vector<8x8xf32>
    %97 = arith.addf %77, %96 : vector<8x8xf32>
    %c3_i32 = arith.constant 3 : i32
    %98 = vector.broadcast %c3_i32 : i32 to vector<8x8xi32>
    %99 = arith.cmpi eq, %33, %98 : vector<8x8xi32>
    %100 = arith.extui %99 : vector<8x8xi1> to vector<8x8xi32>
    %101 = arith.sitofp %100 : vector<8x8xi32> to vector<8x8xf32>
    %c12 = arith.constant 12 : index
    %102 = memref.load %arg3[%c12] : memref<128xf32, #tpu.memory_space<smem>>
    %103 = vector.broadcast %102 : f32 to vector<8x8xf32>
    %104 = arith.mulf %101, %103 : vector<8x8xf32>
    %105 = arith.addf %85, %104 : vector<8x8xf32>
    %c13 = arith.constant 13 : index
    %106 = memref.load %arg3[%c13] : memref<128xf32, #tpu.memory_space<smem>>
    %107 = vector.broadcast %106 : f32 to vector<8x8xf32>
    %108 = arith.mulf %101, %107 : vector<8x8xf32>
    %109 = arith.addf %89, %108 : vector<8x8xf32>
    %c14 = arith.constant 14 : index
    %110 = memref.load %arg3[%c14] : memref<128xf32, #tpu.memory_space<smem>>
    %111 = vector.broadcast %110 : f32 to vector<8x8xf32>
    %112 = arith.mulf %101, %111 : vector<8x8xf32>
    %113 = arith.addf %93, %112 : vector<8x8xf32>
    %c15 = arith.constant 15 : index
    %114 = memref.load %arg3[%c15] : memref<128xf32, #tpu.memory_space<smem>>
    %115 = vector.broadcast %114 : f32 to vector<8x8xf32>
    %116 = arith.mulf %101, %115 : vector<8x8xf32>
    %117 = arith.addf %97, %116 : vector<8x8xf32>
    %c4_i32 = arith.constant 4 : i32
    %118 = vector.broadcast %c4_i32 : i32 to vector<8x8xi32>
    %119 = arith.cmpi eq, %33, %118 : vector<8x8xi32>
    %120 = arith.extui %119 : vector<8x8xi1> to vector<8x8xi32>
    %121 = arith.sitofp %120 : vector<8x8xi32> to vector<8x8xf32>
    %c16 = arith.constant 16 : index
    %122 = memref.load %arg3[%c16] : memref<128xf32, #tpu.memory_space<smem>>
    %123 = vector.broadcast %122 : f32 to vector<8x8xf32>
    %124 = arith.mulf %121, %123 : vector<8x8xf32>
    %125 = arith.addf %105, %124 : vector<8x8xf32>
    %c17 = arith.constant 17 : index
    %126 = memref.load %arg3[%c17] : memref<128xf32, #tpu.memory_space<smem>>
    %127 = vector.broadcast %126 : f32 to vector<8x8xf32>
    %128 = arith.mulf %121, %127 : vector<8x8xf32>
    %129 = arith.addf %109, %128 : vector<8x8xf32>
    %c18 = arith.constant 18 : index
    %130 = memref.load %arg3[%c18] : memref<128xf32, #tpu.memory_space<smem>>
    %131 = vector.broadcast %130 : f32 to vector<8x8xf32>
    %132 = arith.mulf %121, %131 : vector<8x8xf32>
    %133 = arith.addf %113, %132 : vector<8x8xf32>
    %c19 = arith.constant 19 : index
    %134 = memref.load %arg3[%c19] : memref<128xf32, #tpu.memory_space<smem>>
    %135 = vector.broadcast %134 : f32 to vector<8x8xf32>
    %136 = arith.mulf %121, %135 : vector<8x8xf32>
    %137 = arith.addf %117, %136 : vector<8x8xf32>
    %c5_i32 = arith.constant 5 : i32
    %138 = vector.broadcast %c5_i32 : i32 to vector<8x8xi32>
    %139 = arith.cmpi eq, %33, %138 : vector<8x8xi32>
    %140 = arith.extui %139 : vector<8x8xi1> to vector<8x8xi32>
    %141 = arith.sitofp %140 : vector<8x8xi32> to vector<8x8xf32>
    %c20 = arith.constant 20 : index
    %142 = memref.load %arg3[%c20] : memref<128xf32, #tpu.memory_space<smem>>
    %143 = vector.broadcast %142 : f32 to vector<8x8xf32>
    %144 = arith.mulf %141, %143 : vector<8x8xf32>
    %145 = arith.addf %125, %144 : vector<8x8xf32>
    %c21 = arith.constant 21 : index
    %146 = memref.load %arg3[%c21] : memref<128xf32, #tpu.memory_space<smem>>
    %147 = vector.broadcast %146 : f32 to vector<8x8xf32>
    %148 = arith.mulf %141, %147 : vector<8x8xf32>
    %149 = arith.addf %129, %148 : vector<8x8xf32>
    %c22 = arith.constant 22 : index
    %150 = memref.load %arg3[%c22] : memref<128xf32, #tpu.memory_space<smem>>
    %151 = vector.broadcast %150 : f32 to vector<8x8xf32>
    %152 = arith.mulf %141, %151 : vector<8x8xf32>
    %153 = arith.addf %133, %152 : vector<8x8xf32>
    %c23 = arith.constant 23 : index
    %154 = memref.load %arg3[%c23] : memref<128xf32, #tpu.memory_space<smem>>
    %155 = vector.broadcast %154 : f32 to vector<8x8xf32>
    %156 = arith.mulf %141, %155 : vector<8x8xf32>
    %157 = arith.addf %137, %156 : vector<8x8xf32>
    %c6_i32 = arith.constant 6 : i32
    %158 = vector.broadcast %c6_i32 : i32 to vector<8x8xi32>
    %159 = arith.cmpi eq, %33, %158 : vector<8x8xi32>
    %160 = arith.extui %159 : vector<8x8xi1> to vector<8x8xi32>
    %161 = arith.sitofp %160 : vector<8x8xi32> to vector<8x8xf32>
    %c24 = arith.constant 24 : index
    %162 = memref.load %arg3[%c24] : memref<128xf32, #tpu.memory_space<smem>>
    %163 = vector.broadcast %162 : f32 to vector<8x8xf32>
    %164 = arith.mulf %161, %163 : vector<8x8xf32>
    %165 = arith.addf %145, %164 : vector<8x8xf32>
    %c25 = arith.constant 25 : index
    %166 = memref.load %arg3[%c25] : memref<128xf32, #tpu.memory_space<smem>>
    %167 = vector.broadcast %166 : f32 to vector<8x8xf32>
    %168 = arith.mulf %161, %167 : vector<8x8xf32>
    %169 = arith.addf %149, %168 : vector<8x8xf32>
    %c26 = arith.constant 26 : index
    %170 = memref.load %arg3[%c26] : memref<128xf32, #tpu.memory_space<smem>>
    %171 = vector.broadcast %170 : f32 to vector<8x8xf32>
    %172 = arith.mulf %161, %171 : vector<8x8xf32>
    %173 = arith.addf %153, %172 : vector<8x8xf32>
    %c27 = arith.constant 27 : index
    %174 = memref.load %arg3[%c27] : memref<128xf32, #tpu.memory_space<smem>>
    %175 = vector.broadcast %174 : f32 to vector<8x8xf32>
    %176 = arith.mulf %161, %175 : vector<8x8xf32>
    %177 = arith.addf %157, %176 : vector<8x8xf32>
    %c7_i32 = arith.constant 7 : i32
    %178 = vector.broadcast %c7_i32 : i32 to vector<8x8xi32>
    %179 = arith.cmpi eq, %33, %178 : vector<8x8xi32>
    %180 = arith.extui %179 : vector<8x8xi1> to vector<8x8xi32>
    %181 = arith.sitofp %180 : vector<8x8xi32> to vector<8x8xf32>
    %c28 = arith.constant 28 : index
    %182 = memref.load %arg3[%c28] : memref<128xf32, #tpu.memory_space<smem>>
    %183 = vector.broadcast %182 : f32 to vector<8x8xf32>
    %184 = arith.mulf %181, %183 : vector<8x8xf32>
    %185 = arith.addf %165, %184 : vector<8x8xf32>
    %c29 = arith.constant 29 : index
    %186 = memref.load %arg3[%c29] : memref<128xf32, #tpu.memory_space<smem>>
    %187 = vector.broadcast %186 : f32 to vector<8x8xf32>
    %188 = arith.mulf %181, %187 : vector<8x8xf32>
    %189 = arith.addf %169, %188 : vector<8x8xf32>
    %c30 = arith.constant 30 : index
    %190 = memref.load %arg3[%c30] : memref<128xf32, #tpu.memory_space<smem>>
    %191 = vector.broadcast %190 : f32 to vector<8x8xf32>
    %192 = arith.mulf %181, %191 : vector<8x8xf32>
    %193 = arith.addf %173, %192 : vector<8x8xf32>
    %c31 = arith.constant 31 : index
    %194 = memref.load %arg3[%c31] : memref<128xf32, #tpu.memory_space<smem>>
    %195 = vector.broadcast %194 : f32 to vector<8x8xf32>
    %196 = arith.mulf %181, %195 : vector<8x8xf32>
    %197 = arith.addf %177, %196 : vector<8x8xf32>
    %c8_i32_22 = arith.constant 8 : i32
    %198 = vector.broadcast %c8_i32_22 : i32 to vector<8x8xi32>
    %199 = arith.cmpi eq, %33, %198 : vector<8x8xi32>
    %200 = arith.extui %199 : vector<8x8xi1> to vector<8x8xi32>
    %201 = arith.sitofp %200 : vector<8x8xi32> to vector<8x8xf32>
    %c32 = arith.constant 32 : index
    %202 = memref.load %arg3[%c32] : memref<128xf32, #tpu.memory_space<smem>>
    %203 = vector.broadcast %202 : f32 to vector<8x8xf32>
    %204 = arith.mulf %201, %203 : vector<8x8xf32>
    %205 = arith.addf %185, %204 : vector<8x8xf32>
    %c33 = arith.constant 33 : index
    %206 = memref.load %arg3[%c33] : memref<128xf32, #tpu.memory_space<smem>>
    %207 = vector.broadcast %206 : f32 to vector<8x8xf32>
    %208 = arith.mulf %201, %207 : vector<8x8xf32>
    %209 = arith.addf %189, %208 : vector<8x8xf32>
    %c34 = arith.constant 34 : index
    %210 = memref.load %arg3[%c34] : memref<128xf32, #tpu.memory_space<smem>>
    %211 = vector.broadcast %210 : f32 to vector<8x8xf32>
    %212 = arith.mulf %201, %211 : vector<8x8xf32>
    %213 = arith.addf %193, %212 : vector<8x8xf32>
    %c35 = arith.constant 35 : index
    %214 = memref.load %arg3[%c35] : memref<128xf32, #tpu.memory_space<smem>>
    %215 = vector.broadcast %214 : f32 to vector<8x8xf32>
    %216 = arith.mulf %201, %215 : vector<8x8xf32>
    %217 = arith.addf %197, %216 : vector<8x8xf32>
    %c9_i32 = arith.constant 9 : i32
    %218 = vector.broadcast %c9_i32 : i32 to vector<8x8xi32>
    %219 = arith.cmpi eq, %33, %218 : vector<8x8xi32>
    %220 = arith.extui %219 : vector<8x8xi1> to vector<8x8xi32>
    %221 = arith.sitofp %220 : vector<8x8xi32> to vector<8x8xf32>
    %c36 = arith.constant 36 : index
    %222 = memref.load %arg3[%c36] : memref<128xf32, #tpu.memory_space<smem>>
    %223 = vector.broadcast %222 : f32 to vector<8x8xf32>
    %224 = arith.mulf %221, %223 : vector<8x8xf32>
    %225 = arith.addf %205, %224 : vector<8x8xf32>
    %c37 = arith.constant 37 : index
    %226 = memref.load %arg3[%c37] : memref<128xf32, #tpu.memory_space<smem>>
    %227 = vector.broadcast %226 : f32 to vector<8x8xf32>
    %228 = arith.mulf %221, %227 : vector<8x8xf32>
    %229 = arith.addf %209, %228 : vector<8x8xf32>
    %c38 = arith.constant 38 : index
    %230 = memref.load %arg3[%c38] : memref<128xf32, #tpu.memory_space<smem>>
    %231 = vector.broadcast %230 : f32 to vector<8x8xf32>
    %232 = arith.mulf %221, %231 : vector<8x8xf32>
    %233 = arith.addf %213, %232 : vector<8x8xf32>
    %c39 = arith.constant 39 : index
    %234 = memref.load %arg3[%c39] : memref<128xf32, #tpu.memory_space<smem>>
    %235 = vector.broadcast %234 : f32 to vector<8x8xf32>
    %236 = arith.mulf %221, %235 : vector<8x8xf32>
    %237 = arith.addf %217, %236 : vector<8x8xf32>
    %c10_i32 = arith.constant 10 : i32
    %238 = vector.broadcast %c10_i32 : i32 to vector<8x8xi32>
    %239 = arith.cmpi eq, %33, %238 : vector<8x8xi32>
    %240 = arith.extui %239 : vector<8x8xi1> to vector<8x8xi32>
    %241 = arith.sitofp %240 : vector<8x8xi32> to vector<8x8xf32>
    %c40 = arith.constant 40 : index
    %242 = memref.load %arg3[%c40] : memref<128xf32, #tpu.memory_space<smem>>
    %243 = vector.broadcast %242 : f32 to vector<8x8xf32>
    %244 = arith.mulf %241, %243 : vector<8x8xf32>
    %245 = arith.addf %225, %244 : vector<8x8xf32>
    %c41 = arith.constant 41 : index
    %246 = memref.load %arg3[%c41] : memref<128xf32, #tpu.memory_space<smem>>
    %247 = vector.broadcast %246 : f32 to vector<8x8xf32>
    %248 = arith.mulf %241, %247 : vector<8x8xf32>
    %249 = arith.addf %229, %248 : vector<8x8xf32>
    %c42 = arith.constant 42 : index
    %250 = memref.load %arg3[%c42] : memref<128xf32, #tpu.memory_space<smem>>
    %251 = vector.broadcast %250 : f32 to vector<8x8xf32>
    %252 = arith.mulf %241, %251 : vector<8x8xf32>
    %253 = arith.addf %233, %252 : vector<8x8xf32>
    %c43 = arith.constant 43 : index
    %254 = memref.load %arg3[%c43] : memref<128xf32, #tpu.memory_space<smem>>
    %255 = vector.broadcast %254 : f32 to vector<8x8xf32>
    %256 = arith.mulf %241, %255 : vector<8x8xf32>
    %257 = arith.addf %237, %256 : vector<8x8xf32>
    %c11_i32 = arith.constant 11 : i32
    %258 = vector.broadcast %c11_i32 : i32 to vector<8x8xi32>
    %259 = arith.cmpi eq, %33, %258 : vector<8x8xi32>
    %260 = arith.extui %259 : vector<8x8xi1> to vector<8x8xi32>
    %261 = arith.sitofp %260 : vector<8x8xi32> to vector<8x8xf32>
    %c44 = arith.constant 44 : index
    %262 = memref.load %arg3[%c44] : memref<128xf32, #tpu.memory_space<smem>>
    %263 = vector.broadcast %262 : f32 to vector<8x8xf32>
    %264 = arith.mulf %261, %263 : vector<8x8xf32>
    %265 = arith.addf %245, %264 : vector<8x8xf32>
    %c45 = arith.constant 45 : index
    %266 = memref.load %arg3[%c45] : memref<128xf32, #tpu.memory_space<smem>>
    %267 = vector.broadcast %266 : f32 to vector<8x8xf32>
    %268 = arith.mulf %261, %267 : vector<8x8xf32>
    %269 = arith.addf %249, %268 : vector<8x8xf32>
    %c46 = arith.constant 46 : index
    %270 = memref.load %arg3[%c46] : memref<128xf32, #tpu.memory_space<smem>>
    %271 = vector.broadcast %270 : f32 to vector<8x8xf32>
    %272 = arith.mulf %261, %271 : vector<8x8xf32>
    %273 = arith.addf %253, %272 : vector<8x8xf32>
    %c47 = arith.constant 47 : index
    %274 = memref.load %arg3[%c47] : memref<128xf32, #tpu.memory_space<smem>>
    %275 = vector.broadcast %274 : f32 to vector<8x8xf32>
    %276 = arith.mulf %261, %275 : vector<8x8xf32>
    %277 = arith.addf %257, %276 : vector<8x8xf32>
    %c12_i32 = arith.constant 12 : i32
    %278 = vector.broadcast %c12_i32 : i32 to vector<8x8xi32>
    %279 = arith.cmpi eq, %33, %278 : vector<8x8xi32>
    %280 = arith.extui %279 : vector<8x8xi1> to vector<8x8xi32>
    %281 = arith.sitofp %280 : vector<8x8xi32> to vector<8x8xf32>
    %c48 = arith.constant 48 : index
    %282 = memref.load %arg3[%c48] : memref<128xf32, #tpu.memory_space<smem>>
    %283 = vector.broadcast %282 : f32 to vector<8x8xf32>
    %284 = arith.mulf %281, %283 : vector<8x8xf32>
    %285 = arith.addf %265, %284 : vector<8x8xf32>
    %c49 = arith.constant 49 : index
    %286 = memref.load %arg3[%c49] : memref<128xf32, #tpu.memory_space<smem>>
    %287 = vector.broadcast %286 : f32 to vector<8x8xf32>
    %288 = arith.mulf %281, %287 : vector<8x8xf32>
    %289 = arith.addf %269, %288 : vector<8x8xf32>
    %c50 = arith.constant 50 : index
    %290 = memref.load %arg3[%c50] : memref<128xf32, #tpu.memory_space<smem>>
    %291 = vector.broadcast %290 : f32 to vector<8x8xf32>
    %292 = arith.mulf %281, %291 : vector<8x8xf32>
    %293 = arith.addf %273, %292 : vector<8x8xf32>
    %c51 = arith.constant 51 : index
    %294 = memref.load %arg3[%c51] : memref<128xf32, #tpu.memory_space<smem>>
    %295 = vector.broadcast %294 : f32 to vector<8x8xf32>
    %296 = arith.mulf %281, %295 : vector<8x8xf32>
    %297 = arith.addf %277, %296 : vector<8x8xf32>
    %c13_i32 = arith.constant 13 : i32
    %298 = vector.broadcast %c13_i32 : i32 to vector<8x8xi32>
    %299 = arith.cmpi eq, %33, %298 : vector<8x8xi32>
    %300 = arith.extui %299 : vector<8x8xi1> to vector<8x8xi32>
    %301 = arith.sitofp %300 : vector<8x8xi32> to vector<8x8xf32>
    %c52 = arith.constant 52 : index
    %302 = memref.load %arg3[%c52] : memref<128xf32, #tpu.memory_space<smem>>
    %303 = vector.broadcast %302 : f32 to vector<8x8xf32>
    %304 = arith.mulf %301, %303 : vector<8x8xf32>
    %305 = arith.addf %285, %304 : vector<8x8xf32>
    %c53 = arith.constant 53 : index
    %306 = memref.load %arg3[%c53] : memref<128xf32, #tpu.memory_space<smem>>
    %307 = vector.broadcast %306 : f32 to vector<8x8xf32>
    %308 = arith.mulf %301, %307 : vector<8x8xf32>
    %309 = arith.addf %289, %308 : vector<8x8xf32>
    %c54 = arith.constant 54 : index
    %310 = memref.load %arg3[%c54] : memref<128xf32, #tpu.memory_space<smem>>
    %311 = vector.broadcast %310 : f32 to vector<8x8xf32>
    %312 = arith.mulf %301, %311 : vector<8x8xf32>
    %313 = arith.addf %293, %312 : vector<8x8xf32>
    %c55 = arith.constant 55 : index
    %314 = memref.load %arg3[%c55] : memref<128xf32, #tpu.memory_space<smem>>
    %315 = vector.broadcast %314 : f32 to vector<8x8xf32>
    %316 = arith.mulf %301, %315 : vector<8x8xf32>
    %317 = arith.addf %297, %316 : vector<8x8xf32>
    %c14_i32 = arith.constant 14 : i32
    %318 = vector.broadcast %c14_i32 : i32 to vector<8x8xi32>
    %319 = arith.cmpi eq, %33, %318 : vector<8x8xi32>
    %320 = arith.extui %319 : vector<8x8xi1> to vector<8x8xi32>
    %321 = arith.sitofp %320 : vector<8x8xi32> to vector<8x8xf32>
    %c56 = arith.constant 56 : index
    %322 = memref.load %arg3[%c56] : memref<128xf32, #tpu.memory_space<smem>>
    %323 = vector.broadcast %322 : f32 to vector<8x8xf32>
    %324 = arith.mulf %321, %323 : vector<8x8xf32>
    %325 = arith.addf %305, %324 : vector<8x8xf32>
    %c57 = arith.constant 57 : index
    %326 = memref.load %arg3[%c57] : memref<128xf32, #tpu.memory_space<smem>>
    %327 = vector.broadcast %326 : f32 to vector<8x8xf32>
    %328 = arith.mulf %321, %327 : vector<8x8xf32>
    %329 = arith.addf %309, %328 : vector<8x8xf32>
    %c58 = arith.constant 58 : index
    %330 = memref.load %arg3[%c58] : memref<128xf32, #tpu.memory_space<smem>>
    %331 = vector.broadcast %330 : f32 to vector<8x8xf32>
    %332 = arith.mulf %321, %331 : vector<8x8xf32>
    %333 = arith.addf %313, %332 : vector<8x8xf32>
    %c59 = arith.constant 59 : index
    %334 = memref.load %arg3[%c59] : memref<128xf32, #tpu.memory_space<smem>>
    %335 = vector.broadcast %334 : f32 to vector<8x8xf32>
    %336 = arith.mulf %321, %335 : vector<8x8xf32>
    %337 = arith.addf %317, %336 : vector<8x8xf32>
    %c15_i32 = arith.constant 15 : i32
    %338 = vector.broadcast %c15_i32 : i32 to vector<8x8xi32>
    %339 = arith.cmpi eq, %33, %338 : vector<8x8xi32>
    %340 = arith.extui %339 : vector<8x8xi1> to vector<8x8xi32>
    %341 = arith.sitofp %340 : vector<8x8xi32> to vector<8x8xf32>
    %c60 = arith.constant 60 : index
    %342 = memref.load %arg3[%c60] : memref<128xf32, #tpu.memory_space<smem>>
    %343 = vector.broadcast %342 : f32 to vector<8x8xf32>
    %344 = arith.mulf %341, %343 : vector<8x8xf32>
    %345 = arith.addf %325, %344 : vector<8x8xf32>
    %c61 = arith.constant 61 : index
    %346 = memref.load %arg3[%c61] : memref<128xf32, #tpu.memory_space<smem>>
    %347 = vector.broadcast %346 : f32 to vector<8x8xf32>
    %348 = arith.mulf %341, %347 : vector<8x8xf32>
    %349 = arith.addf %329, %348 : vector<8x8xf32>
    %c62 = arith.constant 62 : index
    %350 = memref.load %arg3[%c62] : memref<128xf32, #tpu.memory_space<smem>>
    %351 = vector.broadcast %350 : f32 to vector<8x8xf32>
    %352 = arith.mulf %341, %351 : vector<8x8xf32>
    %353 = arith.addf %333, %352 : vector<8x8xf32>
    %c63 = arith.constant 63 : index
    %354 = memref.load %arg3[%c63] : memref<128xf32, #tpu.memory_space<smem>>
    %355 = vector.broadcast %354 : f32 to vector<8x8xf32>
    %356 = arith.mulf %341, %355 : vector<8x8xf32>
    %357 = arith.addf %337, %356 : vector<8x8xf32>
    %c16_i32_23 = arith.constant 16 : i32
    %358 = vector.broadcast %c16_i32_23 : i32 to vector<8x8xi32>
    %359 = arith.cmpi eq, %33, %358 : vector<8x8xi32>
    %360 = arith.extui %359 : vector<8x8xi1> to vector<8x8xi32>
    %361 = arith.sitofp %360 : vector<8x8xi32> to vector<8x8xf32>
    %c64 = arith.constant 64 : index
    %362 = memref.load %arg3[%c64] : memref<128xf32, #tpu.memory_space<smem>>
    %363 = vector.broadcast %362 : f32 to vector<8x8xf32>
    %364 = arith.mulf %361, %363 : vector<8x8xf32>
    %365 = arith.addf %345, %364 : vector<8x8xf32>
    %c65 = arith.constant 65 : index
    %366 = memref.load %arg3[%c65] : memref<128xf32, #tpu.memory_space<smem>>
    %367 = vector.broadcast %366 : f32 to vector<8x8xf32>
    %368 = arith.mulf %361, %367 : vector<8x8xf32>
    %369 = arith.addf %349, %368 : vector<8x8xf32>
    %c66 = arith.constant 66 : index
    %370 = memref.load %arg3[%c66] : memref<128xf32, #tpu.memory_space<smem>>
    %371 = vector.broadcast %370 : f32 to vector<8x8xf32>
    %372 = arith.mulf %361, %371 : vector<8x8xf32>
    %373 = arith.addf %353, %372 : vector<8x8xf32>
    %c67 = arith.constant 67 : index
    %374 = memref.load %arg3[%c67] : memref<128xf32, #tpu.memory_space<smem>>
    %375 = vector.broadcast %374 : f32 to vector<8x8xf32>
    %376 = arith.mulf %361, %375 : vector<8x8xf32>
    %377 = arith.addf %357, %376 : vector<8x8xf32>
    %c17_i32 = arith.constant 17 : i32
    %378 = vector.broadcast %c17_i32 : i32 to vector<8x8xi32>
    %379 = arith.cmpi eq, %33, %378 : vector<8x8xi32>
    %380 = arith.extui %379 : vector<8x8xi1> to vector<8x8xi32>
    %381 = arith.sitofp %380 : vector<8x8xi32> to vector<8x8xf32>
    %c68 = arith.constant 68 : index
    %382 = memref.load %arg3[%c68] : memref<128xf32, #tpu.memory_space<smem>>
    %383 = vector.broadcast %382 : f32 to vector<8x8xf32>
    %384 = arith.mulf %381, %383 : vector<8x8xf32>
    %385 = arith.addf %365, %384 : vector<8x8xf32>
    %c69 = arith.constant 69 : index
    %386 = memref.load %arg3[%c69] : memref<128xf32, #tpu.memory_space<smem>>
    %387 = vector.broadcast %386 : f32 to vector<8x8xf32>
    %388 = arith.mulf %381, %387 : vector<8x8xf32>
    %389 = arith.addf %369, %388 : vector<8x8xf32>
    %c70 = arith.constant 70 : index
    %390 = memref.load %arg3[%c70] : memref<128xf32, #tpu.memory_space<smem>>
    %391 = vector.broadcast %390 : f32 to vector<8x8xf32>
    %392 = arith.mulf %381, %391 : vector<8x8xf32>
    %393 = arith.addf %373, %392 : vector<8x8xf32>
    %c71 = arith.constant 71 : index
    %394 = memref.load %arg3[%c71] : memref<128xf32, #tpu.memory_space<smem>>
    %395 = vector.broadcast %394 : f32 to vector<8x8xf32>
    %396 = arith.mulf %381, %395 : vector<8x8xf32>
    %397 = arith.addf %377, %396 : vector<8x8xf32>
    %c18_i32 = arith.constant 18 : i32
    %398 = vector.broadcast %c18_i32 : i32 to vector<8x8xi32>
    %399 = arith.cmpi eq, %33, %398 : vector<8x8xi32>
    %400 = arith.extui %399 : vector<8x8xi1> to vector<8x8xi32>
    %401 = arith.sitofp %400 : vector<8x8xi32> to vector<8x8xf32>
    %c72 = arith.constant 72 : index
    %402 = memref.load %arg3[%c72] : memref<128xf32, #tpu.memory_space<smem>>
    %403 = vector.broadcast %402 : f32 to vector<8x8xf32>
    %404 = arith.mulf %401, %403 : vector<8x8xf32>
    %405 = arith.addf %385, %404 : vector<8x8xf32>
    %c73 = arith.constant 73 : index
    %406 = memref.load %arg3[%c73] : memref<128xf32, #tpu.memory_space<smem>>
    %407 = vector.broadcast %406 : f32 to vector<8x8xf32>
    %408 = arith.mulf %401, %407 : vector<8x8xf32>
    %409 = arith.addf %389, %408 : vector<8x8xf32>
    %c74 = arith.constant 74 : index
    %410 = memref.load %arg3[%c74] : memref<128xf32, #tpu.memory_space<smem>>
    %411 = vector.broadcast %410 : f32 to vector<8x8xf32>
    %412 = arith.mulf %401, %411 : vector<8x8xf32>
    %413 = arith.addf %393, %412 : vector<8x8xf32>
    %c75 = arith.constant 75 : index
    %414 = memref.load %arg3[%c75] : memref<128xf32, #tpu.memory_space<smem>>
    %415 = vector.broadcast %414 : f32 to vector<8x8xf32>
    %416 = arith.mulf %401, %415 : vector<8x8xf32>
    %417 = arith.addf %397, %416 : vector<8x8xf32>
    %c19_i32 = arith.constant 19 : i32
    %418 = vector.broadcast %c19_i32 : i32 to vector<8x8xi32>
    %419 = arith.cmpi eq, %33, %418 : vector<8x8xi32>
    %420 = arith.extui %419 : vector<8x8xi1> to vector<8x8xi32>
    %421 = arith.sitofp %420 : vector<8x8xi32> to vector<8x8xf32>
    %c76 = arith.constant 76 : index
    %422 = memref.load %arg3[%c76] : memref<128xf32, #tpu.memory_space<smem>>
    %423 = vector.broadcast %422 : f32 to vector<8x8xf32>
    %424 = arith.mulf %421, %423 : vector<8x8xf32>
    %425 = arith.addf %405, %424 : vector<8x8xf32>
    %c77 = arith.constant 77 : index
    %426 = memref.load %arg3[%c77] : memref<128xf32, #tpu.memory_space<smem>>
    %427 = vector.broadcast %426 : f32 to vector<8x8xf32>
    %428 = arith.mulf %421, %427 : vector<8x8xf32>
    %429 = arith.addf %409, %428 : vector<8x8xf32>
    %c78 = arith.constant 78 : index
    %430 = memref.load %arg3[%c78] : memref<128xf32, #tpu.memory_space<smem>>
    %431 = vector.broadcast %430 : f32 to vector<8x8xf32>
    %432 = arith.mulf %421, %431 : vector<8x8xf32>
    %433 = arith.addf %413, %432 : vector<8x8xf32>
    %c79 = arith.constant 79 : index
    %434 = memref.load %arg3[%c79] : memref<128xf32, #tpu.memory_space<smem>>
    %435 = vector.broadcast %434 : f32 to vector<8x8xf32>
    %436 = arith.mulf %421, %435 : vector<8x8xf32>
    %437 = arith.addf %417, %436 : vector<8x8xf32>
    %c20_i32 = arith.constant 20 : i32
    %438 = vector.broadcast %c20_i32 : i32 to vector<8x8xi32>
    %439 = arith.cmpi eq, %33, %438 : vector<8x8xi32>
    %440 = arith.extui %439 : vector<8x8xi1> to vector<8x8xi32>
    %441 = arith.sitofp %440 : vector<8x8xi32> to vector<8x8xf32>
    %c80 = arith.constant 80 : index
    %442 = memref.load %arg3[%c80] : memref<128xf32, #tpu.memory_space<smem>>
    %443 = vector.broadcast %442 : f32 to vector<8x8xf32>
    %444 = arith.mulf %441, %443 : vector<8x8xf32>
    %445 = arith.addf %425, %444 : vector<8x8xf32>
    %c81 = arith.constant 81 : index
    %446 = memref.load %arg3[%c81] : memref<128xf32, #tpu.memory_space<smem>>
    %447 = vector.broadcast %446 : f32 to vector<8x8xf32>
    %448 = arith.mulf %441, %447 : vector<8x8xf32>
    %449 = arith.addf %429, %448 : vector<8x8xf32>
    %c82 = arith.constant 82 : index
    %450 = memref.load %arg3[%c82] : memref<128xf32, #tpu.memory_space<smem>>
    %451 = vector.broadcast %450 : f32 to vector<8x8xf32>
    %452 = arith.mulf %441, %451 : vector<8x8xf32>
    %453 = arith.addf %433, %452 : vector<8x8xf32>
    %c83 = arith.constant 83 : index
    %454 = memref.load %arg3[%c83] : memref<128xf32, #tpu.memory_space<smem>>
    %455 = vector.broadcast %454 : f32 to vector<8x8xf32>
    %456 = arith.mulf %441, %455 : vector<8x8xf32>
    %457 = arith.addf %437, %456 : vector<8x8xf32>
    %c21_i32 = arith.constant 21 : i32
    %458 = vector.broadcast %c21_i32 : i32 to vector<8x8xi32>
    %459 = arith.cmpi eq, %33, %458 : vector<8x8xi32>
    %460 = arith.extui %459 : vector<8x8xi1> to vector<8x8xi32>
    %461 = arith.sitofp %460 : vector<8x8xi32> to vector<8x8xf32>
    %c84 = arith.constant 84 : index
    %462 = memref.load %arg3[%c84] : memref<128xf32, #tpu.memory_space<smem>>
    %463 = vector.broadcast %462 : f32 to vector<8x8xf32>
    %464 = arith.mulf %461, %463 : vector<8x8xf32>
    %465 = arith.addf %445, %464 : vector<8x8xf32>
    %c85 = arith.constant 85 : index
    %466 = memref.load %arg3[%c85] : memref<128xf32, #tpu.memory_space<smem>>
    %467 = vector.broadcast %466 : f32 to vector<8x8xf32>
    %468 = arith.mulf %461, %467 : vector<8x8xf32>
    %469 = arith.addf %449, %468 : vector<8x8xf32>
    %c86 = arith.constant 86 : index
    %470 = memref.load %arg3[%c86] : memref<128xf32, #tpu.memory_space<smem>>
    %471 = vector.broadcast %470 : f32 to vector<8x8xf32>
    %472 = arith.mulf %461, %471 : vector<8x8xf32>
    %473 = arith.addf %453, %472 : vector<8x8xf32>
    %c87 = arith.constant 87 : index
    %474 = memref.load %arg3[%c87] : memref<128xf32, #tpu.memory_space<smem>>
    %475 = vector.broadcast %474 : f32 to vector<8x8xf32>
    %476 = arith.mulf %461, %475 : vector<8x8xf32>
    %477 = arith.addf %457, %476 : vector<8x8xf32>
    %c22_i32 = arith.constant 22 : i32
    %478 = vector.broadcast %c22_i32 : i32 to vector<8x8xi32>
    %479 = arith.cmpi eq, %33, %478 : vector<8x8xi32>
    %480 = arith.extui %479 : vector<8x8xi1> to vector<8x8xi32>
    %481 = arith.sitofp %480 : vector<8x8xi32> to vector<8x8xf32>
    %c88 = arith.constant 88 : index
    %482 = memref.load %arg3[%c88] : memref<128xf32, #tpu.memory_space<smem>>
    %483 = vector.broadcast %482 : f32 to vector<8x8xf32>
    %484 = arith.mulf %481, %483 : vector<8x8xf32>
    %485 = arith.addf %465, %484 : vector<8x8xf32>
    %c89 = arith.constant 89 : index
    %486 = memref.load %arg3[%c89] : memref<128xf32, #tpu.memory_space<smem>>
    %487 = vector.broadcast %486 : f32 to vector<8x8xf32>
    %488 = arith.mulf %481, %487 : vector<8x8xf32>
    %489 = arith.addf %469, %488 : vector<8x8xf32>
    %c90 = arith.constant 90 : index
    %490 = memref.load %arg3[%c90] : memref<128xf32, #tpu.memory_space<smem>>
    %491 = vector.broadcast %490 : f32 to vector<8x8xf32>
    %492 = arith.mulf %481, %491 : vector<8x8xf32>
    %493 = arith.addf %473, %492 : vector<8x8xf32>
    %c91 = arith.constant 91 : index
    %494 = memref.load %arg3[%c91] : memref<128xf32, #tpu.memory_space<smem>>
    %495 = vector.broadcast %494 : f32 to vector<8x8xf32>
    %496 = arith.mulf %481, %495 : vector<8x8xf32>
    %497 = arith.addf %477, %496 : vector<8x8xf32>
    %c23_i32 = arith.constant 23 : i32
    %498 = vector.broadcast %c23_i32 : i32 to vector<8x8xi32>
    %499 = arith.cmpi eq, %33, %498 : vector<8x8xi32>
    %500 = arith.extui %499 : vector<8x8xi1> to vector<8x8xi32>
    %501 = arith.sitofp %500 : vector<8x8xi32> to vector<8x8xf32>
    %c92 = arith.constant 92 : index
    %502 = memref.load %arg3[%c92] : memref<128xf32, #tpu.memory_space<smem>>
    %503 = vector.broadcast %502 : f32 to vector<8x8xf32>
    %504 = arith.mulf %501, %503 : vector<8x8xf32>
    %505 = arith.addf %485, %504 : vector<8x8xf32>
    %c93 = arith.constant 93 : index
    %506 = memref.load %arg3[%c93] : memref<128xf32, #tpu.memory_space<smem>>
    %507 = vector.broadcast %506 : f32 to vector<8x8xf32>
    %508 = arith.mulf %501, %507 : vector<8x8xf32>
    %509 = arith.addf %489, %508 : vector<8x8xf32>
    %c94 = arith.constant 94 : index
    %510 = memref.load %arg3[%c94] : memref<128xf32, #tpu.memory_space<smem>>
    %511 = vector.broadcast %510 : f32 to vector<8x8xf32>
    %512 = arith.mulf %501, %511 : vector<8x8xf32>
    %513 = arith.addf %493, %512 : vector<8x8xf32>
    %c95 = arith.constant 95 : index
    %514 = memref.load %arg3[%c95] : memref<128xf32, #tpu.memory_space<smem>>
    %515 = vector.broadcast %514 : f32 to vector<8x8xf32>
    %516 = arith.mulf %501, %515 : vector<8x8xf32>
    %517 = arith.addf %497, %516 : vector<8x8xf32>
    %c24_i32 = arith.constant 24 : i32
    %518 = vector.broadcast %c24_i32 : i32 to vector<8x8xi32>
    %519 = arith.cmpi eq, %33, %518 : vector<8x8xi32>
    %520 = arith.extui %519 : vector<8x8xi1> to vector<8x8xi32>
    %521 = arith.sitofp %520 : vector<8x8xi32> to vector<8x8xf32>
    %c96 = arith.constant 96 : index
    %522 = memref.load %arg3[%c96] : memref<128xf32, #tpu.memory_space<smem>>
    %523 = vector.broadcast %522 : f32 to vector<8x8xf32>
    %524 = arith.mulf %521, %523 : vector<8x8xf32>
    %525 = arith.addf %505, %524 : vector<8x8xf32>
    %c97 = arith.constant 97 : index
    %526 = memref.load %arg3[%c97] : memref<128xf32, #tpu.memory_space<smem>>
    %527 = vector.broadcast %526 : f32 to vector<8x8xf32>
    %528 = arith.mulf %521, %527 : vector<8x8xf32>
    %529 = arith.addf %509, %528 : vector<8x8xf32>
    %c98 = arith.constant 98 : index
    %530 = memref.load %arg3[%c98] : memref<128xf32, #tpu.memory_space<smem>>
    %531 = vector.broadcast %530 : f32 to vector<8x8xf32>
    %532 = arith.mulf %521, %531 : vector<8x8xf32>
    %533 = arith.addf %513, %532 : vector<8x8xf32>
    %c99 = arith.constant 99 : index
    %534 = memref.load %arg3[%c99] : memref<128xf32, #tpu.memory_space<smem>>
    %535 = vector.broadcast %534 : f32 to vector<8x8xf32>
    %536 = arith.mulf %521, %535 : vector<8x8xf32>
    %537 = arith.addf %517, %536 : vector<8x8xf32>
    %c25_i32 = arith.constant 25 : i32
    %538 = vector.broadcast %c25_i32 : i32 to vector<8x8xi32>
    %539 = arith.cmpi eq, %33, %538 : vector<8x8xi32>
    %540 = arith.extui %539 : vector<8x8xi1> to vector<8x8xi32>
    %541 = arith.sitofp %540 : vector<8x8xi32> to vector<8x8xf32>
    %c100 = arith.constant 100 : index
    %542 = memref.load %arg3[%c100] : memref<128xf32, #tpu.memory_space<smem>>
    %543 = vector.broadcast %542 : f32 to vector<8x8xf32>
    %544 = arith.mulf %541, %543 : vector<8x8xf32>
    %545 = arith.addf %525, %544 : vector<8x8xf32>
    %c101 = arith.constant 101 : index
    %546 = memref.load %arg3[%c101] : memref<128xf32, #tpu.memory_space<smem>>
    %547 = vector.broadcast %546 : f32 to vector<8x8xf32>
    %548 = arith.mulf %541, %547 : vector<8x8xf32>
    %549 = arith.addf %529, %548 : vector<8x8xf32>
    %c102 = arith.constant 102 : index
    %550 = memref.load %arg3[%c102] : memref<128xf32, #tpu.memory_space<smem>>
    %551 = vector.broadcast %550 : f32 to vector<8x8xf32>
    %552 = arith.mulf %541, %551 : vector<8x8xf32>
    %553 = arith.addf %533, %552 : vector<8x8xf32>
    %c103 = arith.constant 103 : index
    %554 = memref.load %arg3[%c103] : memref<128xf32, #tpu.memory_space<smem>>
    %555 = vector.broadcast %554 : f32 to vector<8x8xf32>
    %556 = arith.mulf %541, %555 : vector<8x8xf32>
    %557 = arith.addf %537, %556 : vector<8x8xf32>
    %c26_i32 = arith.constant 26 : i32
    %558 = vector.broadcast %c26_i32 : i32 to vector<8x8xi32>
    %559 = arith.cmpi eq, %33, %558 : vector<8x8xi32>
    %560 = arith.extui %559 : vector<8x8xi1> to vector<8x8xi32>
    %561 = arith.sitofp %560 : vector<8x8xi32> to vector<8x8xf32>
    %c104 = arith.constant 104 : index
    %562 = memref.load %arg3[%c104] : memref<128xf32, #tpu.memory_space<smem>>
    %563 = vector.broadcast %562 : f32 to vector<8x8xf32>
    %564 = arith.mulf %561, %563 : vector<8x8xf32>
    %565 = arith.addf %545, %564 : vector<8x8xf32>
    %c105 = arith.constant 105 : index
    %566 = memref.load %arg3[%c105] : memref<128xf32, #tpu.memory_space<smem>>
    %567 = vector.broadcast %566 : f32 to vector<8x8xf32>
    %568 = arith.mulf %561, %567 : vector<8x8xf32>
    %569 = arith.addf %549, %568 : vector<8x8xf32>
    %c106 = arith.constant 106 : index
    %570 = memref.load %arg3[%c106] : memref<128xf32, #tpu.memory_space<smem>>
    %571 = vector.broadcast %570 : f32 to vector<8x8xf32>
    %572 = arith.mulf %561, %571 : vector<8x8xf32>
    %573 = arith.addf %553, %572 : vector<8x8xf32>
    %c107 = arith.constant 107 : index
    %574 = memref.load %arg3[%c107] : memref<128xf32, #tpu.memory_space<smem>>
    %575 = vector.broadcast %574 : f32 to vector<8x8xf32>
    %576 = arith.mulf %561, %575 : vector<8x8xf32>
    %577 = arith.addf %557, %576 : vector<8x8xf32>
    %c27_i32 = arith.constant 27 : i32
    %578 = vector.broadcast %c27_i32 : i32 to vector<8x8xi32>
    %579 = arith.cmpi eq, %33, %578 : vector<8x8xi32>
    %580 = arith.extui %579 : vector<8x8xi1> to vector<8x8xi32>
    %581 = arith.sitofp %580 : vector<8x8xi32> to vector<8x8xf32>
    %c108 = arith.constant 108 : index
    %582 = memref.load %arg3[%c108] : memref<128xf32, #tpu.memory_space<smem>>
    %583 = vector.broadcast %582 : f32 to vector<8x8xf32>
    %584 = arith.mulf %581, %583 : vector<8x8xf32>
    %585 = arith.addf %565, %584 : vector<8x8xf32>
    %c109 = arith.constant 109 : index
    %586 = memref.load %arg3[%c109] : memref<128xf32, #tpu.memory_space<smem>>
    %587 = vector.broadcast %586 : f32 to vector<8x8xf32>
    %588 = arith.mulf %581, %587 : vector<8x8xf32>
    %589 = arith.addf %569, %588 : vector<8x8xf32>
    %c110 = arith.constant 110 : index
    %590 = memref.load %arg3[%c110] : memref<128xf32, #tpu.memory_space<smem>>
    %591 = vector.broadcast %590 : f32 to vector<8x8xf32>
    %592 = arith.mulf %581, %591 : vector<8x8xf32>
    %593 = arith.addf %573, %592 : vector<8x8xf32>
    %c111 = arith.constant 111 : index
    %594 = memref.load %arg3[%c111] : memref<128xf32, #tpu.memory_space<smem>>
    %595 = vector.broadcast %594 : f32 to vector<8x8xf32>
    %596 = arith.mulf %581, %595 : vector<8x8xf32>
    %597 = arith.addf %577, %596 : vector<8x8xf32>
    %c28_i32 = arith.constant 28 : i32
    %598 = vector.broadcast %c28_i32 : i32 to vector<8x8xi32>
    %599 = arith.cmpi eq, %33, %598 : vector<8x8xi32>
    %600 = arith.extui %599 : vector<8x8xi1> to vector<8x8xi32>
    %601 = arith.sitofp %600 : vector<8x8xi32> to vector<8x8xf32>
    %c112 = arith.constant 112 : index
    %602 = memref.load %arg3[%c112] : memref<128xf32, #tpu.memory_space<smem>>
    %603 = vector.broadcast %602 : f32 to vector<8x8xf32>
    %604 = arith.mulf %601, %603 : vector<8x8xf32>
    %605 = arith.addf %585, %604 : vector<8x8xf32>
    %c113 = arith.constant 113 : index
    %606 = memref.load %arg3[%c113] : memref<128xf32, #tpu.memory_space<smem>>
    %607 = vector.broadcast %606 : f32 to vector<8x8xf32>
    %608 = arith.mulf %601, %607 : vector<8x8xf32>
    %609 = arith.addf %589, %608 : vector<8x8xf32>
    %c114 = arith.constant 114 : index
    %610 = memref.load %arg3[%c114] : memref<128xf32, #tpu.memory_space<smem>>
    %611 = vector.broadcast %610 : f32 to vector<8x8xf32>
    %612 = arith.mulf %601, %611 : vector<8x8xf32>
    %613 = arith.addf %593, %612 : vector<8x8xf32>
    %c115 = arith.constant 115 : index
    %614 = memref.load %arg3[%c115] : memref<128xf32, #tpu.memory_space<smem>>
    %615 = vector.broadcast %614 : f32 to vector<8x8xf32>
    %616 = arith.mulf %601, %615 : vector<8x8xf32>
    %617 = arith.addf %597, %616 : vector<8x8xf32>
    %c29_i32 = arith.constant 29 : i32
    %618 = vector.broadcast %c29_i32 : i32 to vector<8x8xi32>
    %619 = arith.cmpi eq, %33, %618 : vector<8x8xi32>
    %620 = arith.extui %619 : vector<8x8xi1> to vector<8x8xi32>
    %621 = arith.sitofp %620 : vector<8x8xi32> to vector<8x8xf32>
    %c116 = arith.constant 116 : index
    %622 = memref.load %arg3[%c116] : memref<128xf32, #tpu.memory_space<smem>>
    %623 = vector.broadcast %622 : f32 to vector<8x8xf32>
    %624 = arith.mulf %621, %623 : vector<8x8xf32>
    %625 = arith.addf %605, %624 : vector<8x8xf32>
    %c117 = arith.constant 117 : index
    %626 = memref.load %arg3[%c117] : memref<128xf32, #tpu.memory_space<smem>>
    %627 = vector.broadcast %626 : f32 to vector<8x8xf32>
    %628 = arith.mulf %621, %627 : vector<8x8xf32>
    %629 = arith.addf %609, %628 : vector<8x8xf32>
    %c118 = arith.constant 118 : index
    %630 = memref.load %arg3[%c118] : memref<128xf32, #tpu.memory_space<smem>>
    %631 = vector.broadcast %630 : f32 to vector<8x8xf32>
    %632 = arith.mulf %621, %631 : vector<8x8xf32>
    %633 = arith.addf %613, %632 : vector<8x8xf32>
    %c119 = arith.constant 119 : index
    %634 = memref.load %arg3[%c119] : memref<128xf32, #tpu.memory_space<smem>>
    %635 = vector.broadcast %634 : f32 to vector<8x8xf32>
    %636 = arith.mulf %621, %635 : vector<8x8xf32>
    %637 = arith.addf %617, %636 : vector<8x8xf32>
    %c30_i32 = arith.constant 30 : i32
    %638 = vector.broadcast %c30_i32 : i32 to vector<8x8xi32>
    %639 = arith.cmpi eq, %33, %638 : vector<8x8xi32>
    %640 = arith.extui %639 : vector<8x8xi1> to vector<8x8xi32>
    %641 = arith.sitofp %640 : vector<8x8xi32> to vector<8x8xf32>
    %c120 = arith.constant 120 : index
    %642 = memref.load %arg3[%c120] : memref<128xf32, #tpu.memory_space<smem>>
    %643 = vector.broadcast %642 : f32 to vector<8x8xf32>
    %644 = arith.mulf %641, %643 : vector<8x8xf32>
    %645 = arith.addf %625, %644 : vector<8x8xf32>
    %c121 = arith.constant 121 : index
    %646 = memref.load %arg3[%c121] : memref<128xf32, #tpu.memory_space<smem>>
    %647 = vector.broadcast %646 : f32 to vector<8x8xf32>
    %648 = arith.mulf %641, %647 : vector<8x8xf32>
    %649 = arith.addf %629, %648 : vector<8x8xf32>
    %c122 = arith.constant 122 : index
    %650 = memref.load %arg3[%c122] : memref<128xf32, #tpu.memory_space<smem>>
    %651 = vector.broadcast %650 : f32 to vector<8x8xf32>
    %652 = arith.mulf %641, %651 : vector<8x8xf32>
    %653 = arith.addf %633, %652 : vector<8x8xf32>
    %c123 = arith.constant 123 : index
    %654 = memref.load %arg3[%c123] : memref<128xf32, #tpu.memory_space<smem>>
    %655 = vector.broadcast %654 : f32 to vector<8x8xf32>
    %656 = arith.mulf %641, %655 : vector<8x8xf32>
    %657 = arith.addf %637, %656 : vector<8x8xf32>
    %c31_i32_24 = arith.constant 31 : i32
    %658 = vector.broadcast %c31_i32_24 : i32 to vector<8x8xi32>
    %659 = arith.cmpi eq, %33, %658 : vector<8x8xi32>
    %660 = arith.extui %659 : vector<8x8xi1> to vector<8x8xi32>
    %661 = arith.sitofp %660 : vector<8x8xi32> to vector<8x8xf32>
    %c124 = arith.constant 124 : index
    %662 = memref.load %arg3[%c124] : memref<128xf32, #tpu.memory_space<smem>>
    %663 = vector.broadcast %662 : f32 to vector<8x8xf32>
    %664 = arith.mulf %661, %663 : vector<8x8xf32>
    %665 = arith.addf %645, %664 : vector<8x8xf32>
    %c125 = arith.constant 125 : index
    %666 = memref.load %arg3[%c125] : memref<128xf32, #tpu.memory_space<smem>>
    %667 = vector.broadcast %666 : f32 to vector<8x8xf32>
    %668 = arith.mulf %661, %667 : vector<8x8xf32>
    %669 = arith.addf %649, %668 : vector<8x8xf32>
    %c126 = arith.constant 126 : index
    %670 = memref.load %arg3[%c126] : memref<128xf32, #tpu.memory_space<smem>>
    %671 = vector.broadcast %670 : f32 to vector<8x8xf32>
    %672 = arith.mulf %661, %671 : vector<8x8xf32>
    %673 = arith.addf %653, %672 : vector<8x8xf32>
    %c127 = arith.constant 127 : index
    %674 = memref.load %arg3[%c127] : memref<128xf32, #tpu.memory_space<smem>>
    %675 = vector.broadcast %674 : f32 to vector<8x8xf32>
    %676 = arith.mulf %661, %675 : vector<8x8xf32>
    %677 = arith.addf %657, %676 : vector<8x8xf32>
    %678 = vector.shape_cast %665 : vector<8x8xf32> to vector<1x8x8xf32>
    %679 = vector.shape_cast %669 : vector<8x8xf32> to vector<1x8x8xf32>
    %680 = vector.shape_cast %673 : vector<8x8xf32> to vector<1x8x8xf32>
    %681 = vector.shape_cast %677 : vector<8x8xf32> to vector<1x8x8xf32>
    %682 = tpu.concatenate %678, %679, %680, %681 in 0 : vector<1x8x8xf32>, vector<1x8x8xf32>, vector<1x8x8xf32>, vector<1x8x8xf32> -> vector<4x8x8xf32>
    %683 = arith.addf %6, %682 : vector<4x8x8xf32>
    %684 = arith.negf %683 : vector<4x8x8xf32>
    %685 = math.exp %684 : vector<4x8x8xf32>
    %cst_25 = arith.constant 1.000000e+00 : f32
    %686 = vector.broadcast %cst_25 : f32 to vector<4x8x8xf32>
    %687 = arith.addf %686, %685 : vector<4x8x8xf32>
    %688 = arith.divf %686, %687 : vector<4x8x8xf32>
    %689 = arith.mulf %683, %688 : vector<4x8x8xf32>
    %690 = arith.truncf %689 : vector<4x8x8xf32> to vector<4x8x8xbf16>
    "tpu.trace_start"() <{level = 10 : i32, message = "hqk,hkd->hqd"}> : () -> ()
    %cst_26 = arith.constant dense<0.000000e+00> : vector<4x8x8xf32>
    %691 = tpu.matmul %690, %5, %cst_26 {dimension_numbers = #tpu.dot_dimension_numbers<[2], [1], [1], [2], [0, 0, 0, 1, 1, 2], [0], [0]>} : vector<4x8x8xbf16>, vector<4x8x8xbf16>, vector<4x8x8xf32> -> vector<4x8x8xf32>
    %c0_i32_27 = arith.constant 0 : i32
    "tpu.trace_stop"() : () -> ()
    %692 = arith.cmpi eq, %arg2, %c0_i32_27 : i32
    %693 = arith.extui %692 : i1 to i32
    %c0_i32_28 = arith.constant 0 : i32
    %694 = arith.cmpi ne, %693, %c0_i32_28 : i32
    scf.if %694 {
      %c0_33 = arith.constant 0 : index
      %c0_34 = arith.constant 0 : index
      %c0_35 = arith.constant 0 : index
      %701 = vector.load %arg14[%c0_33, %c0_34, %c0_35] : memref<4x8x8xf32, #tpu.memory_space<vmem>>, vector<4x8x8xf32>
      tpu.vector_store %arg14[%c0_33, %c0_34, %c0_35], %691 {strides = array<i32>} : memref<4x8x8xf32, #tpu.memory_space<vmem>>, vector<4x8x8xf32>,
    } else {
    }
    %c0_i32_29 = arith.constant 0 : i32
    %695 = arith.cmpi sgt, %arg2, %c0_i32_29 : i32
    %696 = arith.extui %695 : i1 to i32
    %c0_i32_30 = arith.constant 0 : i32
    %697 = arith.cmpi ne, %696, %c0_i32_30 : i32
    scf.if %697 {
      %c0_33 = arith.constant 0 : index
      %c0_34 = arith.constant 0 : index
      %c0_35 = arith.constant 0 : index
      %701 = vector.load %arg14[%c0_33, %c0_34, %c0_35] : memref<4x8x8xf32, #tpu.memory_space<vmem>>, vector<4x8x8xf32>
      %702 = arith.addf %701, %691 : vector<4x8x8xf32>
      %c0_36 = arith.constant 0 : index
      %c0_37 = arith.constant 0 : index
      %c0_38 = arith.constant 0 : index
      %703 = vector.load %arg14[%c0_36, %c0_37, %c0_38] : memref<4x8x8xf32, #tpu.memory_space<vmem>>, vector<4x8x8xf32>
      tpu.vector_store %arg14[%c0_36, %c0_37, %c0_38], %702 {strides = array<i32>} : memref<4x8x8xf32, #tpu.memory_space<vmem>>, vector<4x8x8xf32>,
    } else {
    }
    %c0_i32_31 = arith.constant 0 : i32
    %698 = arith.cmpi eq, %arg2, %c0_i32_31 : i32
    %699 = arith.extui %698 : i1 to i32
    %c0_i32_32 = arith.constant 0 : i32
    %700 = arith.cmpi ne, %699, %c0_i32_32 : i32
    scf.if %700 {
      %c0_33 = arith.constant 0 : index
      %c0_34 = arith.constant 0 : index
      %c0_35 = arith.constant 0 : index
      %701 = vector.load %arg14[%c0_33, %c0_34, %c0_35] : memref<4x8x8xf32, #tpu.memory_space<vmem>>, vector<1x8x8xf32>
      %702 = vector.shape_cast %701 : vector<1x8x8xf32> to vector<8x8xf32>
      %c1_36 = arith.constant 1 : index
      %c0_37 = arith.constant 0 : index
      %c0_38 = arith.constant 0 : index
      %703 = vector.load %arg14[%c1_36, %c0_37, %c0_38] : memref<4x8x8xf32, #tpu.memory_space<vmem>>, vector<1x8x8xf32>
      %704 = vector.shape_cast %703 : vector<1x8x8xf32> to vector<8x8xf32>
      %c2_39 = arith.constant 2 : index
      %c0_40 = arith.constant 0 : index
      %c0_41 = arith.constant 0 : index
      %705 = vector.load %arg14[%c2_39, %c0_40, %c0_41] : memref<4x8x8xf32, #tpu.memory_space<vmem>>, vector<1x8x8xf32>
      %706 = vector.shape_cast %705 : vector<1x8x8xf32> to vector<8x8xf32>
      %c3_42 = arith.constant 3 : index
      %c0_43 = arith.constant 0 : index
      %c0_44 = arith.constant 0 : index
      %707 = vector.load %arg14[%c3_42, %c0_43, %c0_44] : memref<4x8x8xf32, #tpu.memory_space<vmem>>, vector<1x8x8xf32>
      %708 = vector.shape_cast %707 : vector<1x8x8xf32> to vector<8x8xf32>
      %709 = tpu.concatenate %702, %704, %706, %708 in 1 : vector<8x8xf32>, vector<8x8xf32>, vector<8x8xf32>, vector<8x8xf32> -> vector<8x32xf32>
      %c0_45 = arith.constant 0 : index
      %c0_46 = arith.constant 0 : index
      %c0_47 = arith.constant 0 : index
      %710 = vector.load %arg7[%c0_45, %c0_46, %c0_47] : memref<1x8x32xbf16, #tpu.memory_space<vmem>>, vector<1x8x32xbf16>
      %711 = vector.shape_cast %710 : vector<1x8x32xbf16> to vector<8x32xbf16>
      %712 = arith.extf %711 : vector<8x32xbf16> to vector<8x32xf32>
      %713 = arith.mulf %709, %712 : vector<8x32xf32>
      %cst_48 = arith.constant dense<0.000000e+00> : vector<8xf32>
      %714 = vector.multi_reduction <add>, %713, %cst_48 [1] : vector<8x32xf32> to vector<8xf32>
      %715 = vector.shape_cast %714 : vector<8xf32> to vector<8x1xf32>
      %cst_49 = arith.constant 3.200000e+01 : f32
      %716 = vector.broadcast %cst_49 : f32 to vector<8x1xf32>
      %717 = arith.divf %715, %716 : vector<8x1xf32>
      %718 = vector.broadcast %717 : vector<8x1xf32> to vector<8x32xf32>
      %719 = arith.subf %713, %718 : vector<8x32xf32>
      %720 = arith.mulf %719, %719 : vector<8x32xf32>
      %cst_50 = arith.constant dense<0.000000e+00> : vector<8xf32>
      %721 = vector.multi_reduction <add>, %720, %cst_50 [1] : vector<8x32xf32> to vector<8xf32>
      %722 = vector.shape_cast %721 : vector<8xf32> to vector<8x1xf32>
      %cst_51 = arith.constant 3.200000e+01 : f32
      %723 = vector.broadcast %cst_51 : f32 to vector<8x1xf32>
      %724 = arith.divf %722, %723 : vector<8x1xf32>
      %cst_52 = arith.constant 9.99999974E-6 : f32
      %725 = vector.broadcast %cst_52 : f32 to vector<8x1xf32>
      %726 = arith.addf %724, %725 : vector<8x1xf32>
      %727 = math.rsqrt %726 : vector<8x1xf32>
      %728 = vector.broadcast %727 : vector<8x1xf32> to vector<8x32xf32>
      %729 = arith.mulf %719, %728 : vector<8x32xf32>
      %c0_53 = arith.constant 0 : index
      %c0_54 = arith.constant 0 : index
      %730 = vector.load %arg9[%c0_53, %c0_54] : memref<1x32xf32, #tpu.memory_space<vmem>>, vector<1x32xf32>
      %731 = vector.shape_cast %730 : vector<1x32xf32> to vector<32xf32>
      %732 = vector.shape_cast %731 : vector<32xf32> to vector<1x32xf32>
      %733 = vector.broadcast %732 : vector<1x32xf32> to vector<8x32xf32>
      %734 = arith.mulf %729, %733 : vector<8x32xf32>
      %c0_55 = arith.constant 0 : index
      %c0_56 = arith.constant 0 : index
      %735 = vector.load %arg10[%c0_55, %c0_56] : memref<1x32xf32, #tpu.memory_space<vmem>>, vector<1x32xf32>
      %736 = vector.shape_cast %735 : vector<1x32xf32> to vector<32xf32>
      %737 = vector.shape_cast %736 : vector<32xf32> to vector<1x32xf32>
      %738 = vector.broadcast %737 : vector<1x32xf32> to vector<8x32xf32>
      %739 = arith.addf %734, %738 : vector<8x32xf32>
      %740 = arith.truncf %739 : vector<8x32xf32> to vector<8x32xbf16>
      %c0_57 = arith.constant 0 : index
      %c0_58 = arith.constant 0 : index
      %741 = vector.load %arg11[%c0_57, %c0_58] : memref<32x32xbf16, #tpu.memory_space<vmem>>, vector<32x32xbf16>
      %cst_59 = arith.constant dense<0.000000e+00> : vector<8x32xf32>
      %742 = tpu.matmul %740, %741, %cst_59 {dimension_numbers = #tpu.dot_dimension_numbers<[1], [0], [0], [1], [0, 0, 1, 1], [], []>} : vector<8x32xbf16>, vector<32x32xbf16>, vector<8x32xf32> -> vector<8x32xf32>
      %c0_60 = arith.constant 0 : index
      %c0_61 = arith.constant 0 : index
      %743 = vector.load %arg12[%c0_60, %c0_61] : memref<1x32xf32, #tpu.memory_space<vmem>>, vector<1x32xf32>
      %744 = vector.shape_cast %743 : vector<1x32xf32> to vector<32xf32>
      %745 = vector.shape_cast %744 : vector<32xf32> to vector<1x32xf32>
      %746 = vector.broadcast %745 : vector<1x32xf32> to vector<8x32xf32>
      %747 = arith.addf %742, %746 : vector<8x32xf32>
      %c0_62 = arith.constant 0 : index
      %c0_63 = arith.constant 0 : index
      %c0_64 = arith.constant 0 : index
      %748 = vector.load %arg8[%c0_62, %c0_63, %c0_64] : memref<1x8x32xf32, #tpu.memory_space<vmem>>, vector<1x8x32xf32>
      %749 = vector.shape_cast %748 : vector<1x8x32xf32> to vector<8x32xf32>
      %750 = arith.addf %747, %749 : vector<8x32xf32>
      %c0_65 = arith.constant 0 : index
      %c0_66 = arith.constant 0 : index
      %c0_67 = arith.constant 0 : index
      %751 = vector.load %arg13[%c0_65, %c0_66, %c0_67] : memref<1x8x32xf32, #tpu.memory_space<vmem>>, vector<1x8x32xf32>
      %752 = vector.shape_cast %751 : vector<1x8x32xf32> to vector<8x32xf32>
      %753 = vector.shape_cast %750 : vector<8x32xf32> to vector<1x8x32xf32>
      tpu.vector_store %arg13[%c0_65, %c0_66, %c0_67], %753 {strides = array<i32>} : memref<1x8x32xf32, #tpu.memory_space<vmem>>, vector<1x8x32xf32>,
    } else {
    }
    return
  }
  func.func @transform_0(%arg0: i32, %arg1: i32, %arg2: i32) -> i32 {
    %c0_i32 = arith.constant 0 : i32
    %c0_i32_0 = arith.constant 0 : i32
    return %c0_i32 : i32
  }
  func.func @transform_1(%arg0: i32, %arg1: i32, %arg2: i32) -> (i32, i32, i32, i32) {
    %c0_i32 = arith.constant 0 : i32
    %c0_i32_0 = arith.constant 0 : i32
    %c0_i32_1 = arith.constant 0 : i32
    return %arg0, %c0_i32, %arg1, %c0_i32_0 : i32, i32, i32, i32
  }
  func.func @transform_2(%arg0: i32, %arg1: i32, %arg2: i32) -> (i32, i32, i32, i32) {
    %c0_i32 = arith.constant 0 : i32
    %c0_i32_0 = arith.constant 0 : i32
    %c0_i32_1 = arith.constant 0 : i32
    return %arg0, %c0_i32, %arg2, %c0_i32_0 : i32, i32, i32, i32
  }
  func.func @transform_3(%arg0: i32, %arg1: i32, %arg2: i32) -> (i32, i32, i32, i32) {
    %c0_i32 = arith.constant 0 : i32
    %c0_i32_0 = arith.constant 0 : i32
    %c0_i32_1 = arith.constant 0 : i32
    return %arg0, %c0_i32, %arg2, %c0_i32_0 : i32, i32, i32, i32
  }
  func.func @transform_4(%arg0: i32, %arg1: i32, %arg2: i32) -> (i32, i32, i32) {
    %c0_i32 = arith.constant 0 : i32
    %c0_i32_0 = arith.constant 0 : i32
    return %arg0, %arg1, %c0_i32 : i32, i32, i32
  }
  func.func @transform_5(%arg0: i32, %arg1: i32, %arg2: i32) -> (i32, i32, i32) {
    %c0_i32 = arith.constant 0 : i32
    %c0_i32_0 = arith.constant 0 : i32
    return %arg0, %arg1, %c0_i32 : i32, i32, i32
  }
  func.func @transform_6(%arg0: i32, %arg1: i32, %arg2: i32) -> (i32, i32) {
    %c0_i32 = arith.constant 0 : i32
    %c0_i32_0 = arith.constant 0 : i32
    %c0_i32_1 = arith.constant 0 : i32
    return %c0_i32, %c0_i32_0 : i32, i32
  }
  func.func @transform_7(%arg0: i32, %arg1: i32, %arg2: i32) -> (i32, i32) {
    %c0_i32 = arith.constant 0 : i32
    %c0_i32_0 = arith.constant 0 : i32
    %c0_i32_1 = arith.constant 0 : i32
    return %c0_i32, %c0_i32_0 : i32, i32
  }
  func.func @transform_8(%arg0: i32, %arg1: i32, %arg2: i32) -> (i32, i32) {
    %c0_i32 = arith.constant 0 : i32
    %c0_i32_0 = arith.constant 0 : i32
    %c0_i32_1 = arith.constant 0 : i32
    return %c0_i32, %c0_i32_0 : i32, i32
  }
  func.func @transform_9(%arg0: i32, %arg1: i32, %arg2: i32) -> (i32, i32) {
    %c0_i32 = arith.constant 0 : i32
    %c0_i32_0 = arith.constant 0 : i32
    %c0_i32_1 = arith.constant 0 : i32
    return %c0_i32, %c0_i32_0 : i32, i32
  }
  func.func @transform_10(%arg0: i32, %arg1: i32, %arg2: i32) -> (i32, i32, i32) {
    %c0_i32 = arith.constant 0 : i32
    %c0_i32_0 = arith.constant 0 : i32
    return %arg0, %arg1, %c0_i32 : i32, i32, i32
  }
}

module attributes {stable_mosaic.version = 11 : i64} {
  func.func @hstu_attn_kernel(%arg0: i32, %arg1: i32, %arg2: i32, %arg3: memref<128xf32, #tpu.memory_space<smem>>, %arg4: memref<1x4x8x8xbf16, #tpu.memory_space<vmem>>, %arg5: memref<1x4x8x8xbf16, #tpu.memory_space<vmem>>, %arg6: memref<1x4x8x8xbf16, #tpu.memory_space<vmem>>, %arg7: memref<1x8x32xbf16, #tpu.memory_space<vmem>>, %arg8: memref<1x8x32xf32, #tpu.memory_space<vmem>>, %arg9: memref<1x32xf32, #tpu.memory_space<vmem>>, %arg10: memref<1x32xf32, #tpu.memory_space<vmem>>, %arg11: memref<32x32xbf16, #tpu.memory_space<vmem>>, %arg12: memref<1x32xf32, #tpu.memory_space<vmem>>, %arg13: memref<1x8x32xf32, #tpu.memory_space<vmem>>, %arg14: memref<4x8x8xf32, #tpu.memory_space<vmem>>) attributes {dimension_semantics = [#tpu.dimension_semantics<parallel>, #tpu.dimension_semantics<parallel>, #tpu.dimension_semantics<arbitrary>], iteration_bounds = array<i64: 2, 1, 1>, scalar_prefetch = 0 : i64, scratch_operands = 1 : i64, tpu.core_type = #tpu.core_type<tc>, window_params = [{transform_indices = @transform_0, window_bounds = array<i64: 128>}, {transform_indices = @transform_1, window_bounds = array<i64: 1, 4, 8, 8>}, {transform_indices = @transform_2, window_bounds = array<i64: 1, 4, 8, 8>}, {transform_indices = @transform_3, window_bounds = array<i64: 1, 4, 8, 8>}, {transform_indices = @transform_4, window_bounds = array<i64: 1, 8, 32>}, {transform_indices = @transform_5, window_bounds = array<i64: 1, 8, 32>}, {pipeline_mode = #tpu.pipeline_mode<synchronous>, transform_indices = @transform_6, window_bounds = array<i64: 1, 32>}, {pipeline_mode = #tpu.pipeline_mode<synchronous>, transform_indices = @transform_7, window_bounds = array<i64: 1, 32>}, {pipeline_mode = #tpu.pipeline_mode<synchronous>, transform_indices = @transform_8, window_bounds = array<i64: 32, 32>}, {pipeline_mode = #tpu.pipeline_mode<synchronous>, transform_indices = @transform_9, window_bounds = array<i64: 1, 32>}, {transform_indices = @transform_10, window_bounds = array<i64: 1, 8, 32>}]} {
    %c0 = arith.constant 0 : index
    %c0_0 = arith.constant 0 : index
    %c0_1 = arith.constant 0 : index
    %c0_2 = arith.constant 0 : index
    %0 = vector.load %arg4[%c0, %c0_0, %c0_1, %c0_2] : memref<1x4x8x8xbf16, #tpu.memory_space<vmem>>, vector<1x4x8x8xbf16>
    %1 = vector.shape_cast %0 : vector<1x4x8x8xbf16> to vector<4x8x8xbf16>
    %c0_3 = arith.constant 0 : index
    %c0_4 = arith.constant 0 : index
    %c0_5 = arith.constant 0 : index
    %c0_6 = arith.constant 0 : index
    %2 = vector.load %arg5[%c0_3, %c0_4, %c0_5, %c0_6] : memref<1x4x8x8xbf16, #tpu.memory_space<vmem>>, vector<1x4x8x8xbf16>
    %3 = vector.shape_cast %2 : vector<1x4x8x8xbf16> to vector<4x8x8xbf16>
    %c0_7 = arith.constant 0 : index
    %c0_8 = arith.constant 0 : index
    %c0_9 = arith.constant 0 : index
    %c0_10 = arith.constant 0 : index
    %4 = vector.load %arg6[%c0_7, %c0_8, %c0_9, %c0_10] : memref<1x4x8x8xbf16, #tpu.memory_space<vmem>>, vector<1x4x8x8xbf16>
    %5 = vector.shape_cast %4 : vector<1x4x8x8xbf16> to vector<4x8x8xbf16>
    "tpu.trace_start"() <{level = 10 : i32, message = "hqd,hkd->hqk"}> : () -> ()
    %cst = arith.constant dense<0.000000e+00> : vector<4x8x8xf32>
    %6 = tpu.matmul %1, %3, %cst {dimension_numbers = #tpu.dot_dimension_numbers<[2], [2], [1], [1], [0, 0, 0, 1, 1, 1], [0], [0]>} : vector<4x8x8xbf16>, vector<4x8x8xbf16>, vector<4x8x8xf32> -> vector<4x8x8xf32>
    "tpu.trace_stop"() : () -> ()
    %c8_i32 = arith.constant 8 : i32
    %7 = arith.muli %arg1, %c8_i32 : i32
    %8 = tpu.iota {dimensions = array<i32: 0>} : vector<8x8xi32>
    %9 = vector.broadcast %7 : i32 to vector<8x8xi32>
    %10 = arith.addi %9, %8 : vector<8x8xi32>
    %c8_i32_11 = arith.constant 8 : i32
    %11 = arith.muli %arg2, %c8_i32_11 : i32
    %12 = tpu.iota {dimensions = array<i32: 1>} : vector<8x8xi32>
    %13 = vector.broadcast %11 : i32 to vector<8x8xi32>
    %14 = arith.addi %13, %12 : vector<8x8xi32>
    %15 = arith.subi %10, %14 : vector<8x8xi32>
    %c0_i32 = arith.constant 0 : i32
    %16 = vector.broadcast %c0_i32 : i32 to vector<8x8xi32>
    %17 = arith.maxsi %15, %16 : vector<8x8xi32>
    %c1_i32 = arith.constant 1 : i32
    %18 = vector.broadcast %c1_i32 : i32 to vector<8x8xi32>
    %19 = arith.maxsi %17, %18 : vector<8x8xi32>
    %20 = arith.sitofp %19 : vector<8x8xi32> to vector<8x8xf32>
    %cst_12 = arith.constant 1.600000e+01 : f32
    %21 = vector.broadcast %cst_12 : f32 to vector<8x8xf32>
    %22 = arith.divf %20, %21 : vector<8x8xf32>
    %23 = math.log %22 : vector<8x8xf32>
    %cst_13 = arith.constant 7.69437361 : f32
    %24 = vector.broadcast %cst_13 : f32 to vector<8x8xf32>
    %25 = arith.mulf %23, %24 : vector<8x8xf32>
    %26 = arith.fptosi %25 : vector<8x8xf32> to vector<8x8xi32>
    %c16_i32 = arith.constant 16 : i32
    %27 = vector.broadcast %c16_i32 : i32 to vector<8x8xi32>
    %28 = arith.addi %27, %26 : vector<8x8xi32>
    %c16_i32_14 = arith.constant 16 : i32
    %29 = vector.broadcast %c16_i32_14 : i32 to vector<8x8xi32>
    %30 = arith.cmpi slt, %17, %29 : vector<8x8xi32>
    %c31_i32 = arith.constant 31 : i32
    %31 = vector.broadcast %c31_i32 : i32 to vector<8x8xi32>
    %32 = arith.minsi %28, %31 : vector<8x8xi32>
    %33 = arith.select %30, %17, %32 : vector<8x8xi1>, vector<8x8xi32>
    %cst_15 = arith.constant 0.000000e+00 : f32
    %34 = vector.broadcast %cst_15 : f32 to vector<8x8xf32>
    %cst_16 = arith.constant 0.000000e+00 : f32
    %35 = vector.broadcast %cst_16 : f32 to vector<8x8xf32>
    %cst_17 = arith.constant 0.000000e+00 : f32
    %36 = vector.broadcast %cst_17 : f32 to vector<8x8xf32>
    %cst_18 = arith.constant 0.000000e+00 : f32
    %37 = vector.broadcast %cst_18 : f32 to vector<8x8xf32>
    %c0_i32_19 = arith.constant 0 : i32
    %38 = vector.broadcast %c0_i32_19 : i32 to vector<8x8xi32>
    %39 = arith.cmpi eq, %33, %38 : vector<8x8xi32>
    %40 = arith.extui %39 : vector<8x8xi1> to vector<8x8xi32>
    %41 = arith.sitofp %40 : vector<8x8xi32> to vector<8x8xf32>
    %c0_20 = arith.constant 0 : index
    %42 = memref.load %arg3[%c0_20] : memref<128xf32, #tpu.memory_space<smem>>
    %43 = vector.broadcast %42 : f32 to vector<8x8xf32>
    %44 = arith.mulf %41, %43 : vector<8x8xf32>
    %45 = arith.addf %34, %44 : vector<8x8xf32>
    %c1 = arith.constant 1 : index
    %46 = memref.load %arg3[%c1] : memref<128xf32, #tpu.memory_space<smem>>
    %47 = vector.broadcast %46 : f32 to vector<8x8xf32>
    %48 = arith.mulf %41, %47 : vector<8x8xf32>
    %49 = arith.addf %35, %48 : vector<8x8xf32>
    %c2 = arith.constant 2 : index
    %50 = memref.load %arg3[%c2] : memref<128xf32, #tpu.memory_space<smem>>
    %51 = vector.broadcast %50 : f32 to vector<8x8xf32>
    %52 = arith.mulf %41, %51 : vector<8x8xf32>
    %53 = arith.addf %36, %52 : vector<8x8xf32>
    %c3 = arith.constant 3 : index
    %54 = memref.load %arg3[%c3] : memref<128xf32, #tpu.memory_space<smem>>
    %55 = vector.broadcast %54 : f32 to vector<8x8xf32>
    %56 = arith.mulf %41, %55 : vector<8x8xf32>
    %57 = arith.addf %37, %56 : vector<8x8xf32>
    %c1_i32_21 = arith.constant 1 : i32
    %58 = vector.broadcast %c1_i32_21 : i32 to vector<8x8xi32>
    %59 = arith.cmpi eq, %33, %58 : vector<8x8xi32>
    %60 = arith.extui %59 : vector<8x8xi1> to vector<8x8xi32>
    %61 = arith.sitofp %60 : vector<8x8xi32> to vector<8x8xf32>
    %c4 = arith.constant 4 : index
    %62 = memref.load %arg3[%c4] : memref<128xf32, #tpu.memory_space<smem>>
    %63 = vector.broadcast %62 : f32 to vector<8x8xf32>
    %64 = arith.mulf %61, %63 : vector<8x8xf32>
    %65 = arith.addf %45, %64 : vector<8x8xf32>
    %c5 = arith.constant 5 : index
    %66 = memref.load %arg3[%c5] : memref<128xf32, #tpu.memory_space<smem>>
    %67 = vector.broadcast %66 : f32 to vector<8x8xf32>
    %68 = arith.mulf %61, %67 : vector<8x8xf32>
    %69 = arith.addf %49, %68 : vector<8x8xf32>
    %c6 = arith.constant 6 : index
    %70 = memref.load %arg3[%c6] : memref<128xf32, #tpu.memory_space<smem>>
    %71 = vector.broadcast %70 : f32 to vector<8x8xf32>
    %72 = arith.mulf %61, %71 : vector<8x8xf32>
    %73 = arith.addf %53, %72 : vector<8x8xf32>
    %c7 = arith.constant 7 : index
    %74 = memref.load %arg3[%c7] : memref<128xf32, #tpu.memory_space<smem>>
    %75 = vector.broadcast %74 : f32 to vector<8x8xf32>
    %76 = arith.mulf %61, %75 : vector<8x8xf32>
    %77 = arith.addf %57, %76 : vector<8x8xf32>
    %c2_i32 = arith.constant 2 : i32
    %78 = vector.broadcast %c2_i32 : i32 to vector<8x8xi32>
    %79 = arith.cmpi eq, %33, %78 : vector<8x8xi32>
    %80 = arith.extui %79 : vector<8x8xi1> to vector<8x8xi32>
    %81 = arith.sitofp %80 : vector<8x8xi32> to vector<8x8xf32>
    %c8 = arith.constant 8 : index
    %82 = memref.load %arg3[%c8] : memref<128xf32, #tpu.memory_space<smem>>
    %83 = vector.broadcast %82 : f32 to vector<8x8xf32>
    %84 = arith.mulf %81, %83 : vector<8x8xf32>
    %85 = arith.addf %65, %84 : vector<8x8xf32>
    %c9 = arith.constant 9 : index
    %86 = memref.load %arg3[%c9] : memref<128xf32, #tpu.memory_space<smem>>
    %87 = vector.broadcast %86 : f32 to vector<8x8xf32>
    %88 = arith.mulf %81, %87 : vector<8x8xf32>
    %89 = arith.addf %69, %88 : vector<8x8xf32>
    %c10 = arith.constant 10 : index
    %90 = memref.load %arg3[%c10] : memref<128xf32, #tpu.memory_space<smem>>
    %91 = vector.broadcast %90 : f32 to vector<8x8xf32>
    %92 = arith.mulf %81, %91 : vector<8x8xf32>
    %93 = arith.addf %73, %92 : vector<8x8xf32>
    %c11 = arith.constant 11 : index
    %94 = memref.load %arg3[%c11] : memref<128xf32, #tpu.memory_space<smem>>
    %95 = vector.broadcast %94 : f32 to vector<8x8xf32>
    %96 = arith.mulf %81, %95 : vector<8x8xf32>
    %97 = arith.addf %77, %96 : vector<8x8xf32>
    %c3_i32 = arith.constant 3 : i32
    %98 = vector.broadcast %c3_i32 : i32 to vector<8x8xi32>
    %99 = arith.cmpi eq, %33, %98 : vector<8x8xi32>
    %100 = arith.extui %99 : vector<8x8xi1> to vector<8x8xi32>
    %101 = arith.sitofp %100 : vector<8x8xi32> to vector<8x8xf32>
    %c12 = arith.constant 12 : index
    %102 = memref.load %arg3[%c12] : memref<128xf32, #tpu.memory_space<smem>>
    %103 = vector.broadcast %102 : f32 to vector<8x8xf32>
    %104 = arith.mulf %101, %103 : vector<8x8xf32>
    %105 = arith.addf %85, %104 : vector<8x8xf32>
    %c13 = arith.constant 13 : index
    %106 = memref.load %arg3[%c13] : memref<128xf32, #tpu.memory_space<smem>>
    %107 = vector.broadcast %106 : f32 to vector<8x8xf32>
    %108 = arith.mulf %101, %107 : vector<8x8xf32>
    %109 = arith.addf %89, %108 : vector<8x8xf32>
    %c14 = arith.constant 14 : index
    %110 = memref.load %arg3[%c14] : memref<128xf32, #tpu.memory_space<smem>>
    %111 = vector.broadcast %110 : f32 to vector<8x8xf32>
    %112 = arith.mulf %101, %111 : vector<8x8xf32>
    %113 = arith.addf %93, %112 : vector<8x8xf32>
    %c15 = arith.constant 15 : index
    %114 = memref.load %arg3[%c15] : memref<128xf32, #tpu.memory_space<smem>>
    %115 = vector.broadcast %114 : f32 to vector<8x8xf32>
    %116 = arith.mulf %101, %115 : vector<8x8xf32>
    %117 = arith.addf %97, %116 : vector<8x8xf32>
    %c4_i32 = arith.constant 4 : i32
    %118 = vector.broadcast %c4_i32 : i32 to vector<8x8xi32>
    %119 = arith.cmpi eq, %33, %118 : vector<8x8xi32>
    %120 = arith.extui %119 : vector<8x8xi1> to vector<8x8xi32>
    %121 = arith.sitofp %120 : vector<8x8xi32> to vector<8x8xf32>
    %c16 = arith.constant 16 : index
    %122 = memref.load %arg3[%c16] : memref<128xf32, #tpu.memory_space<smem>>
    %123 = vector.broadcast %122 : f32 to vector<8x8xf32>
    %124 = arith.mulf %121, %123 : vector<8x8xf32>
    %125 = arith.addf %105, %124 : vector<8x8xf32>
    %c17 = arith.constant 17 : index
    %126 = memref.load %arg3[%c17] : memref<128xf32, #tpu.memory_space<smem>>
    %127 = vector.broadcast %126 : f32 to vector<8x8xf32>
    %128 = arith.mulf %121, %127 : vector<8x8xf32>
    %129 = arith.addf %109, %128 : vector<8x8xf32>
    %c18 = arith.constant 18 : index
    %130 = memref.load %arg3[%c18] : memref<128xf32, #tpu.memory_space<smem>>
    %131 = vector.broadcast %130 : f32 to vector<8x8xf32>
    %132 = arith.mulf %121, %131 : vector<8x8xf32>
    %133 = arith.addf %113, %132 : vector<8x8xf32>
    %c19 = arith.constant 19 : index
    %134 = memref.load %arg3[%c19] : memref<128xf32, #tpu.memory_space<smem>>
    %135 = vector.broadcast %134 : f32 to vector<8x8xf32>
    %136 = arith.mulf %121, %135 : vector<8x8xf32>
    %137 = arith.addf %117, %136 : vector<8x8xf32>
    %c5_i32 = arith.constant 5 : i32
    %138 = vector.broadcast %c5_i32 : i32 to vector<8x8xi32>
    %139 = arith.cmpi eq, %33, %138 : vector<8x8xi32>
    %140 = arith.extui %139 : vector<8x8xi1> to vector<8x8xi32>
    %141 = arith.sitofp %140 : vector<8x8xi32> to vector<8x8xf32>
    %c20 = arith.constant 20 : index
    %142 = memref.load %arg3[%c20] : memref<128xf32, #tpu.memory_space<smem>>
    %143 = vector.broadcast %142 : f32 to vector<8x8xf32>
    %144 = arith.mulf %141, %143 : vector<8x8xf32>
    %145 = arith.addf %125, %144 : vector<8x8xf32>
    %c21 = arith.constant 21 : index
    %146 = memref.load %arg3[%c21] : memref<128xf32, #tpu.memory_space<smem>>
    %147 = vector.broadcast %146 : f32 to vector<8x8xf32>
    %148 = arith.mulf %141, %147 : vector<8x8xf32>
    %149 = arith.addf %129, %148 : vector<8x8xf32>
    %c22 = arith.constant 22 : index
    %150 = memref.load %arg3[%c22] : memref<128xf32, #tpu.memory_space<smem>>
    %151 = vector.broadcast %150 : f32 to vector<8x8xf32>
    %152 = arith.mulf %141, %151 : vector<8x8xf32>
    %153 = arith.addf %133, %152 : vector<8x8xf32>
    %c23 = arith.constant 23 : index
    %154 = memref.load %arg3[%c23] : memref<128xf32, #tpu.memory_space<smem>>
    %155 = vector.broadcast %154 : f32 to vector<8x8xf32>
    %156 = arith.mulf %141, %155 : vector<8x8xf32>
    %157 = arith.addf %137, %156 : vector<8x8xf32>
    %c6_i32 = arith.constant 6 : i32
    %158 = vector.broadcast %c6_i32 : i32 to vector<8x8xi32>
    %159 = arith.cmpi eq, %33, %158 : vector<8x8xi32>
    %160 = arith.extui %159 : vector<8x8xi1> to vector<8x8xi32>
    %161 = arith.sitofp %160 : vector<8x8xi32> to vector<8x8xf32>
    %c24 = arith.constant 24 : index
    %162 = memref.load %arg3[%c24] : memref<128xf32, #tpu.memory_space<smem>>
    %163 = vector.broadcast %162 : f32 to vector<8x8xf32>
    %164 = arith.mulf %161, %163 : vector<8x8xf32>
    %165 = arith.addf %145, %164 : vector<8x8xf32>
    %c25 = arith.constant 25 : index
    %166 = memref.load %arg3[%c25] : memref<128xf32, #tpu.memory_space<smem>>
    %167 = vector.broadcast %166 : f32 to vector<8x8xf32>
    %168 = arith.mulf %161, %167 : vector<8x8xf32>
    %169 = arith.addf %149, %168 : vector<8x8xf32>
    %c26 = arith.constant 26 : index
    %170 = memref.load %arg3[%c26] : memref<128xf32, #tpu.memory_space<smem>>
    %171 = vector.broadcast %170 : f32 to vector<8x8xf32>
    %172 = arith.mulf %161, %171 : vector<8x8xf32>
    %173 = arith.addf %153, %172 : vector<8x8xf32>
    %c27 = arith.constant 27 : index
    %174 = memref.load %arg3[%c27] : memref<128xf32, #tpu.memory_space<smem>>
    %175 = vector.broadcast %174 : f32 to vector<8x8xf32>
    %176 = arith.mulf %161, %175 : vector<8x8xf32>
    %177 = arith.addf %157, %176 : vector<8x8xf32>
    %c7_i32 = arith.constant 7 : i32
    %178 = vector.broadcast %c7_i32 : i32 to vector<8x8xi32>
    %179 = arith.cmpi eq, %33, %178 : vector<8x8xi32>
    %180 = arith.extui %179 : vector<8x8xi1> to vector<8x8xi32>
    %181 = arith.sitofp %180 : vector<8x8xi32> to vector<8x8xf32>
    %c28 = arith.constant 28 : index
    %182 = memref.load %arg3[%c28] : memref<128xf32, #tpu.memory_space<smem>>
    %183 = vector.broadcast %182 : f32 to vector<8x8xf32>
    %184 = arith.mulf %181, %183 : vector<8x8xf32>
    %185 = arith.addf %165, %184 : vector<8x8xf32>
    %c29 = arith.constant 29 : index
    %186 = memref.load %arg3[%c29] : memref<128xf32, #tpu.memory_space<smem>>
    %187 = vector.broadcast %186 : f32 to vector<8x8xf32>
    %188 = arith.mulf %181, %187 : vector<8x8xf32>
    %189 = arith.addf %169, %188 : vector<8x8xf32>
    %c30 = arith.constant 30 : index
    %190 = memref.load %arg3[%c30] : memref<128xf32, #tpu.memory_space<smem>>
    %191 = vector.broadcast %190 : f32 to vector<8x8xf32>
    %192 = arith.mulf %181, %191 : vector<8x8xf32>
    %193 = arith.addf %173, %192 : vector<8x8xf32>
    %c31 = arith.constant 31 : index
    %194 = memref.load %arg3[%c31] : memref<128xf32, #tpu.memory_space<smem>>
    %195 = vector.broadcast %194 : f32 to vector<8x8xf32>
    %196 = arith.mulf %181, %195 : vector<8x8xf32>
    %197 = arith.addf %177, %196 : vector<8x8xf32>
    %c8_i32_22 = arith.constant 8 : i32
    %198 = vector.broadcast %c8_i32_22 : i32 to vector<8x8xi32>
    %199 = arith.cmpi eq, %33, %198 : vector<8x8xi32>
    %200 = arith.extui %199 : vector<8x8xi1> to vector<8x8xi32>
    %201 = arith.sitofp %200 : vector<8x8xi32> to vector<8x8xf32>
    %c32 = arith.constant 32 : index
    %202 = memref.load %arg3[%c32] : memref<128xf32, #tpu.memory_space<smem>>
    %203 = vector.broadcast %202 : f32 to vector<8x8xf32>
    %204 = arith.mulf %201, %203 : vector<8x8xf32>
    %205 = arith.addf %185, %204 : vector<8x8xf32>
    %c33 = arith.constant 33 : index
    %206 = memref.load %arg3[%c33] : memref<128xf32, #tpu.memory_space<smem>>
    %207 = vector.broadcast %206 : f32 to vector<8x8xf32>
    %208 = arith.mulf %201, %207 : vector<8x8xf32>
    %209 = arith.addf %189, %208 : vector<8x8xf32>
    %c34 = arith.constant 34 : index
    %210 = memref.load %arg3[%c34] : memref<128xf32, #tpu.memory_space<smem>>
    %211 = vector.broadcast %210 : f32 to vector<8x8xf32>
    %212 = arith.mulf %201, %211 : vector<8x8xf32>
    %213 = arith.addf %193, %212 : vector<8x8xf32>
    %c35 = arith.constant 35 : index
    %214 = memref.load %arg3[%c35] : memref<128xf32, #tpu.memory_space<smem>>
    %215 = vector.broadcast %214 : f32 to vector<8x8xf32>
    %216 = arith.mulf %201, %215 : vector<8x8xf32>
    %217 = arith.addf %197, %216 : vector<8x8xf32>
    %c9_i32 = arith.constant 9 : i32
    %218 = vector.broadcast %c9_i32 : i32 to vector<8x8xi32>
    %219 = arith.cmpi eq, %33, %218 : vector<8x8xi32>
    %220 = arith.extui %219 : vector<8x8xi1> to vector<8x8xi32>
    %221 = arith.sitofp %220 : vector<8x8xi32> to vector<8x8xf32>
    %c36 = arith.constant 36 : index
    %222 = memref.load %arg3[%c36] : memref<128xf32, #tpu.memory_space<smem>>
    %223 = vector.broadcast %222 : f32 to vector<8x8xf32>
    %224 = arith.mulf %221, %223 : vector<8x8xf32>
    %225 = arith.addf %205, %224 : vector<8x8xf32>
    %c37 = arith.constant 37 : index
    %226 = memref.load %arg3[%c37] : memref<128xf32, #tpu.memory_space<smem>>
    %227 = vector.broadcast %226 : f32 to vector<8x8xf32>
    %228 = arith.mulf %221, %227 : vector<8x8xf32>
    %229 = arith.addf %209, %228 : vector<8x8xf32>
    %c38 = arith.constant 38 : index
    %230 = memref.load %arg3[%c38] : memref<128xf32, #tpu.memory_space<smem>>
    %231 = vector.broadcast %230 : f32 to vector<8x8xf32>
    %232 = arith.mulf %221, %231 : vector<8x8xf32>
    %233 = arith.addf %213, %232 : vector<8x8xf32>
    %c39 = arith.constant 39 : index
    %234 = memref.load %arg3[%c39] : memref<128xf32, #tpu.memory_space<smem>>
    %235 = vector.broadcast %234 : f32 to vector<8x8xf32>
    %236 = arith.mulf %221, %235 : vector<8x8xf32>
    %237 = arith.addf %217, %236 : vector<8x8xf32>
    %c10_i32 = arith.constant 10 : i32
    %238 = vector.broadcast %c10_i32 : i32 to vector<8x8xi32>
    %239 = arith.cmpi eq, %33, %238 : vector<8x8xi32>
    %240 = arith.extui %239 : vector<8x8xi1> to vector<8x8xi32>
    %241 = arith.sitofp %240 : vector<8x8xi32> to vector<8x8xf32>
    %c40 = arith.constant 40 : index
    %242 = memref.load %arg3[%c40] : memref<128xf32, #tpu.memory_space<smem>>
    %243 = vector.broadcast %242 : f32 to vector<8x8xf32>
    %244 = arith.mulf %241, %243 : vector<8x8xf32>
    %245 = arith.addf %225, %244 : vector<8x8xf32>
    %c41 = arith.constant 41 : index
    %246 = memref.load %arg3[%c41] : memref<128xf32, #tpu.memory_space<smem>>
    %247 = vector.broadcast %246 : f32 to vector<8x8xf32>
    %248 = arith.mulf %241, %247 : vector<8x8xf32>
    %249 = arith.addf %229, %248 : vector<8x8xf32>
    %c42 = arith.constant 42 : index
    %250 = memref.load %arg3[%c42] : memref<128xf32, #tpu.memory_space<smem>>
    %251 = vector.broadcast %250 : f32 to vector<8x8xf32>
    %252 = arith.mulf %241, %251 : vector<8x8xf32>
    %253 = arith.addf %233, %252 : vector<8x8xf32>
    %c43 = arith.constant 43 : index
    %254 = memref.load %arg3[%c43] : memref<128xf32, #tpu.memory_space<smem>>
    %255 = vector.broadcast %254 : f32 to vector<8x8xf32>
    %256 = arith.mulf %241, %255 : vector<8x8xf32>
    %257 = arith.addf %237, %256 : vector<8x8xf32>
    %c11_i32 = arith.constant 11 : i32
    %258 = vector.broadcast %c11_i32 : i32 to vector<8x8xi32>
    %259 = arith.cmpi eq, %33, %258 : vector<8x8xi32>
    %260 = arith.extui %259 : vector<8x8xi1> to vector<8x8xi32>
    %261 = arith.sitofp %260 : vector<8x8xi32> to vector<8x8xf32>
    %c44 = arith.constant 44 : index
    %262 = memref.load %arg3[%c44] : memref<128xf32, #tpu.memory_space<smem>>
    %263 = vector.broadcast %262 : f32 to vector<8x8xf32>
    %264 = arith.mulf %261, %263 : vector<8x8xf32>
    %265 = arith.addf %245, %264 : vector<8x8xf32>
    %c45 = arith.constant 45 : index
    %266 = memref.load %arg3[%c45] : memref<128xf32, #tpu.memory_space<smem>>
    %267 = vector.broadcast %266 : f32 to vector<8x8xf32>
    %268 = arith.mulf %261, %267 : vector<8x8xf32>
    %269 = arith.addf %249, %268 : vector<8x8xf32>
    %c46 = arith.constant 46 : index
    %270 = memref.load %arg3[%c46] : memref<128xf32, #tpu.memory_space<smem>>
    %271 = vector.broadcast %270 : f32 to vector<8x8xf32>
    %272 = arith.mulf %261, %271 : vector<8x8xf32>
    %273 = arith.addf %253, %272 : vector<8x8xf32>
    %c47 = arith.constant 47 : index
    %274 = memref.load %arg3[%c47] : memref<128xf32, #tpu.memory_space<smem>>
    %275 = vector.broadcast %274 : f32 to vector<8x8xf32>
    %276 = arith.mulf %261, %275 : vector<8x8xf32>
    %277 = arith.addf %257, %276 : vector<8x8xf32>
    %c12_i32 = arith.constant 12 : i32
    %278 = vector.broadcast %c12_i32 : i32 to vector<8x8xi32>
    %279 = arith.cmpi eq, %33, %278 : vector<8x8xi32>
    %280 = arith.extui %279 : vector<8x8xi1> to vector<8x8xi32>
    %281 = arith.sitofp %280 : vector<8x8xi32> to vector<8x8xf32>
    %c48 = arith.constant 48 : index
    %282 = memref.load %arg3[%c48] : memref<128xf32, #tpu.memory_space<smem>>
    %283 = vector.broadcast %282 : f32 to vector<8x8xf32>
    %284 = arith.mulf %281, %283 : vector<8x8xf32>
    %285 = arith.addf %265, %284 : vector<8x8xf32>
    %c49 = arith.constant 49 : index
    %286 = memref.load %arg3[%c49] : memref<128xf32, #tpu.memory_space<smem>>
    %287 = vector.broadcast %286 : f32 to vector<8x8xf32>
    %288 = arith.mulf %281, %287 : vector<8x8xf32>
    %289 = arith.addf %269, %288 : vector<8x8xf32>
    %c50 = arith.constant 50 : index
    %290 = memref.load %arg3[%c50] : memref<128xf32, #tpu.memory_space<smem>>
    %291 = vector.broadcast %290 : f32 to vector<8x8xf32>
    %292 = arith.mulf %281, %291 : vector<8x8xf32>
    %293 = arith.addf %273, %292 : vector<8x8xf32>
    %c51 = arith.constant 51 : index
    %294 = memref.load %arg3[%c51] : memref<128xf32, #tpu.memory_space<smem>>
    %295 = vector.broadcast %294 : f32 to vector<8x8xf32>
    %296 = arith.mulf %281, %295 : vector<8x8xf32>
    %297 = arith.addf %277, %296 : vector<8x8xf32>
    %c13_i32 = arith.constant 13 : i32
    %298 = vector.broadcast %c13_i32 : i32 to vector<8x8xi32>
    %299 = arith.cmpi eq, %33, %298 : vector<8x8xi32>
    %300 = arith.extui %299 : vector<8x8xi1> to vector<8x8xi32>
    %301 = arith.sitofp %300 : vector<8x8xi32> to vector<8x8xf32>
    %c52 = arith.constant 52 : index
    %302 = memref.load %arg3[%c52] : memref<128xf32, #tpu.memory_space<smem>>
    %303 = vector.broadcast %302 : f32 to vector<8x8xf32>
    %304 = arith.mulf %301, %303 : vector<8x8xf32>
    %305 = arith.addf %285, %304 : vector<8x8xf32>
    %c53 = arith.constant 53 : index
    %306 = memref.load %arg3[%c53] : memref<128xf32, #tpu.memory_space<smem>>
    %307 = vector.broadcast %306 : f32 to vector<8x8xf32>
    %308 = arith.mulf %301, %307 : vector<8x8xf32>
    %309 = arith.addf %289, %308 : vector<8x8xf32>
    %c54 = arith.constant 54 : index
    %310 = memref.load %arg3[%c54] : memref<128xf32, #tpu.memory_space<smem>>
    %311 = vector.broadcast %310 : f32 to vector<8x8xf32>
    %312 = arith.mulf %301, %311 : vector<8x8xf32>
    %313 = arith.addf %293, %312 : vector<8x8xf32>
    %c55 = arith.constant 55 : index
    %314 = memref.load %arg3[%c55] : memref<128xf32, #tpu.memory_space<smem>>
    %315 = vector.broadcast %314 : f32 to vector<8x8xf32>
    %316 = arith.mulf %301, %315 : vector<8x8xf32>
    %317 = arith.addf %297, %316 : vector<8x8xf32>
    %c14_i32 = arith.constant 14 : i32
    %318 = vector.broadcast %c14_i32 : i32 to vector<8x8xi32>
    %319 = arith.cmpi eq, %33, %318 : vector<8x8xi32>
    %320 = arith.extui %319 : vector<8x8xi1> to vector<8x8xi32>
    %321 = arith.sitofp %320 : vector<8x8xi32> to vector<8x8xf32>
    %c56 = arith.constant 56 : index
    %322 = memref.load %arg3[%c56] : memref<128xf32, #tpu.memory_space<smem>>
    %323 = vector.broadcast %322 : f32 to vector<8x8xf32>
    %324 = arith.mulf %321, %323 : vector<8x8xf32>
    %325 = arith.addf %305, %324 : vector<8x8xf32>
    %c57 = arith.constant 57 : index
    %326 = memref.load %arg3[%c57] : memref<128xf32, #tpu.memory_space<smem>>
    %327 = vector.broadcast %326 : f32 to vector<8x8xf32>
    %328 = arith.mulf %321, %327 : vector<8x8xf32>
    %329 = arith.addf %309, %328 : vector<8x8xf32>
    %c58 = arith.constant 58 : index
    %330 = memref.load %arg3[%c58] : memref<128xf32, #tpu.memory_space<smem>>
    %331 = vector.broadcast %330 : f32 to vector<8x8xf32>
    %332 = arith.mulf %321, %331 : vector<8x8xf32>
    %333 = arith.addf %313, %332 : vector<8x8xf32>
    %c59 = arith.constant 59 : index
    %334 = memref.load %arg3[%c59] : memref<128xf32, #tpu.memory_space<smem>>
    %335 = vector.broadcast %334 : f32 to vector<8x8xf32>
    %336 = arith.mulf %321, %335 : vector<8x8xf32>
    %337 = arith.addf %317, %336 : vector<8x8xf32>
    %c15_i32 = arith.constant 15 : i32
    %338 = vector.broadcast %c15_i32 : i32 to vector<8x8xi32>
    %339 = arith.cmpi eq, %33, %338 : vector<8x8xi32>
    %340 = arith.extui %339 : vector<8x8xi1> to vector<8x8xi32>
    %341 = arith.sitofp %340 : vector<8x8xi32> to vector<8x8xf32>
    %c60 = arith.constant 60 : index
    %342 = memref.load %arg3[%c60] : memref<128xf32, #tpu.memory_space<smem>>
    %343 = vector.broadcast %342 : f32 to vector<8x8xf32>
    %344 = arith.mulf %341, %343 : vector<8x8xf32>
    %345 = arith.addf %325, %344 : vector<8x8xf32>
    %c61 = arith.constant 61 : index
    %346 = memref.load %arg3[%c61] : memref<128xf32, #tpu.memory_space<smem>>
    %347 = vector.broadcast %346 : f32 to vector<8x8xf32>
    %348 = arith.mulf %341, %347 : vector<8x8xf32>
    %349 = arith.addf %329, %348 : vector<8x8xf32>
    %c62 = arith.constant 62 : index
    %350 = memref.load %arg3[%c62] : memref<128xf32, #tpu.memory_space<smem>>
    %351 = vector.broadcast %350 : f32 to vector<8x8xf32>
    %352 = arith.mulf %341, %351 : vector<8x8xf32>
    %353 = arith.addf %333, %352 : vector<8x8xf32>
    %c63 = arith.constant 63 : index
    %354 = memref.load %arg3[%c63] : memref<128xf32, #tpu.memory_space<smem>>
    %355 = vector.broadcast %354 : f32 to vector<8x8xf32>
    %356 = arith.mulf %341, %355 : vector<8x8xf32>
    %357 = arith.addf %337, %356 : vector<8x8xf32>
    %c16_i32_23 = arith.constant 16 : i32
    %358 = vector.broadcast %c16_i32_23 : i32 to vector<8x8xi32>
    %359 = arith.cmpi eq, %33, %358 : vector<8x8xi32>
    %360 = arith.extui %359 : vector<8x8xi1> to vector<8x8xi32>
    %361 = arith.sitofp %360 : vector<8x8xi32> to vector<8x8xf32>
    %c64 = arith.constant 64 : index
    %362 = memref.load %arg3[%c64] : memref<128xf32, #tpu.memory_space<smem>>
    %363 = vector.broadcast %362 : f32 to vector<8x8xf32>
    %364 = arith.mulf %361, %363 : vector<8x8xf32>
    %365 = arith.addf %345, %364 : vector<8x8xf32>
    %c65 = arith.constant 65 : index
    %366 = memref.load %arg3[%c65] : memref<128xf32, #tpu.memory_space<smem>>
    %367 = vector.broadcast %366 : f32 to vector<8x8xf32>
    %368 = arith.mulf %361, %367 : vector<8x8xf32>
    %369 = arith.addf %349, %368 : vector<8x8xf32>
    %c66 = arith.constant 66 : index
    %370 = memref.load %arg3[%c66] : memref<128xf32, #tpu.memory_space<smem>>
    %371 = vector.broadcast %370 : f32 to vector<8x8xf32>
    %372 = arith.mulf %361, %371 : vector<8x8xf32>
    %373 = arith.addf %353, %372 : vector<8x8xf32>
    %c67 = arith.constant 67 : index
    %374 = memref.load %arg3[%c67] : memref<128xf32, #tpu.memory_space<smem>>
    %375 = vector.broadcast %374 : f32 to vector<8x8xf32>
    %376 = arith.mulf %361, %375 : vector<8x8xf32>
    %377 = arith.addf %357, %376 : vector<8x8xf32>
    %c17_i32 = arith.constant 17 : i32
    %378 = vector.broadcast %c17_i32 : i32 to vector<8x8xi32>
    %379 = arith.cmpi eq, %33, %378 : vector<8x8xi32>
    %380 = arith.extui %379 : vector<8x8xi1> to vector<8x8xi32>
    %381 = arith.sitofp %380 : vector<8x8xi32> to vector<8x8xf32>
    %c68 = arith.constant 68 : index
    %382 = memref.load %arg3[%c68] : memref<128xf32, #tpu.memory_space<smem>>
    %383 = vector.broadcast %382 : f32 to vector<8x8xf32>
    %384 = arith.mulf %381, %383 : vector<8x8xf32>
    %385 = arith.addf %365, %384 : vector<8x8xf32>
    %c69 = arith.constant 69 : index
    %386 = memref.load %arg3[%c69] : memref<128xf32, #tpu.memory_space<smem>>
    %387 = vector.broadcast %386 : f32 to vector<8x8xf32>
    %388 = arith.mulf %381, %387 : vector<8x8xf32>
    %389 = arith.addf %369, %388 : vector<8x8xf32>
    %c70 = arith.constant 70 : index
    %390 = memref.load %arg3[%c70] : memref<128xf32, #tpu.memory_space<smem>>
    %391 = vector.broadcast %390 : f32 to vector<8x8xf32>
    %392 = arith.mulf %381, %391 : vector<8x8xf32>
    %393 = arith.addf %373, %392 : vector<8x8xf32>
    %c71 = arith.constant 71 : index
    %394 = memref.load %arg3[%c71] : memref<128xf32, #tpu.memory_space<smem>>
    %395 = vector.broadcast %394 : f32 to vector<8x8xf32>
    %396 = arith.mulf %381, %395 : vector<8x8xf32>
    %397 = arith.addf %377, %396 : vector<8x8xf32>
    %c18_i32 = arith.constant 18 : i32
    %398 = vector.broadcast %c18_i32 : i32 to vector<8x8xi32>
    %399 = arith.cmpi eq, %33, %398 : vector<8x8xi32>
    %400 = arith.extui %399 : vector<8x8xi1> to vector<8x8xi32>
    %401 = arith.sitofp %400 : vector<8x8xi32> to vector<8x8xf32>
    %c72 = arith.constant 72 : index
    %402 = memref.load %arg3[%c72] : memref<128xf32, #tpu.memory_space<smem>>
    %403 = vector.broadcast %402 : f32 to vector<8x8xf32>
    %404 = arith.mulf %401, %403 : vector<8x8xf32>
    %405 = arith.addf %385, %404 : vector<8x8xf32>
    %c73 = arith.constant 73 : index
    %406 = memref.load %arg3[%c73] : memref<128xf32, #tpu.memory_space<smem>>
    %407 = vector.broadcast %406 : f32 to vector<8x8xf32>
    %408 = arith.mulf %401, %407 : vector<8x8xf32>
    %409 = arith.addf %389, %408 : vector<8x8xf32>
    %c74 = arith.constant 74 : index
    %410 = memref.load %arg3[%c74] : memref<128xf32, #tpu.memory_space<smem>>
    %411 = vector.broadcast %410 : f32 to vector<8x8xf32>
    %412 = arith.mulf %401, %411 : vector<8x8xf32>
    %413 = arith.addf %393, %412 : vector<8x8xf32>
    %c75 = arith.constant 75 : index
    %414 = memref.load %arg3[%c75] : memref<128xf32, #tpu.memory_space<smem>>
    %415 = vector.broadcast %414 : f32 to vector<8x8xf32>
    %416 = arith.mulf %401, %415 : vector<8x8xf32>
    %417 = arith.addf %397, %416 : vector<8x8xf32>
    %c19_i32 = arith.constant 19 : i32
    %418 = vector.broadcast %c19_i32 : i32 to vector<8x8xi32>
    %419 = arith.cmpi eq, %33, %418 : vector<8x8xi32>
    %420 = arith.extui %419 : vector<8x8xi1> to vector<8x8xi32>
    %421 = arith.sitofp %420 : vector<8x8xi32> to vector<8x8xf32>
    %c76 = arith.constant 76 : index
    %422 = memref.load %arg3[%c76] : memref<128xf32, #tpu.memory_space<smem>>
    %423 = vector.broadcast %422 : f32 to vector<8x8xf32>
    %424 = arith.mulf %421, %423 : vector<8x8xf32>
    %425 = arith.addf %405, %424 : vector<8x8xf32>
    %c77 = arith.constant 77 : index
    %426 = memref.load %arg3[%c77] : memref<128xf32, #tpu.memory_space<smem>>
    %427 = vector.broadcast %426 : f32 to vector<8x8xf32>
    %428 = arith.mulf %421, %427 : vector<8x8xf32>
    %429 = arith.addf %409, %428 : vector<8x8xf32>
    %c78 = arith.constant 78 : index
    %430 = memref.load %arg3[%c78] : memref<128xf32, #tpu.memory_space<smem>>
    %431 = vector.broadcast %430 : f32 to vector<8x8xf32>
    %432 = arith.mulf %421, %431 : vector<8x8xf32>
    %433 = arith.addf %413, %432 : vector<8x8xf32>
    %c79 = arith.constant 79 : index
    %434 = memref.load %arg3[%c79] : memref<128xf32, #tpu.memory_space<smem>>
    %435 = vector.broadcast %434 : f32 to vector<8x8xf32>
    %436 = arith.mulf %421, %435 : vector<8x8xf32>
    %437 = arith.addf %417, %436 : vector<8x8xf32>
    %c20_i32 = arith.constant 20 : i32
    %438 = vector.broadcast %c20_i32 : i32 to vector<8x8xi32>
    %439 = arith.cmpi eq, %33, %438 : vector<8x8xi32>
    %440 = arith.extui %439 : vector<8x8xi1> to vector<8x8xi32>
    %441 = arith.sitofp %440 : vector<8x8xi32> to vector<8x8xf32>
    %c80 = arith.constant 80 : index
    %442 = memref.load %arg3[%c80] : memref<128xf32, #tpu.memory_space<smem>>
    %443 = vector.broadcast %442 : f32 to vector<8x8xf32>
    %444 = arith.mulf %441, %443 : vector<8x8xf32>
    %445 = arith.addf %425, %444 : vector<8x8xf32>
    %c81 = arith.constant 81 : index
    %446 = memref.load %arg3[%c81] : memref<128xf32, #tpu.memory_space<smem>>
    %447 = vector.broadcast %446 : f32 to vector<8x8xf32>
    %448 = arith.mulf %441, %447 : vector<8x8xf32>
    %449 = arith.addf %429, %448 : vector<8x8xf32>
    %c82 = arith.constant 82 : index
    %450 = memref.load %arg3[%c82] : memref<128xf32, #tpu.memory_space<smem>>
    %451 = vector.broadcast %450 : f32 to vector<8x8xf32>
    %452 = arith.mulf %441, %451 : vector<8x8xf32>
    %453 = arith.addf %433, %452 : vector<8x8xf32>
    %c83 = arith.constant 83 : index
    %454 = memref.load %arg3[%c83] : memref<128xf32, #tpu.memory_space<smem>>
    %455 = vector.broadcast %454 : f32 to vector<8x8xf32>
    %456 = arith.mulf %441, %455 : vector<8x8xf32>
    %457 = arith.addf %437, %456 : vector<8x8xf32>
    %c21_i32 = arith.constant 21 : i32
    %458 = vector.broadcast %c21_i32 : i32 to vector<8x8xi32>
    %459 = arith.cmpi eq, %33, %458 : vector<8x8xi32>
    %460 = arith.extui %459 : vector<8x8xi1> to vector<8x8xi32>
    %461 = arith.sitofp %460 : vector<8x8xi32> to vector<8x8xf32>
    %c84 = arith.constant 84 : index
    %462 = memref.load %arg3[%c84] : memref<128xf32, #tpu.memory_space<smem>>
    %463 = vector.broadcast %462 : f32 to vector<8x8xf32>
    %464 = arith.mulf %461, %463 : vector<8x8xf32>
    %465 = arith.addf %445, %464 : vector<8x8xf32>
    %c85 = arith.constant 85 : index
    %466 = memref.load %arg3[%c85] : memref<128xf32, #tpu.memory_space<smem>>
    %467 = vector.broadcast %466 : f32 to vector<8x8xf32>
    %468 = arith.mulf %461, %467 : vector<8x8xf32>
    %469 = arith.addf %449, %468 : vector<8x8xf32>
    %c86 = arith.constant 86 : index
    %470 = memref.load %arg3[%c86] : memref<128xf32, #tpu.memory_space<smem>>
    %471 = vector.broadcast %470 : f32 to vector<8x8xf32>
    %472 = arith.mulf %461, %471 : vector<8x8xf32>
    %473 = arith.addf %453, %472 : vector<8x8xf32>
    %c87 = arith.constant 87 : index
    %474 = memref.load %arg3[%c87] : memref<128xf32, #tpu.memory_space<smem>>
    %475 = vector.broadcast %474 : f32 to vector<8x8xf32>
    %476 = arith.mulf %461, %475 : vector<8x8xf32>
    %477 = arith.addf %457, %476 : vector<8x8xf32>
    %c22_i32 = arith.constant 22 : i32
    %478 = vector.broadcast %c22_i32 : i32 to vector<8x8xi32>
    %479 = arith.cmpi eq, %33, %478 : vector<8x8xi32>
    %480 = arith.extui %479 : vector<8x8xi1> to vector<8x8xi32>
    %481 = arith.sitofp %480 : vector<8x8xi32> to vector<8x8xf32>
    %c88 = arith.constant 88 : index
    %482 = memref.load %arg3[%c88] : memref<128xf32, #tpu.memory_space<smem>>
    %483 = vector.broadcast %482 : f32 to vector<8x8xf32>
    %484 = arith.mulf %481, %483 : vector<8x8xf32>
    %485 = arith.addf %465, %484 : vector<8x8xf32>
    %c89 = arith.constant 89 : index
    %486 = memref.load %arg3[%c89] : memref<128xf32, #tpu.memory_space<smem>>
    %487 = vector.broadcast %486 : f32 to vector<8x8xf32>
    %488 = arith.mulf %481, %487 : vector<8x8xf32>
    %489 = arith.addf %469, %488 : vector<8x8xf32>
    %c90 = arith.constant 90 : index
    %490 = memref.load %arg3[%c90] : memref<128xf32, #tpu.memory_space<smem>>
    %491 = vector.broadcast %490 : f32 to vector<8x8xf32>
    %492 = arith.mulf %481, %491 : vector<8x8xf32>
    %493 = arith.addf %473, %492 : vector<8x8xf32>
    %c91 = arith.constant 91 : index
    %494 = memref.load %arg3[%c91] : memref<128xf32, #tpu.memory_space<smem>>
    %495 = vector.broadcast %494 : f32 to vector<8x8xf32>
    %496 = arith.mulf %481, %495 : vector<8x8xf32>
    %497 = arith.addf %477, %496 : vector<8x8xf32>
    %c23_i32 = arith.constant 23 : i32
    %498 = vector.broadcast %c23_i32 : i32 to vector<8x8xi32>
    %499 = arith.cmpi eq, %33, %498 : vector<8x8xi32>
    %500 = arith.extui %499 : vector<8x8xi1> to vector<8x8xi32>
    %501 = arith.sitofp %500 : vector<8x8xi32> to vector<8x8xf32>
    %c92 = arith.constant 92 : index
    %502 = memref.load %arg3[%c92] : memref<128xf32, #tpu.memory_space<smem>>
    %503 = vector.broadcast %502 : f32 to vector<8x8xf32>
    %504 = arith.mulf %501, %503 : vector<8x8xf32>
    %505 = arith.addf %485, %504 : vector<8x8xf32>
    %c93 = arith.constant 93 : index
    %506 = memref.load %arg3[%c93] : memref<128xf32, #tpu.memory_space<smem>>
    %507 = vector.broadcast %506 : f32 to vector<8x8xf32>
    %508 = arith.mulf %501, %507 : vector<8x8xf32>
    %509 = arith.addf %489, %508 : vector<8x8xf32>
    %c94 = arith.constant 94 : index
    %510 = memref.load %arg3[%c94] : memref<128xf32, #tpu.memory_space<smem>>
    %511 = vector.broadcast %510 : f32 to vector<8x8xf32>
    %512 = arith.mulf %501, %511 : vector<8x8xf32>
    %513 = arith.addf %493, %512 : vector<8x8xf32>
    %c95 = arith.constant 95 : index
    %514 = memref.load %arg3[%c95] : memref<128xf32, #tpu.memory_space<smem>>
    %515 = vector.broadcast %514 : f32 to vector<8x8xf32>
    %516 = arith.mulf %501, %515 : vector<8x8xf32>
    %517 = arith.addf %497, %516 : vector<8x8xf32>
    %c24_i32 = arith.constant 24 : i32
    %518 = vector.broadcast %c24_i32 : i32 to vector<8x8xi32>
    %519 = arith.cmpi eq, %33, %518 : vector<8x8xi32>
    %520 = arith.extui %519 : vector<8x8xi1> to vector<8x8xi32>
    %521 = arith.sitofp %520 : vector<8x8xi32> to vector<8x8xf32>
    %c96 = arith.constant 96 : index
    %522 = memref.load %arg3[%c96] : memref<128xf32, #tpu.memory_space<smem>>
    %523 = vector.broadcast %522 : f32 to vector<8x8xf32>
    %524 = arith.mulf %521, %523 : vector<8x8xf32>
    %525 = arith.addf %505, %524 : vector<8x8xf32>
    %c97 = arith.constant 97 : index
    %526 = memref.load %arg3[%c97] : memref<128xf32, #tpu.memory_space<smem>>
    %527 = vector.broadcast %526 : f32 to vector<8x8xf32>
    %528 = arith.mulf %521, %527 : vector<8x8xf32>
    %529 = arith.addf %509, %528 : vector<8x8xf32>
    %c98 = arith.constant 98 : index
    %530 = memref.load %arg3[%c98] : memref<128xf32, #tpu.memory_space<smem>>
    %531 = vector.broadcast %530 : f32 to vector<8x8xf32>
    %532 = arith.mulf %521, %531 : vector<8x8xf32>
    %533 = arith.addf %513, %532 : vector<8x8xf32>
    %c99 = arith.constant 99 : index
    %534 = memref.load %arg3[%c99] : memref<128xf32, #tpu.memory_space<smem>>
    %535 = vector.broadcast %534 : f32 to vector<8x8xf32>
    %536 = arith.mulf %521, %535 : vector<8x8xf32>
    %537 = arith.addf %517, %536 : vector<8x8xf32>
    %c25_i32 = arith.constant 25 : i32
    %538 = vector.broadcast %c25_i32 : i32 to vector<8x8xi32>
    %539 = arith.cmpi eq, %33, %538 : vector<8x8xi32>
    %540 = arith.extui %539 : vector<8x8xi1> to vector<8x8xi32>
    %541 = arith.sitofp %540 : vector<8x8xi32> to vector<8x8xf32>
    %c100 = arith.constant 100 : index
    %542 = memref.load %arg3[%c100] : memref<128xf32, #tpu.memory_space<smem>>
    %543 = vector.broadcast %542 : f32 to vector<8x8xf32>
    %544 = arith.mulf %541, %543 : vector<8x8xf32>
    %545 = arith.addf %525, %544 : vector<8x8xf32>
    %c101 = arith.constant 101 : index
    %546 = memref.load %arg3[%c101] : memref<128xf32, #tpu.memory_space<smem>>
    %547 = vector.broadcast %546 : f32 to vector<8x8xf32>
    %548 = arith.mulf %541, %547 : vector<8x8xf32>
    %549 = arith.addf %529, %548 : vector<8x8xf32>
    %c102 = arith.constant 102 : index
    %550 = memref.load %arg3[%c102] : memref<128xf32, #tpu.memory_space<smem>>
    %551 = vector.broadcast %550 : f32 to vector<8x8xf32>
    %552 = arith.mulf %541, %551 : vector<8x8xf32>
    %553 = arith.addf %533, %552 : vector<8x8xf32>
    %c103 = arith.constant 103 : index
    %554 = memref.load %arg3[%c103] : memref<128xf32, #tpu.memory_space<smem>>
    %555 = vector.broadcast %554 : f32 to vector<8x8xf32>
    %556 = arith.mulf %541, %555 : vector<8x8xf32>
    %557 = arith.addf %537, %556 : vector<8x8xf32>
    %c26_i32 = arith.constant 26 : i32
    %558 = vector.broadcast %c26_i32 : i32 to vector<8x8xi32>
    %559 = arith.cmpi eq, %33, %558 : vector<8x8xi32>
    %560 = arith.extui %559 : vector<8x8xi1> to vector<8x8xi32>
    %561 = arith.sitofp %560 : vector<8x8xi32> to vector<8x8xf32>
    %c104 = arith.constant 104 : index
    %562 = memref.load %arg3[%c104] : memref<128xf32, #tpu.memory_space<smem>>
    %563 = vector.broadcast %562 : f32 to vector<8x8xf32>
    %564 = arith.mulf %561, %563 : vector<8x8xf32>
    %565 = arith.addf %545, %564 : vector<8x8xf32>
    %c105 = arith.constant 105 : index
    %566 = memref.load %arg3[%c105] : memref<128xf32, #tpu.memory_space<smem>>
    %567 = vector.broadcast %566 : f32 to vector<8x8xf32>
    %568 = arith.mulf %561, %567 : vector<8x8xf32>
    %569 = arith.addf %549, %568 : vector<8x8xf32>
    %c106 = arith.constant 106 : index
    %570 = memref.load %arg3[%c106] : memref<128xf32, #tpu.memory_space<smem>>
    %571 = vector.broadcast %570 : f32 to vector<8x8xf32>
    %572 = arith.mulf %561, %571 : vector<8x8xf32>
    %573 = arith.addf %553, %572 : vector<8x8xf32>
    %c107 = arith.constant 107 : index
    %574 = memref.load %arg3[%c107] : memref<128xf32, #tpu.memory_space<smem>>
    %575 = vector.broadcast %574 : f32 to vector<8x8xf32>
    %576 = arith.mulf %561, %575 : vector<8x8xf32>
    %577 = arith.addf %557, %576 : vector<8x8xf32>
    %c27_i32 = arith.constant 27 : i32
    %578 = vector.broadcast %c27_i32 : i32 to vector<8x8xi32>
    %579 = arith.cmpi eq, %33, %578 : vector<8x8xi32>
    %580 = arith.extui %579 : vector<8x8xi1> to vector<8x8xi32>
    %581 = arith.sitofp %580 : vector<8x8xi32> to vector<8x8xf32>
    %c108 = arith.constant 108 : index
    %582 = memref.load %arg3[%c108] : memref<128xf32, #tpu.memory_space<smem>>
    %583 = vector.broadcast %582 : f32 to vector<8x8xf32>
    %584 = arith.mulf %581, %583 : vector<8x8xf32>
    %585 = arith.addf %565, %584 : vector<8x8xf32>
    %c109 = arith.constant 109 : index
    %586 = memref.load %arg3[%c109] : memref<128xf32, #tpu.memory_space<smem>>
    %587 = vector.broadcast %586 : f32 to vector<8x8xf32>
    %588 = arith.mulf %581, %587 : vector<8x8xf32>
    %589 = arith.addf %569, %588 : vector<8x8xf32>
    %c110 = arith.constant 110 : index
    %590 = memref.load %arg3[%c110] : memref<128xf32, #tpu.memory_space<smem>>
    %591 = vector.broadcast %590 : f32 to vector<8x8xf32>
    %592 = arith.mulf %581, %591 : vector<8x8xf32>
    %593 = arith.addf %573, %592 : vector<8x8xf32>
    %c111 = arith.constant 111 : index
    %594 = memref.load %arg3[%c111] : memref<128xf32, #tpu.memory_space<smem>>
    %595 = vector.broadcast %594 : f32 to vector<8x8xf32>
    %596 = arith.mulf %581, %595 : vector<8x8xf32>
    %597 = arith.addf %577, %596 : vector<8x8xf32>
    %c28_i32 = arith.constant 28 : i32
    %598 = vector.broadcast %c28_i32 : i32 to vector<8x8xi32>
    %599 = arith.cmpi eq, %33, %598 : vector<8x8xi32>
    %600 = arith.extui %599 : vector<8x8xi1> to vector<8x8xi32>
    %601 = arith.sitofp %600 : vector<8x8xi32> to vector<8x8xf32>
    %c112 = arith.constant 112 : index
    %602 = memref.load %arg3[%c112] : memref<128xf32, #tpu.memory_space<smem>>
    %603 = vector.broadcast %602 : f32 to vector<8x8xf32>
    %604 = arith.mulf %601, %603 : vector<8x8xf32>
    %605 = arith.addf %585, %604 : vector<8x8xf32>
    %c113 = arith.constant 113 : index
    %606 = memref.load %arg3[%c113] : memref<128xf32, #tpu.memory_space<smem>>
    %607 = vector.broadcast %606 : f32 to vector<8x8xf32>
    %608 = arith.mulf %601, %607 : vector<8x8xf32>
    %609 = arith.addf %589, %608 : vector<8x8xf32>
    %c114 = arith.constant 114 : index
    %610 = memref.load %arg3[%c114] : memref<128xf32, #tpu.memory_space<smem>>
    %611 = vector.broadcast %610 : f32 to vector<8x8xf32>
    %612 = arith.mulf %601, %611 : vector<8x8xf32>
    %613 = arith.addf %593, %612 : vector<8x8xf32>
    %c115 = arith.constant 115 : index
    %614 = memref.load %arg3[%c115] : memref<128xf32, #tpu.memory_space<smem>>
    %615 = vector.broadcast %614 : f32 to vector<8x8xf32>
    %616 = arith.mulf %601, %615 : vector<8x8xf32>
    %617 = arith.addf %597, %616 : vector<8x8xf32>
    %c29_i32 = arith.constant 29 : i32
    %618 = vector.broadcast %c29_i32 : i32 to vector<8x8xi32>
    %619 = arith.cmpi eq, %33, %618 : vector<8x8xi32>
    %620 = arith.extui %619 : vector<8x8xi1> to vector<8x8xi32>
    %621 = arith.sitofp %620 : vector<8x8xi32> to vector<8x8xf32>
    %c116 = arith.constant 116 : index
    %622 = memref.load %arg3[%c116] : memref<128xf32, #tpu.memory_space<smem>>
    %623 = vector.broadcast %622 : f32 to vector<8x8xf32>
    %624 = arith.mulf %621, %623 : vector<8x8xf32>
    %625 = arith.addf %605, %624 : vector<8x8xf32>
    %c117 = arith.constant 117 : index
    %626 = memref.load %arg3[%c117] : memref<128xf32, #tpu.memory_space<smem>>
    %627 = vector.broadcast %626 : f32 to vector<8x8xf32>
    %628 = arith.mulf %621, %627 : vector<8x8xf32>
    %629 = arith.addf %609, %628 : vector<8x8xf32>
    %c118 = arith.constant 118 : index
    %630 = memref.load %arg3[%c118] : memref<128xf32, #tpu.memory_space<smem>>
    %631 = vector.broadcast %630 : f32 to vector<8x8xf32>
    %632 = arith.mulf %621, %631 : vector<8x8xf32>
    %633 = arith.addf %613, %632 : vector<8x8xf32>
    %c119 = arith.constant 119 : index
    %634 = memref.load %arg3[%c119] : memref<128xf32, #tpu.memory_space<smem>>
    %635 = vector.broadcast %634 : f32 to vector<8x8xf32>
    %636 = arith.mulf %621, %635 : vector<8x8xf32>
    %637 = arith.addf %617, %636 : vector<8x8xf32>
    %c30_i32 = arith.constant 30 : i32
    %638 = vector.broadcast %c30_i32 : i32 to vector<8x8xi32>
    %639 = arith.cmpi eq, %33, %638 : vector<8x8xi32>
    %640 = arith.extui %639 : vector<8x8xi1> to vector<8x8xi32>
    %641 = arith.sitofp %640 : vector<8x8xi32> to vector<8x8xf32>
    %c120 = arith.constant 120 : index
    %642 = memref.load %arg3[%c120] : memref<128xf32, #tpu.memory_space<smem>>
    %643 = vector.broadcast %642 : f32 to vector<8x8xf32>
    %644 = arith.mulf %641, %643 : vector<8x8xf32>
    %645 = arith.addf %625, %644 : vector<8x8xf32>
    %c121 = arith.constant 121 : index
    %646 = memref.load %arg3[%c121] : memref<128xf32, #tpu.memory_space<smem>>
    %647 = vector.broadcast %646 : f32 to vector<8x8xf32>
    %648 = arith.mulf %641, %647 : vector<8x8xf32>
    %649 = arith.addf %629, %648 : vector<8x8xf32>
    %c122 = arith.constant 122 : index
    %650 = memref.load %arg3[%c122] : memref<128xf32, #tpu.memory_space<smem>>
    %651 = vector.broadcast %650 : f32 to vector<8x8xf32>
    %652 = arith.mulf %641, %651 : vector<8x8xf32>
    %653 = arith.addf %633, %652 : vector<8x8xf32>
    %c123 = arith.constant 123 : index
    %654 = memref.load %arg3[%c123] : memref<128xf32, #tpu.memory_space<smem>>
    %655 = vector.broadcast %654 : f32 to vector<8x8xf32>
    %656 = arith.mulf %641, %655 : vector<8x8xf32>
    %657 = arith.addf %637, %656 : vector<8x8xf32>
    %c31_i32_24 = arith.constant 31 : i32
    %658 = vector.broadcast %c31_i32_24 : i32 to vector<8x8xi32>
    %659 = arith.cmpi eq, %33, %658 : vector<8x8xi32>
    %660 = arith.extui %659 : vector<8x8xi1> to vector<8x8xi32>
    %661 = arith.sitofp %660 : vector<8x8xi32> to vector<8x8xf32>
    %c124 = arith.constant 124 : index
    %662 = memref.load %arg3[%c124] : memref<128xf32, #tpu.memory_space<smem>>
    %663 = vector.broadcast %662 : f32 to vector<8x8xf32>
    %664 = arith.mulf %661, %663 : vector<8x8xf32>
    %665 = arith.addf %645, %664 : vector<8x8xf32>
    %c125 = arith.constant 125 : index
    %666 = memref.load %arg3[%c125] : memref<128xf32, #tpu.memory_space<smem>>
    %667 = vector.broadcast %666 : f32 to vector<8x8xf32>
    %668 = arith.mulf %661, %667 : vector<8x8xf32>
    %669 = arith.addf %649, %668 : vector<8x8xf32>
    %c126 = arith.constant 126 : index
    %670 = memref.load %arg3[%c126] : memref<128xf32, #tpu.memory_space<smem>>
    %671 = vector.broadcast %670 : f32 to vector<8x8xf32>
    %672 = arith.mulf %661, %671 : vector<8x8xf32>
    %673 = arith.addf %653, %672 : vector<8x8xf32>
    %c127 = arith.constant 127 : index
    %674 = memref.load %arg3[%c127] : memref<128xf32, #tpu.memory_space<smem>>
    %675 = vector.broadcast %674 : f32 to vector<8x8xf32>
    %676 = arith.mulf %661, %675 : vector<8x8xf32>
    %677 = arith.addf %657, %676 : vector<8x8xf32>
    %678 = vector.shape_cast %665 : vector<8x8xf32> to vector<1x8x8xf32>
    %679 = vector.shape_cast %669 : vector<8x8xf32> to vector<1x8x8xf32>
    %680 = vector.shape_cast %673 : vector<8x8xf32> to vector<1x8x8xf32>
    %681 = vector.shape_cast %677 : vector<8x8xf32> to vector<1x8x8xf32>
    %682 = tpu.concatenate %678, %679, %680, %681 in 0 : vector<1x8x8xf32>, vector<1x8x8xf32>, vector<1x8x8xf32>, vector<1x8x8xf32> -> vector<4x8x8xf32>
    %683 = arith.addf %6, %682 : vector<4x8x8xf32>
    %684 = arith.negf %683 : vector<4x8x8xf32>
    %685 = math.exp %684 : vector<4x8x8xf32>
    %cst_25 = arith.constant 1.000000e+00 : f32
    %686 = vector.broadcast %cst_25 : f32 to vector<4x8x8xf32>
    %687 = arith.addf %686, %685 : vector<4x8x8xf32>
    %688 = arith.divf %686, %687 : vector<4x8x8xf32>
    %689 = arith.mulf %683, %688 : vector<4x8x8xf32>
    %690 = arith.truncf %689 : vector<4x8x8xf32> to vector<4x8x8xbf16>
    "tpu.trace_start"() <{level = 10 : i32, message = "hqk,hkd->hqd"}> : () -> ()
    %cst_26 = arith.constant dense<0.000000e+00> : vector<4x8x8xf32>
    %691 = tpu.matmul %690, %5, %cst_26 {dimension_numbers = #tpu.dot_dimension_numbers<[2], [1], [1], [2], [0, 0, 0, 1, 1, 2], [0], [0]>} : vector<4x8x8xbf16>, vector<4x8x8xbf16>, vector<4x8x8xf32> -> vector<4x8x8xf32>
    %c0_i32_27 = arith.constant 0 : i32
    "tpu.trace_stop"() : () -> ()
    %692 = arith.cmpi eq, %arg2, %c0_i32_27 : i32
    %693 = arith.extui %692 : i1 to i32
    %c0_i32_28 = arith.constant 0 : i32
    %694 = arith.cmpi ne, %693, %c0_i32_28 : i32
    scf.if %694 {
      %c0_33 = arith.constant 0 : index
      %c0_34 = arith.constant 0 : index
      %c0_35 = arith.constant 0 : index
      %701 = vector.load %arg14[%c0_33, %c0_34, %c0_35] : memref<4x8x8xf32, #tpu.memory_space<vmem>>, vector<4x8x8xf32>
      tpu.vector_store %arg14[%c0_33, %c0_34, %c0_35], %691 {strides = array<i32>} : memref<4x8x8xf32, #tpu.memory_space<vmem>>, vector<4x8x8xf32>,
    } else {
    }
    %c0_i32_29 = arith.constant 0 : i32
    %695 = arith.cmpi sgt, %arg2, %c0_i32_29 : i32
    %696 = arith.extui %695 : i1 to i32
    %c0_i32_30 = arith.constant 0 : i32
    %697 = arith.cmpi ne, %696, %c0_i32_30 : i32
    scf.if %697 {
      %c0_33 = arith.constant 0 : index
      %c0_34 = arith.constant 0 : index
      %c0_35 = arith.constant 0 : index
      %701 = vector.load %arg14[%c0_33, %c0_34, %c0_35] : memref<4x8x8xf32, #tpu.memory_space<vmem>>, vector<4x8x8xf32>
      %702 = arith.addf %701, %691 : vector<4x8x8xf32>
      %c0_36 = arith.constant 0 : index
      %c0_37 = arith.constant 0 : index
      %c0_38 = arith.constant 0 : index
      %703 = vector.load %arg14[%c0_36, %c0_37, %c0_38] : memref<4x8x8xf32, #tpu.memory_space<vmem>>, vector<4x8x8xf32>
      tpu.vector_store %arg14[%c0_36, %c0_37, %c0_38], %702 {strides = array<i32>} : memref<4x8x8xf32, #tpu.memory_space<vmem>>, vector<4x8x8xf32>,
    } else {
    }
    %c0_i32_31 = arith.constant 0 : i32
    %698 = arith.cmpi eq, %arg2, %c0_i32_31 : i32
    %699 = arith.extui %698 : i1 to i32
    %c0_i32_32 = arith.constant 0 : i32
    %700 = arith.cmpi ne, %699, %c0_i32_32 : i32
    scf.if %700 {
      %c0_33 = arith.constant 0 : index
      %c0_34 = arith.constant 0 : index
      %c0_35 = arith.constant 0 : index
      %701 = vector.load %arg14[%c0_33, %c0_34, %c0_35] : memref<4x8x8xf32, #tpu.memory_space<vmem>>, vector<1x8x8xf32>
      %702 = vector.shape_cast %701 : vector<1x8x8xf32> to vector<8x8xf32>
      %c1_36 = arith.constant 1 : index
      %c0_37 = arith.constant 0 : index
      %c0_38 = arith.constant 0 : index
      %703 = vector.load %arg14[%c1_36, %c0_37, %c0_38] : memref<4x8x8xf32, #tpu.memory_space<vmem>>, vector<1x8x8xf32>
      %704 = vector.shape_cast %703 : vector<1x8x8xf32> to vector<8x8xf32>
      %c2_39 = arith.constant 2 : index
      %c0_40 = arith.constant 0 : index
      %c0_41 = arith.constant 0 : index
      %705 = vector.load %arg14[%c2_39, %c0_40, %c0_41] : memref<4x8x8xf32, #tpu.memory_space<vmem>>, vector<1x8x8xf32>
      %706 = vector.shape_cast %705 : vector<1x8x8xf32> to vector<8x8xf32>
      %c3_42 = arith.constant 3 : index
      %c0_43 = arith.constant 0 : index
      %c0_44 = arith.constant 0 : index
      %707 = vector.load %arg14[%c3_42, %c0_43, %c0_44] : memref<4x8x8xf32, #tpu.memory_space<vmem>>, vector<1x8x8xf32>
      %708 = vector.shape_cast %707 : vector<1x8x8xf32> to vector<8x8xf32>
      %709 = tpu.concatenate %702, %704, %706, %708 in 1 : vector<8x8xf32>, vector<8x8xf32>, vector<8x8xf32>, vector<8x8xf32> -> vector<8x32xf32>
      %c0_45 = arith.constant 0 : index
      %c0_46 = arith.constant 0 : index
      %c0_47 = arith.constant 0 : index
      %710 = vector.load %arg7[%c0_45, %c0_46, %c0_47] : memref<1x8x32xbf16, #tpu.memory_space<vmem>>, vector<1x8x32xbf16>
      %711 = vector.shape_cast %710 : vector<1x8x32xbf16> to vector<8x32xbf16>
      %712 = arith.extf %711 : vector<8x32xbf16> to vector<8x32xf32>
      %713 = arith.mulf %709, %712 : vector<8x32xf32>
      %cst_48 = arith.constant dense<0.000000e+00> : vector<8xf32>
      %714 = vector.multi_reduction <add>, %713, %cst_48 [1] : vector<8x32xf32> to vector<8xf32>
      %715 = vector.shape_cast %714 : vector<8xf32> to vector<8x1xf32>
      %cst_49 = arith.constant 3.200000e+01 : f32
      %716 = vector.broadcast %cst_49 : f32 to vector<8x1xf32>
      %717 = arith.divf %715, %716 : vector<8x1xf32>
      %718 = vector.broadcast %717 : vector<8x1xf32> to vector<8x32xf32>
      %719 = arith.subf %713, %718 : vector<8x32xf32>
      %720 = arith.mulf %719, %719 : vector<8x32xf32>
      %cst_50 = arith.constant dense<0.000000e+00> : vector<8xf32>
      %721 = vector.multi_reduction <add>, %720, %cst_50 [1] : vector<8x32xf32> to vector<8xf32>
      %722 = vector.shape_cast %721 : vector<8xf32> to vector<8x1xf32>
      %cst_51 = arith.constant 3.200000e+01 : f32
      %723 = vector.broadcast %cst_51 : f32 to vector<8x1xf32>
      %724 = arith.divf %722, %723 : vector<8x1xf32>
      %cst_52 = arith.constant 9.99999974E-6 : f32
      %725 = vector.broadcast %cst_52 : f32 to vector<8x1xf32>
      %726 = arith.addf %724, %725 : vector<8x1xf32>
      %727 = math.rsqrt %726 : vector<8x1xf32>
      %728 = vector.broadcast %727 : vector<8x1xf32> to vector<8x32xf32>
      %729 = arith.mulf %719, %728 : vector<8x32xf32>
      %c0_53 = arith.constant 0 : index
      %c0_54 = arith.constant 0 : index
      %730 = vector.load %arg9[%c0_53, %c0_54] : memref<1x32xf32, #tpu.memory_space<vmem>>, vector<1x32xf32>
      %731 = vector.shape_cast %730 : vector<1x32xf32> to vector<32xf32>
      %732 = vector.shape_cast %731 : vector<32xf32> to vector<1x32xf32>
      %733 = vector.broadcast %732 : vector<1x32xf32> to vector<8x32xf32>
      %734 = arith.mulf %729, %733 : vector<8x32xf32>
      %c0_55 = arith.constant 0 : index
      %c0_56 = arith.constant 0 : index
      %735 = vector.load %arg10[%c0_55, %c0_56] : memref<1x32xf32, #tpu.memory_space<vmem>>, vector<1x32xf32>
      %736 = vector.shape_cast %735 : vector<1x32xf32> to vector<32xf32>
      %737 = vector.shape_cast %736 : vector<32xf32> to vector<1x32xf32>
      %738 = vector.broadcast %737 : vector<1x32xf32> to vector<8x32xf32>
      %739 = arith.addf %734, %738 : vector<8x32xf32>
      %740 = arith.truncf %739 : vector<8x32xf32> to vector<8x32xbf16>
      %c0_57 = arith.constant 0 : index
      %c0_58 = arith.constant 0 : index
      %741 = vector.load %arg11[%c0_57, %c0_58] : memref<32x32xbf16, #tpu.memory_space<vmem>>, vector<32x32xbf16>
      %cst_59 = arith.constant dense<0.000000e+00> : vector<8x32xf32>
      %742 = tpu.matmul %740, %741, %cst_59 {dimension_numbers = #tpu.dot_dimension_numbers<[1], [0], [0], [1], [0, 0, 1, 1], [], []>} : vector<8x32xbf16>, vector<32x32xbf16>, vector<8x32xf32> -> vector<8x32xf32>
      %c0_60 = arith.constant 0 : index
      %c0_61 = arith.constant 0 : index
      %743 = vector.load %arg12[%c0_60, %c0_61] : memref<1x32xf32, #tpu.memory_space<vmem>>, vector<1x32xf32>
      %744 = vector.shape_cast %743 : vector<1x32xf32> to vector<32xf32>
      %745 = vector.shape_cast %744 : vector<32xf32> to vector<1x32xf32>
      %746 = vector.broadcast %745 : vector<1x32xf32> to vector<8x32xf32>
      %747 = arith.addf %742, %746 : vector<8x32xf32>
      %c0_62 = arith.constant 0 : index
      %c0_63 = arith.constant 0 : index
      %c0_64 = arith.constant 0 : index
      %748 = vector.load %arg8[%c0_62, %c0_63, %c0_64] : memref<1x8x32xf32, #tpu.memory_space<vmem>>, vector<1x8x32xf32>
      %749 = vector.shape_cast %748 : vector<1x8x32xf32> to vector<8x32xf32>
      %750 = arith.addf %747, %749 : vector<8x32xf32>
      %c0_65 = arith.constant 0 : index
      %c0_66 = arith.constant 0 : index
      %c0_67 = arith.constant 0 : index
      %751 = vector.load %arg13[%c0_65, %c0_66, %c0_67] : memref<1x8x32xf32, #tpu.memory_space<vmem>>, vector<1x8x32xf32>
      %752 = vector.shape_cast %751 : vector<1x8x32xf32> to vector<8x32xf32>
      %753 = vector.shape_cast %750 : vector<8x32xf32> to vector<1x8x32xf32>
      tpu.vector_store %arg13[%c0_65, %c0_66, %c0_67], %753 {strides = array<i32>} : memref<1x8x32xf32, #tpu.memory_space<vmem>>, vector<1x8x32xf32>,
    } else {
    }
    return
  }
  func.func @transform_0(%arg0: i32, %arg1: i32, %arg2: i32) -> i32 {
    %c0_i32 = arith.constant 0 : i32
    %c0_i32_0 = arith.constant 0 : i32
    return %c0_i32 : i32
  }
  func.func @transform_1(%arg0: i32, %arg1: i32, %arg2: i32) -> (i32, i32, i32, i32) {
    %c0_i32 = arith.constant 0 : i32
    %c0_i32_0 = arith.constant 0 : i32
    %c0_i32_1 = arith.constant 0 : i32
    return %arg0, %c0_i32, %arg1, %c0_i32_0 : i32, i32, i32, i32
  }
  func.func @transform_2(%arg0: i32, %arg1: i32, %arg2: i32) -> (i32, i32, i32, i32) {
    %c0_i32 = arith.constant 0 : i32
    %c0_i32_0 = arith.constant 0 : i32
    %c0_i32_1 = arith.constant 0 : i32
    return %arg0, %c0_i32, %arg2, %c0_i32_0 : i32, i32, i32, i32
  }
  func.func @transform_3(%arg0: i32, %arg1: i32, %arg2: i32) -> (i32, i32, i32, i32) {
    %c0_i32 = arith.constant 0 : i32
    %c0_i32_0 = arith.constant 0 : i32
    %c0_i32_1 = arith.constant 0 : i32
    return %arg0, %c0_i32, %arg2, %c0_i32_0 : i32, i32, i32, i32
  }
  func.func @transform_4(%arg0: i32, %arg1: i32, %arg2: i32) -> (i32, i32, i32) {
    %c0_i32 = arith.constant 0 : i32
    %c0_i32_0 = arith.constant 0 : i32
    return %arg0, %arg1, %c0_i32 : i32, i32, i32
  }
  func.func @transform_5(%arg0: i32, %arg1: i32, %arg2: i32) -> (i32, i32, i32) {
    %c0_i32 = arith.constant 0 : i32
    %c0_i32_0 = arith.constant 0 : i32
    return %arg0, %arg1, %c0_i32 : i32, i32, i32
  }
  func.func @transform_6(%arg0: i32, %arg1: i32, %arg2: i32) -> (i32, i32) {
    %c0_i32 = arith.constant 0 : i32
    %c0_i32_0 = arith.constant 0 : i32
    %c0_i32_1 = arith.constant 0 : i32
    return %c0_i32, %c0_i32_0 : i32, i32
  }
  func.func @transform_7(%arg0: i32, %arg1: i32, %arg2: i32) -> (i32, i32) {
    %c0_i32 = arith.constant 0 : i32
    %c0_i32_0 = arith.constant 0 : i32
    %c0_i32_1 = arith.constant 0 : i32
    return %c0_i32, %c0_i32_0 : i32, i32
  }
  func.func @transform_8(%arg0: i32, %arg1: i32, %arg2: i32) -> (i32, i32) {
    %c0_i32 = arith.constant 0 : i32
    %c0_i32_0 = arith.constant 0 : i32
    %c0_i32_1 = arith.constant 0 : i32
    return %c0_i32, %c0_i32_0 : i32, i32
  }
  func.func @transform_9(%arg0: i32, %arg1: i32, %arg2: i32) -> (i32, i32) {
    %c0_i32 = arith.constant 0 : i32
    %c0_i32_0 = arith.constant 0 : i32
    %c0_i32_1 = arith.constant 0 : i32
    return %c0_i32, %c0_i32_0 : i32, i32
  }
  func.func @transform_10(%arg0: i32, %arg1: i32, %arg2: i32) -> (i32, i32, i32) {
    %c0_i32 = arith.constant 0 : i32
    %c0_i32_0 = arith.constant 0 : i32
    return %arg0, %arg1, %c0_i32 : i32, i32, i32
  }
}

</mosaic_0001>

<bundles_post_ra>
// kernel: genrec_forward.4
= control target key start
LH: loop header
LB: loop body
LE: loop exit
PB: predicated region body
PF: predicated region fallthrough
CT: control target
= control target key end

     0   :  { %s942_s21 = smov 0   ;;  %s944_s22 = smov 0   ;;  %s1037_s0 = inlined_call_operand.vmem [shape: f32[2,8,32], index: 0, kind: input, shape index: {}]   ;;  %s1038_s1 = inlined_call_operand.vmem [shape: bf16[4,32,32], index: 1, kind: input, shape index: {}]   ;;  %s1039_s2 = inlined_call_operand.vmem [shape: f32[4,1,32], index: 2, kind: input, shape index: {}]   ;;  %s1040_s3 = inlined_call_operand.vmem [shape: bf16[2,8,32], index: 3, kind: output, shape index: {0}]   ;;  %s1041_s4 = inlined_call_operand.vmem [shape: bf16[2,4,8,8], index: 4, kind: output, shape index: {1}]   ;;  %s1042_s5 = inlined_call_operand.vmem [shape: bf16[2,4,8,8], index: 5, kind: output, shape index: {2}]   ;;  %s1043_s6 = inlined_call_operand.vmem [shape: bf16[2,4,8,8], index: 6, kind: output, shape index: {3}]  }
   0x1   :  { %s946_s23 = smov 0   ;;  %s948_s24 = smov 0  }
   0x2   :  { %s950_s25 = smov 0  }
   0x3 LB: > { %s29_s26 = sadd.s32 1, %s888_s23  ;;  %s36_s27 = sadd.s32 1, %s892_s24  ;;  %s896_s25 = sphi %s950_s25, %s17_s25   ;;  %s892_s24 = sphi %s948_s24, %s1047_s24   ;;  %s888_s23 = sphi %s946_s23, %s1046_s23   ;;  %s884_s22 = sphi %s944_s22, %s1045_s22   ;;  %s880_s21 = sphi %s942_s21, %s1044_s21  }
   0x4   : > { %p30_p0 = scmp.ge.s32.totalorder %s29_s26, 4  ;;  %p762_p1 = scmp.ge.s32.totalorder %s896_s25, 1 }
   0x5   : > { %p268_p2 = scmp.lt.s32.totalorder %s896_s25, 9 }
   0x6   : > { %s1049_s26 = smov (%p30_p0, %s29_s26), 0  ;;  %s1051_s27 = smov (!%p30_p0, %s36_s27), %s892_s24 }
   0x7   : > { %p269_p3 = pnand %p762_p1, %p268_p2  ;;  %p38_p4 = scmp.ge.s32.totalorder %s1051_s27, 2 }
   0x8   : > { %p341_p5 = scmp.lt.s32.totalorder (!%p269_p3), %s880_s21, 3  ;;  %p334_p6 = scmp.lt.s32.totalorder (!%p269_p3), %s884_s22, 1 }
   0x9   : > { %s1053_s27 = smov (%p38_p4, %s1051_s27), 0  ;;  %272 = sbr.rel (%p269_p3) target bundleno = 586 (0x24a), region = 32 }
   0xa   : > { %p783_p7 = scmp.ne.s32.totalorder (!%p269_p3), %s880_s21, 0 }
   0xe   : > { %s342_s28 = scalar_select %p341_p5, %s880_s21, 3  ;;  %vm403_vm0 = vcmask 261120  }
   0xf   : > { %s1055_s22 = smov (!%p334_p6, %s884_s22), 1 }
  0x10   : > { %s798_s29 = sshll.u32 %s342_s28, 4  ;;  %s348_s8 = scalar_lea.vmem %s1039_s2, %s342_s28 }
  0x11   : > { %s345_s11 = scalar_lea.vmem %s1038_s1, %s798_s29  ;;  %s763_s12 = sshll.u32 %s1055_s22, 3  ;;  %v853_v4 = vld [vmem:[%s348_s8] ss:$0 sm:$0xff] }
  0x12   : > { %v803_v0 = vld [vmem:[%s345_s11 + $0x8] sm:$0xff]  ;;  %s340_s15 = scalar_lea.vmem %s1037_s0, %s763_s12  ;;  %s766_s16 = sshll.u32 %s1055_s22, 2  ;;  %v802_v1 = vld [vmem:[%s345_s11] sm:$0xff] }
  0x13   : > { %s988_s19 = scalar_lea.vmem %s1040_s3, %s766_s16  ;;  %s799_s20 = sshll.u32 %s1055_s22, 4  ;;  %413 = vmatpush.bf16.msra.mxu0 %v803_v0  ;;  %v381_v2 = vld [vmem:[%s340_s15] sm:$0xff] }
  0x14   : > { %s993_s7 = scalar_lea.vmem %s1041_s4, %s799_s20  ;;  %s998_s10 = scalar_lea.vmem %s1042_s5, %s799_s20  ;;  %v382_v3 = vpack.c.bf16 %v381_v2, %v381_v2 }
  0x15   : > { %s1003_s14 = scalar_lea.vmem %s1043_s6, %s799_s20 }
  0x17   : > { %414 = vmatpush.bf16.msra.mxu0 %v802_v1 }
  0x1a   : > { %781 = vmatmul.msk.bf16.vlgmr.msra.gmra.mxu0 %vm403_vm0, %v382_v3 }
  0x97   : > { %v416_v5 = vpop.f32.mrf.mxu0 }
  0x98   : > { %v417_v6 = vadd.f32 %v853_v4, %v416_v5 }
  0x9a   : > { %v782_v7 = vmul.f32 -1.442695, %v417_v6 }
  0x9c   : > { %854 = vpow2.f32 %v782_v7 }
  0x9f   : > { %v418_v8 = vpop.f32.mrf.mxu0 }
  0xa2   : > { %v855_v9 = vpop.eup %854 }
  0xa3   : > { %v423_v10 = vadd.f32 1.0, %v855_v9 }
  0xa5   : > { %856 = vrcp.f32 %v423_v10  ;;  %v435_v14 = vand.u32 2147483648, %v423_v10  ;;  %v433_v16 = vand.u32 2147483647, %v423_v10  ;;  %vm429_vm2 = vweird.f32 %v423_v10 }
  0xa7   : > { %v436_v18 = vor.u32 1.1754944e-38, %v435_v14  ;;  %vm434_vm4 = vcmp.eq.f32.partialorder %v433_v16, 8.507059e+37 }
  0xab   : > { %v857_v11 = vpop.eup %856 }
  0xac   : > { %v425_v12 = vmul.f32 %v857_v11, %v423_v10  ;;  %vm430_vm1 = vweird.f32 %v857_v11 }
  0xad   : > { %vm431_vm3 = vmor %vm429_vm2, %vm430_vm1 }
  0xae   : > { %v426_v13 = vsub.f32 1.0, %v425_v12 }
  0xb0   : > { %v427_v15 = vmul.f32 %v857_v11, %v426_v13 }
  0xb2   : > { %v428_v17 = vadd.f32 %v857_v11, %v427_v15  ;;  %443 = sbr.rel (%p783_p7) target bundleno = 187 (0xbb), region = 36 }
  0xb4   : > { %v432_v19 = vsel %vm431_vm3, %v857_v11, %v428_v17 }
  0xb5   : > { %v437_v20 = vsel %vm434_vm4, %v436_v18, %v432_v19 }
  0xb6   : > { %v439_v21 = vmul.f32 %v437_v20, %v417_v6 }
  0xb7   : > { %vm445_vm5 = vcmask 257024  }
  0xb8   : > { %v444_v22 = vpack.c.bf16 %v439_v21, %v439_v21 }
  0xba   : > { %446 = vst.msk [vmem:[%s988_s19] sm:$0xf] %vm445_vm5, %v444_v22 }
  0xbb PF: > { %p784_p8 = scmp.ne.s32.totalorder %s880_s21, 1 }
  0xbc   : > { %s898_s22 = smov (!%p784_p8), 120   ;;  %s899_s8 = smov (!%p784_p8), 104  }
  0xbd   : > { %450 = sbr.rel (%p784_p8) target bundleno = 320 (0x140), region = 40  ;;  %s900_s11 = smov (!%p784_p8), 112  }
  0xc2   : > { %v451_v23 = vpack.c.bf16 %v439_v21, %v439_v21  ;;  %vm452_vm6 = vcmask 60416  }
  0xc4   : > { %455 = vrot.lane.b32.xlu0 %v451_v23, %s898_s22  ;;  %465 = vrot.lane.b32.xlu1 %v451_v23, %s899_s8  ;;  %453 = vst.msk [vmem:[%s993_s7] sm:$0xf] %vm452_vm6, %v451_v23 }
  0xcc   : > { %460 = vrot.lane.b32.xlu0 %v451_v23, %s900_s11 }
 0x136   : > { %v456_v24 = vpop.permute.xlu0 %455  ;;  %v466_v25 = vpop.permute.xlu1 %465 }
 0x137   : > { %785 = vst.msk [vmem:[%s993_s7 + $0x4] sm:$0xf] %vm452_vm6, %v456_v24 }
 0x138   : > { %787 = vst.msk [vmem:[%s993_s7 + $0xc] sm:$0xf] %vm452_vm6, %v466_v25 }
 0x13e   : > { %v461_v26 = vpop.permute.xlu0 %460 }
 0x13f   : > { %786 = vst.msk [vmem:[%s993_s7 + $0x8] sm:$0xf] %vm452_vm6, %v461_v26 }
 0x140 PF: > { %p788_p9 = scmp.ne.s32.totalorder %s880_s21, 2 }
 0x141   : > { %s901_s15 = smov (!%p788_p9), 120   ;;  %s902_s16 = smov (!%p788_p9), 104  }
 0x142   : > { %473 = sbr.rel (%p788_p9) target bundleno = 453 (0x1c5), region = 44  ;;  %s903_s17 = smov (!%p788_p9), 112  }
 0x147   : > { %v474_v27 = vpack.c.bf16 %v439_v21, %v439_v21  ;;  %vm475_vm7 = vcmask 60416  }
 0x149   : > { %478 = vrot.lane.b32.xlu0 %v474_v27, %s901_s15  ;;  %488 = vrot.lane.b32.xlu1 %v474_v27, %s902_s16  ;;  %476 = vst.msk [vmem:[%s998_s10] sm:$0xf] %vm475_vm7, %v474_v27 }
 0x151   : > { %483 = vrot.lane.b32.xlu0 %v474_v27, %s903_s17 }
 0x1bb   : > { %v479_v28 = vpop.permute.xlu0 %478  ;;  %v489_v29 = vpop.permute.xlu1 %488 }
 0x1bc   : > { %789 = vst.msk [vmem:[%s998_s10 + $0x4] sm:$0xf] %vm475_vm7, %v479_v28 }
 0x1bd   : > { %791 = vst.msk [vmem:[%s998_s10 + $0xc] sm:$0xf] %vm475_vm7, %v489_v29 }
 0x1c3   : > { %v484_v30 = vpop.permute.xlu0 %483 }
 0x1c4   : > { %790 = vst.msk [vmem:[%s998_s10 + $0x8] sm:$0xf] %vm475_vm7, %v484_v30 }
 0x1c5 PF: > { %p792_p10 = scmp.ne.s32.totalorder %s880_s21, 3 }
 0x1c6   : > { %s904_s18 = smov (!%p792_p10), 120   ;;  %s905_s19 = smov (!%p792_p10), 104  }
 0x1c7   : > { %496 = sbr.rel (%p792_p10) target bundleno = 586 (0x24a), region = 48  ;;  %s906_s20 = smov (!%p792_p10), 112  }
 0x1cc   : > { %v497_v31 = vpack.c.bf16 %v439_v21, %v439_v21  ;;  %vm498_vm8 = vcmask 60416  }
 0x1ce   : > { %501 = vrot.lane.b32.xlu0 %v497_v31, %s904_s18  ;;  %511 = vrot.lane.b32.xlu1 %v497_v31, %s905_s19  ;;  %499 = vst.msk [vmem:[%s1003_s14] sm:$0xf] %vm498_vm8, %v497_v31 }
 0x1d6   : > { %506 = vrot.lane.b32.xlu0 %v497_v31, %s906_s20 }
 0x240   : > { %v502_v32 = vpop.permute.xlu0 %501  ;;  %v512_v33 = vpop.permute.xlu1 %511 }
 0x241   : > { %793 = vst.msk [vmem:[%s1003_s14 + $0x4] sm:$0xf] %vm498_vm8, %v502_v32 }
 0x242   : > { %795 = vst.msk [vmem:[%s1003_s14 + $0xc] sm:$0xf] %vm498_vm8, %v512_v33 }
 0x248   : > { %v507_v34 = vpop.permute.xlu0 %506 }
 0x249   : > { %794 = vst.msk [vmem:[%s1003_s14 + $0x8] sm:$0xf] %vm498_vm8, %v507_v34 }
 0x24a PF: > { %s17_s25 = sadd.s32 1, %s896_s25   ;;  %s1044_s21 = smov %s888_s23 }
 0x24b   : > { %p14_p11 = scmp.ge.s32.totalorder %s17_s25, 10   ;;  %s1045_s22 = smov %s892_s24 }
 0x24c   : > { %s1046_s23 = smov %s1049_s26  ;;  %s1047_s24 = smov %s1053_s27 }
 0x24d   :  { %16 = sbr.rel (!%p14_p11) target bundleno = 3 (0x3), region = 129 }

// kernel: genrec_forward.5
= control target key start
LH: loop header
LB: loop body
LE: loop exit
PB: predicated region body
PF: predicated region fallthrough
CT: control target
= control target key end

     0   :  { %s2544_s0 = inlined_call_operand.vmem [shape: f32[128], index: 0, kind: input, shape index: {}]   ;;  %s2545_s1 = inlined_call_operand.vmem [shape: bf16[2,4,8,8], index: 1, kind: input, shape index: {}]   ;;  %s2546_s2 = inlined_call_operand.vmem [shape: bf16[2,4,8,8], index: 2, kind: input, shape index: {}]   ;;  %s2547_s3 = inlined_call_operand.vmem [shape: bf16[2,4,8,8], index: 3, kind: input, shape index: {}]   ;;  %s2548_s4 = inlined_call_operand.vmem [shape: bf16[2,8,32], index: 4, kind: input, shape index: {}]   ;;  %s2549_s5 = inlined_call_operand.vmem [shape: f32[2,8,32], index: 5, kind: input, shape index: {}]   ;;  %s2550_s6 = inlined_call_operand.vmem [shape: f32[1,32], index: 6, kind: input, shape index: {}]   ;;  %s2551_s7 = inlined_call_operand.vmem [shape: f32[1,32], index: 7, kind: input, shape index: {}]   ;;  %s2552_s8 = inlined_call_operand.vmem [shape: bf16[32,32], index: 8, kind: input, shape index: {}]   ;;  %s2553_s9 = inlined_call_operand.vmem [shape: f32[1,32], index: 9, kind: input, shape index: {}]   ;;  %s2554_s10 = inlined_call_operand.vmem [shape: f32[2,8,32], index: 10, kind: output, shape index: {}]  }
   0x1   :  { %2555 = sst [smem:[#allocation6_spill]] %s2544_s0 }
   0x2   :  { %2556 = sst [smem:[#allocation7_spill]] %s2545_s1 }
   0x3   :  { %2557 = sst [smem:[#allocation8_spill]] %s2546_s2 }
   0x4   :  { %15 = vsyncpa [#allocation4], 0  ;;  %s2059_s13 = smov 0   ;;  %s2061_s14 = smov 0  }
   0x5   :  { %s2063_s15 = smov 0  }
   0x6 LB: > { %s1713_s16 = sadd.s32 4294967295, %s1996_s15   ;;  %s40_s17 = sadd.s32 1, %s1992_s14  ;;  %s1996_s15 = sphi %s2063_s15, %s21_s15   ;;  %s1992_s14 = sphi %s2061_s14, %s2564_s14   ;;  %s1988_s13 = sphi %s2059_s13, %s2563_s13  }
   0x7   : > { %p42_p0 = scmp.ge.s32.totalorder %s40_s17, 2  ;;  %p1715_p1 = scmp.ge.s32.totalorder %s1996_s15, 1 }
   0x8   : > { %p318_p2 = scmp.lt.s32.totalorder %s1996_s15, 3  ;;  %p1900_p4 = scmp.eq.s32.totalorder %s1713_s16, 0 }
   0x9   : > { %s2566_s17 = smov (%p42_p0, %s40_s17), 0  ;;  %s2558_s0 = sld [smem:[#allocation6_spill]] }
   0xa   : > { %p319_p3 = pnand %p1715_p1, %p318_p2  ;;  %s1998_s21 = smov [#allocation3]  }
   0xc   : > { %p1896_p5 = pneg %p319_p3  ;;  %408 = sbr.rel (%p319_p3) target bundleno = 867 (0x363), region = 60 }
   0xe   : > { %p1897_p6 = pnand %p1900_p4, %p1896_p5 }
   0xf   : > { %s330_s20 = sshll.u32 %s2558_s0, 4  ;;  %s331_s20 = int_to_ptr.vmem [resolvable:$true] %s330_s20 }
  0x10   : > { %1899 = dma.vmem_to_smem (!%p1897_p6), %s331_s20, 16, %s1998_s21, [#allocation4]  }
  0x11   : > { %1983 = dma.done.wait (%p1900_p4), [#allocation4], 16  }
  0x12   : > { %1985 = vsyncadd (%p1900_p4), [#allocation4], 4294967280 }
  0x13   : > { %415 = sfence }
  0x14   : > { %p483_p7 = scmp.lt.s32.totalorder %s1988_s13, 1  ;;  %v542_v0 = vlaneseq  ;;  %s2081_s22 = sld [smem:[#allocation3 + $0x1]]  ;;  %vm1182_vm0 = vcmask 64512   ;;  %v1999_v15 = vmov 0.0   ;;  %vm1346_vm10 = vcmask 1043456  }
  0x15   : > { %s2083_s23 = sld [smem:[#allocation3 + $0x5]] }
  0x16   : > { %s2568_s13 = smov (!%p483_p7, %s1988_s13), 1  ;;  %v543_v1 = vshrl.u32 %v542_v0, 7  ;;  %v548_v2 = vand.u32 127, %v542_v0  ;;  %s2559_s2 = sld [smem:[#allocation8_spill]] }
  0x17   : > { %s2088_s24 = sshll.u32 %s2568_s13, 4  ;;  %s2094_s28 = sld [smem:[#allocation3 + $0x9]] }
  0x18   : > { %v551_v3 = vsub.s32 %v543_v1, %v548_v2  ;;  %s2560_s1 = sld [smem:[#allocation7_spill]] }
  0x19   : > { %s1745_s12 = sld [smem:[#allocation3 + $0xd]] }
  0x1a   : > { %vm552_vm1 = vcmp.gt.s32.totalorder %v551_v3, 0  ;;  %v582_v13 = vstv %s2081_s22  ;;  %s1750_s16 = sld [smem:[#allocation3 + $0x11]] }
  0x1b   : > { %v553_v12 = vsel %vm552_vm1, %v551_v3, 0  ;;  %v601_v14 = vstv %s2083_s23  ;;  %s1755_s18 = sld [smem:[#allocation3 + $0x15]] }
  0x1c   : > { %s498_s27 = scalar_lea.vmem %s2559_s2, %s2088_s24  ;;  %vm574_vm2 = vcmp.eq.s32.totalorder %v553_v12, 0  ;;  %vm593_vm3 = vcmp.eq.s32.totalorder %v553_v12, 1  ;;  %vm612_vm4 = vcmp.eq.s32.totalorder %v553_v12, 2  ;;  %vm631_vm5 = vcmp.eq.s32.totalorder %v553_v12, 3  ;;  %s1760_s19 = sld [smem:[#allocation3 + $0x19]] }
  0x1d   : > { %v534_v4 = vld [vmem:[%s498_s27 + $0x4] sm:$0xf]  ;;  %v535_v5 = vld [vmem:[%s498_s27 + $0x8] sm:$0xf]  ;;  %v536_v6 = vld [vmem:[%s498_s27 + $0xc] sm:$0xf]  ;;  %v620_v25 = vstv %s2094_s28 }
  0x1e   : > { %v1206_v7 = vsel %vm1182_vm0, %v534_v4, 0  ;;  %v1225_v8 = vsel %vm1182_vm0, %v535_v5, 0  ;;  %v1244_v9 = vsel %vm1182_vm0, %v536_v6, 0  ;;  %v533_v10 = vld [vmem:[%s498_s27] sm:$0xf]  ;;  %s490_s11 = scalar_lea.vmem %s2560_s1, %s2088_s24  ;;  %v2106_v16 = vsel %vm574_vm2, 1.0, %v1999_v15 }
  0x1f   : > { %1215 = vmatpush.bf16.xpose.msra.mxu1 %v1206_v7  ;;  %1234 = vmatpush.bf16.xpose.msra.mxu2 %v1225_v8  ;;  %v1187_v11 = vsel %vm1182_vm0, %v533_v10, 0  ;;  %v2108_v17 = vsel %vm593_vm3, 1.0, %v1999_v15  ;;  %v530_v18 = vld [vmem:[%s490_s11 + $0x4] sm:$0xf]  ;;  %v531_v19 = vld [vmem:[%s490_s11 + $0x8] sm:$0xf]  ;;  %v583_v21 = vmul.f32 %v2106_v16, %v582_v13  ;;  %v639_v29 = vstv %s1745_s12 }
  0x20   : > { %1253 = vmatpush.bf16.xpose.msra.mxu3 %v1244_v9  ;;  %1196 = vmatpush.bf16.xpose.msra.mxu0 %v1187_v11  ;;  %v532_v20 = vld [vmem:[%s490_s11 + $0xc] sm:$0xf]  ;;  %v602_v22 = vmul.f32 %v2108_v17, %v601_v14  ;;  %v529_v23 = vld [vmem:[%s490_s11] sm:$0xf]  ;;  %v2112_v24 = vsel %vm612_vm4, 1.0, %v1999_v15  ;;  %v2120_v28 = vsel %vm631_vm5, 1.0, %v1999_v15  ;;  %v658_v33 = vstv %s1750_s16 }
  0x21   : > { %v621_v27 = vmul.f32 %v2112_v24, %v620_v25  ;;  %vm650_vm6 = vcmp.eq.s32.totalorder %v553_v12, 4  ;;  %v640_v31 = vmul.f32 %v2120_v28, %v639_v29  ;;  %vm669_vm7 = vcmp.eq.s32.totalorder %v553_v12, 5  ;;  %s1765_s20 = sld [smem:[#allocation3 + $0x1d]] }
  0x22   : > { %v603_v26 = vadd.f32 %v602_v22, %v583_v21  ;;  %v2123_v32 = vsel %vm650_vm6, 1.0, %v1999_v15  ;;  %v2126_v36 = vsel %vm669_vm7, 1.0, %v1999_v15  ;;  %v677_v37 = vstv %s1755_s18  ;;  %s1769_s21 = sld [smem:[#allocation3 + $0x21]] }
  0x23   : > { %v659_v35 = vmul.f32 %v2123_v32, %v658_v33  ;;  %vm688_vm8 = vcmp.eq.s32.totalorder %v553_v12, 6  ;;  %v678_v39 = vmul.f32 %v2126_v36, %v677_v37  ;;  %v696_v41 = vstv %s1760_s19  ;;  %s1773_s22 = sld [smem:[#allocation3 + $0x25]] }
  0x24   : > { %v622_v30 = vadd.f32 %v621_v27, %v603_v26  ;;  %v2129_v40 = vsel %vm688_vm8, 1.0, %v1999_v15  ;;  %vm707_vm9 = vcmp.eq.s32.totalorder %v553_v12, 7  ;;  %s1777_s23 = sld [smem:[#allocation3 + $0x29]] }
  0x25   : > { %v697_v43 = vmul.f32 %v2129_v40, %v696_v41  ;;  %v2132_v44 = vsel %vm707_vm9, 1.0, %v1999_v15  ;;  %s1781_s25 = sld [smem:[#allocation3 + $0x2d]] }
  0x26   : > { %1865 = vmatmul.msk.bf16.vlgmr.msra.gmra.mxu1 %vm1182_vm0, %v530_v18  ;;  %1866 = vmatmul.msk.bf16.vlgmr.msra.gmra.mxu2 %vm1182_vm0, %v531_v19  ;;  %v641_v34 = vadd.f32 %v640_v31, %v622_v30  ;;  %s1731_s26 = sld [smem:[#allocation3 + $0x2]] }
  0x27   : > { %1867 = vmatmul.msk.bf16.vlgmr.msra.gmra.mxu3 %vm1182_vm0, %v532_v20  ;;  %1864 = vmatmul.msk.bf16.vlgmr.msra.gmra.mxu0 %vm1182_vm0, %v529_v23  ;;  %v715_v45 = vstv %s1765_s20  ;;  %s1736_s27 = sld [smem:[#allocation3 + $0x6]] }
  0x28   : > { %v660_v38 = vadd.f32 %v659_v35, %v641_v34  ;;  %v716_v47 = vmul.f32 %v2132_v44, %v715_v45  ;;  %v734_v48 = vstv %s1769_s21  ;;  %s2135_s28 = sld [smem:[#allocation3 + $0x31]] }
  0x29   : > { %v735_v50 = vmul.f32 0.0, %v734_v48  ;;  %v753_v51 = vstv %s1773_s22  ;;  %s1741_s29 = sld [smem:[#allocation3 + $0xa]] }
  0x2a   : > { %v679_v42 = vadd.f32 %v678_v39, %v660_v38  ;;  %v754_v53 = vmul.f32 0.0, %v753_v51  ;;  %v772_v54 = vstv %s1777_s23  ;;  %s2137_s30 = sld [smem:[#allocation3 + $0x35]] }
  0x2b   : > { %s1746_s11 = sld [smem:[#allocation3 + $0xe]]  ;;  %v773_v56 = vmul.f32 0.0, %v772_v54  ;;  %v791_v57 = vstv %s1781_s25 }
  0x2c   : > { %v698_v46 = vadd.f32 %v697_v43, %v679_v42  ;;  %s2139_s12 = sld [smem:[#allocation3 + $0x39]]  ;;  %v586_v58 = vstv %s1731_s26  ;;  %v792_v63 = vmul.f32 0.0, %v791_v57 }
  0x2d   : > { %s1751_s16 = sld [smem:[#allocation3 + $0x12]]  ;;  %v605_v59 = vstv %s1736_s27  ;;  %v587_v60 = vmul.f32 %v2106_v16, %v586_v58 }
  0x2e   : > { %v717_v49 = vadd.f32 %v716_v47, %v698_v46  ;;  %s2141_s18 = sld [smem:[#allocation3 + $0x3d]]  ;;  %v606_v61 = vmul.f32 %v2108_v17, %v605_v59  ;;  %v810_v1 = vstv %s2135_s28 }
  0x2f   : > { %s1756_s19 = sld [smem:[#allocation3 + $0x16]]  ;;  %v624_v0 = vstv %s1741_s29  ;;  %v811_v8 = vmul.f32 0.0, %v810_v1 }
  0x30   : > { %v736_v52 = vadd.f32 %v735_v50, %v717_v49  ;;  %s2143_s20 = sld [smem:[#allocation3 + $0x41]]  ;;  %v607_v2 = vadd.f32 %v606_v61, %v587_v60  ;;  %v625_v3 = vmul.f32 %v2112_v24, %v624_v0  ;;  %v829_v10 = vstv %s2137_s30 }
  0x31   : > { %s1761_s21 = sld [smem:[#allocation3 + $0x1a]]  ;;  %v643_v4 = vstv %s1746_s11  ;;  %v830_v19 = vmul.f32 0.0, %v829_v10 }
  0x32   : > { %v755_v55 = vadd.f32 %v754_v53, %v736_v52  ;;  %s2148_s22 = sld [smem:[#allocation3 + $0x45]]  ;;  %v626_v5 = vadd.f32 %v625_v3, %v607_v2  ;;  %v644_v6 = vmul.f32 %v2120_v28, %v643_v4  ;;  %v848_v21 = vstv %s2139_s12 }
  0x33   : > { %s1766_s23 = sld [smem:[#allocation3 + $0x1e]]  ;;  %v662_v9 = vstv %s1751_s16  ;;  %v849_v30 = vmul.f32 0.0, %v848_v21 }
  0x34   : > { %v774_v62 = vadd.f32 %v773_v56, %v755_v55  ;;  %s2151_s25 = sld [smem:[#allocation3 + $0x49]]  ;;  %v645_v11 = vadd.f32 %v644_v6, %v626_v5  ;;  %v663_v12 = vmul.f32 %v2123_v32, %v662_v9  ;;  %v867_v33 = vstv %s2141_s18 }
  0x35   : > { %s1770_s26 = sld [smem:[#allocation3 + $0x22]]  ;;  %v681_v13 = vstv %s1756_s19  ;;  %v868_v42 = vmul.f32 0.0, %v867_v33 }
  0x36   : > { %v793_v7 = vadd.f32 %v792_v63, %v774_v62  ;;  %s2155_s27 = sld [smem:[#allocation3 + $0x4d]]  ;;  %v664_v14 = vadd.f32 %v663_v12, %v645_v11  ;;  %v682_v15 = vmul.f32 %v2126_v36, %v681_v13  ;;  %v886_v45 = vstv %s2143_s20 }
  0x37   : > { %s1774_s28 = sld [smem:[#allocation3 + $0x26]]  ;;  %v700_v20 = vstv %s1761_s21  ;;  %v887_v54 = vmul.f32 0.0, %v886_v45 }
  0x38   : > { %s2158_s29 = sld [smem:[#allocation3 + $0x51]]  ;;  %v812_v18 = vadd.f32 %v811_v8, %v793_v7  ;;  %v683_v22 = vadd.f32 %v682_v15, %v664_v14  ;;  %v701_v23 = vmul.f32 %v2129_v40, %v700_v20  ;;  %v905_v49 = vstv %s2148_s22 }
  0x39   : > { %s1778_s11 = sld [smem:[#allocation3 + $0x2a]]  ;;  %v719_v25 = vstv %s1766_s23  ;;  %v906_v58 = vmul.f32 0.0, %v905_v49 }
  0x3a   : > { %s2163_s30 = sld [smem:[#allocation3 + $0x2e]]  ;;  %v702_v26 = vadd.f32 %v701_v23, %v683_v22  ;;  %v720_v27 = vmul.f32 %v2132_v44, %v719_v25  ;;  %v831_v29 = vadd.f32 %v830_v19, %v812_v18  ;;  %v924_v50 = vstv %s2151_s25 }
  0x3b   : > { %s2165_s16 = sld [smem:[#allocation3 + $0x32]]  ;;  %v738_v31 = vstv %s1770_s26  ;;  %v925_v59 = vmul.f32 0.0, %v924_v50 }
  0x3c   : > { %s2168_s19 = sld [smem:[#allocation3 + $0x36]]  ;;  %v721_v34 = vadd.f32 %v720_v27, %v702_v26  ;;  %v739_v35 = vmul.f32 0.0, %v738_v31  ;;  %v850_v41 = vadd.f32 %v849_v30, %v831_v29  ;;  %v943_v14 = vstv %s2155_s27 }
  0x3d   : > { %s2170_s21 = sld [smem:[#allocation3 + $0x3a]]  ;;  %v757_v37 = vstv %s1774_s28  ;;  %v944_v29 = vmul.f32 0.0, %v943_v14 }
  0x3e   : > { %s2173_s12 = sld [smem:[#allocation3 + $0x3e]]  ;;  %v740_v38 = vadd.f32 %v739_v35, %v721_v34  ;;  %v758_v39 = vmul.f32 0.0, %v757_v37  ;;  %v869_v53 = vadd.f32 %v868_v42, %v850_v41  ;;  %v962_v34 = vstv %s2158_s29 }
  0x3f   : > { %s2175_s23 = sld [smem:[#allocation3 + $0x42]]  ;;  %v776_v43 = vstv %s1778_s11 }
  0x40   : > { %s2177_s0 = sld [smem:[#allocation3 + $0x46]]  ;;  %v759_v46 = vadd.f32 %v758_v39, %v740_v38  ;;  %v777_v47 = vmul.f32 0.0, %v776_v43  ;;  %v795_v48 = vstv %s2163_s30  ;;  %v888_v2 = vadd.f32 %v887_v54, %v869_v53 }
  0x41   : > { %s1732_s26 = sld [smem:[#allocation3 + $0x3]]  ;;  %v796_v52 = vmul.f32 0.0, %v795_v48  ;;  %v814_v55 = vstv %s2165_s16 }
  0x42   : > { %s1737_s18 = sld [smem:[#allocation3 + $0x7]]  ;;  %v778_v51 = vadd.f32 %v777_v47, %v759_v46  ;;  %v815_v57 = vmul.f32 0.0, %v814_v55  ;;  %v833_v60 = vstv %s2168_s19  ;;  %v907_v20 = vadd.f32 %v906_v58, %v888_v2 }
  0x43   : > { %s1742_s1 = sld [smem:[#allocation3 + $0xb]]  ;;  %v834_v63 = vmul.f32 0.0, %v833_v60  ;;  %v852_v3 = vstv %s2170_s21 }
  0x44   : > { %s2183_s28 = sld [smem:[#allocation3 + $0xf]]  ;;  %v797_v56 = vadd.f32 %v796_v52, %v778_v51  ;;  %v853_v7 = vmul.f32 0.0, %v852_v3  ;;  %v871_v10 = vstv %s2173_s12  ;;  %v926_v39 = vadd.f32 %v925_v59, %v907_v20 }
  0x45   : > { %s2186_s2 = sld [smem:[#allocation3 + $0x13]]  ;;  %v872_v18 = vmul.f32 0.0, %v871_v10  ;;  %v890_v21 = vstv %s2175_s23  ;;  %v963_v51 = vmul.f32 0.0, %v962_v34 }
  0x46   : > { %s2188_s20 = sld [smem:[#allocation3 + $0x17]]  ;;  %v816_v62 = vadd.f32 %v815_v57, %v797_v56  ;;  %v891_v26 = vmul.f32 0.0, %v890_v21  ;;  %v909_v30 = vstv %s2177_s0  ;;  %v945_v53 = vadd.f32 %v944_v29, %v926_v39 }
  0x47   : > { %v590_v61 = vstv %s1732_s26  ;;  %s2191_s22 = sld [smem:[#allocation3 + $0x1b]]  ;;  %v910_v37 = vmul.f32 0.0, %v909_v30 }
  0x48   : > { %v591_v0 = vmul.f32 %v2106_v16, %v590_v61  ;;  %v609_v1 = vstv %s1737_s18  ;;  %s2194_s25 = sld [smem:[#allocation3 + $0x1f]]  ;;  %v835_v6 = vadd.f32 %v834_v63, %v816_v62 }
  0x49   : > { %s2197_s11 = sld [smem:[#allocation3 + $0x4a]]  ;;  %v610_v4 = vmul.f32 %v2108_v17, %v609_v1  ;;  %v628_v5 = vstv %s1742_s1  ;;  %v964_v1 = vadd.f32 %v963_v51, %v945_v53 }
  0x4a   : > { %v629_v8 = vmul.f32 %v2112_v24, %v628_v5  ;;  %v647_v9 = vstv %s2183_s28  ;;  %s2202_s30 = sld [smem:[#allocation3 + $0x23]]  ;;  %v854_v15 = vadd.f32 %v853_v7, %v835_v6 }
  0x4b   : > { %s2205_s16 = sld [smem:[#allocation3 + $0x4e]]  ;;  %v611_v11 = vadd.f32 %v610_v4, %v591_v0  ;;  %v648_v12 = vmul.f32 %v2120_v28, %v647_v9  ;;  %v666_v13 = vstv %s2186_s2 }
  0x4c   : > { %v685_v19 = vstv %s2188_s20  ;;  %s2211_s1 = sld [smem:[#allocation3 + $0x27]]  ;;  %v667_v23 = vmul.f32 %v2123_v32, %v666_v13  ;;  %v873_v25 = vadd.f32 %v872_v18, %v854_v15 }
  0x4d   : > { %s2213_s19 = sld [smem:[#allocation3 + $0x55]]  ;;  %v630_v22 = vadd.f32 %v629_v8, %v611_v11  ;;  %v704_v27 = vstv %s2191_s22  ;;  %v686_v33 = vmul.f32 %v2126_v36, %v685_v19 }
  0x4e   : > { %s2218_s2 = sld [smem:[#allocation3 + $0x2b]]  ;;  %v892_v35 = vadd.f32 %v891_v26, %v873_v25  ;;  %v723_v38 = vstv %s2194_s25  ;;  %v705_v43 = vmul.f32 %v2129_v40, %v704_v27 }
  0x4f   : > { %s2221_s27 = sld [smem:[#allocation3 + $0x52]]  ;;  %v649_v31 = vadd.f32 %v648_v12, %v630_v22  ;;  %v928_v41 = vstv %s2197_s11  ;;  %v724_v50 = vmul.f32 %v2132_v44, %v723_v38 }
  0x50   : > { %s2226_s21 = sld [smem:[#allocation3 + $0x2f]]  ;;  %v911_v45 = vadd.f32 %v910_v37, %v892_v35  ;;  %v929_v46 = vmul.f32 0.0, %v928_v41  ;;  %v742_v47 = vstv %s2202_s30 }
  0x51   : > { %s2228_s12 = sld [smem:[#allocation3 + $0x59]]  ;;  %v668_v42 = vadd.f32 %v667_v23, %v649_v31  ;;  %v947_v48 = vstv %s2205_s16  ;;  %v743_v56 = vmul.f32 0.0, %v742_v47 }
  0x52   : > { %s2233_s0 = sld [smem:[#allocation3 + $0x33]]  ;;  %v761_v52 = vstv %s2211_s1  ;;  %v930_v57 = vadd.f32 %v929_v46, %v911_v45  ;;  %v948_v58 = vmul.f32 0.0, %v947_v48 }
  0x53   : > { %s2236_s29 = sld [smem:[#allocation3 + $0x56]]  ;;  %v687_v49 = vadd.f32 %v686_v33, %v668_v42  ;;  %v981_v54 = vstv %s2213_s19  ;;  %v762_v62 = vmul.f32 0.0, %v761_v52 }
  0x54   : > { %s2240_s23 = sld [smem:[#allocation3 + $0x37]]  ;;  %v780_v59 = vstv %s2218_s2  ;;  %v982_v63 = vmul.f32 0.0, %v981_v54  ;;  %v949_v5 = vadd.f32 %v948_v58, %v930_v57 }
  0x55   : > { %s2243_s26 = sld [smem:[#allocation3 + $0x5d]]  ;;  %v706_v55 = vadd.f32 %v705_v43, %v687_v49  ;;  %v966_v60 = vstv %s2221_s27  ;;  %v781_v4 = vmul.f32 0.0, %v780_v59 }
  0x56   : > { %s2246_s18 = sld [smem:[#allocation3 + $0x3b]]  ;;  %v799_v0 = vstv %s2226_s21  ;;  %v967_v6 = vmul.f32 0.0, %v966_v60  ;;  %v983_v13 = vadd.f32 %v982_v63, %v964_v1 }
  0x57   : > { %s2249_s28 = sld [smem:[#allocation3 + $0x5a]]  ;;  %v725_v61 = vadd.f32 %v724_v50, %v706_v55  ;;  %v1000_v2 = vstv %s2228_s12  ;;  %v800_v10 = vmul.f32 0.0, %v799_v0 }
  0x58   : > { %s2252_s20 = sld [smem:[#allocation3 + $0x3f]]  ;;  %v818_v7 = vstv %s2233_s0  ;;  %v1001_v11 = vmul.f32 0.0, %v1000_v2  ;;  %v968_v19 = vadd.f32 %v967_v6, %v949_v5 }
  0x59   : > { %s2255_s22 = sld [smem:[#allocation3 + $0x61]]  ;;  %v744_v3 = vadd.f32 %v743_v56, %v725_v61  ;;  %v985_v8 = vstv %s2236_s29  ;;  %v819_v18 = vmul.f32 0.0, %v818_v7 }
  0x5a   : > { %s2258_s25 = sld [smem:[#allocation3 + $0x43]]  ;;  %v837_v12 = vstv %s2240_s23  ;;  %v986_v20 = vmul.f32 0.0, %v985_v8  ;;  %v1002_v29 = vadd.f32 %v1001_v11, %v983_v13 }
  0x5b   : > { %s2261_s11 = sld [smem:[#allocation3 + $0x5e]]  ;;  %v763_v9 = vadd.f32 %v762_v62, %v744_v3  ;;  %v1019_v14 = vstv %s2243_s26  ;;  %v838_v25 = vmul.f32 0.0, %v837_v12 }
  0x5c   : > { %s2264_s30 = sld [smem:[#allocation3 + $0x47]]  ;;  %v856_v21 = vstv %s2246_s18  ;;  %v1020_v26 = vmul.f32 0.0, %v1019_v14  ;;  %v987_v34 = vadd.f32 %v986_v20, %v968_v19 }
  0x5d   : > { %s2267_s16 = sld [smem:[#allocation3 + $0x65]]  ;;  %v782_v15 = vadd.f32 %v781_v4, %v763_v9  ;;  %v1004_v22 = vstv %s2249_s28  ;;  %v857_v33 = vmul.f32 0.0, %v856_v21 }
  0x5e   : > { %s2270_s1 = sld [smem:[#allocation3 + $0x4b]]  ;;  %v875_v27 = vstv %s2252_s20  ;;  %v1005_v35 = vmul.f32 0.0, %v1004_v22  ;;  %v1021_v45 = vadd.f32 %v1020_v26, %v1002_v29 }
  0x5f   : > { %s2273_s19 = sld [smem:[#allocation3 + $0x62]]  ;;  %v801_v23 = vadd.f32 %v800_v10, %v782_v15  ;;  %v1038_v30 = vstv %s2255_s22  ;;  %v876_v41 = vmul.f32 0.0, %v875_v27 }
  0x60   : > { %s2276_s2 = sld [smem:[#allocation3 + $0x4f]]  ;;  %v894_v37 = vstv %s2258_s25  ;;  %v1039_v42 = vmul.f32 0.0, %v1038_v30  ;;  %v1006_v49 = vadd.f32 %v1005_v35, %v987_v34 }
  0x61   : > { %s2279_s27 = sld [smem:[#allocation3 + $0x69]]  ;;  %v820_v31 = vadd.f32 %v819_v18, %v801_v23  ;;  %v1023_v38 = vstv %s2261_s11  ;;  %v895_v48 = vmul.f32 0.0, %v894_v37 }
  0x62   : > { %s2282_s21 = sld [smem:[#allocation3 + $0x53]]  ;;  %v913_v43 = vstv %s2264_s30  ;;  %v1024_v50 = vmul.f32 0.0, %v1023_v38  ;;  %v1040_v57 = vadd.f32 %v1039_v42, %v1021_v45 }
  0x63   : > { %s2285_s12 = sld [smem:[#allocation3 + $0x66]]  ;;  %v839_v39 = vadd.f32 %v838_v25, %v820_v31  ;;  %v1057_v46 = vstv %s2267_s16  ;;  %v914_v54 = vmul.f32 0.0, %v913_v43 }
  0x64   : > { %s2288_s0 = sld [smem:[#allocation3 + $0x57]]  ;;  %v932_v51 = vstv %s2270_s1  ;;  %v1058_v55 = vmul.f32 0.0, %v1057_v46  ;;  %v1025_v61 = vadd.f32 %v1024_v50, %v1006_v49 }
  0x65   : > { %s2291_s29 = sld [smem:[#allocation3 + $0x6d]]  ;;  %v858_v47 = vadd.f32 %v857_v33, %v839_v39  ;;  %v1042_v52 = vstv %s2273_s19  ;;  %v933_v60 = vmul.f32 0.0, %v932_v51 }
  0x66   : > { %s2294_s23 = sld [smem:[#allocation3 + $0x5b]]  ;;  %v951_v56 = vstv %s2276_s2  ;;  %v1043_v62 = vmul.f32 0.0, %v1042_v52  ;;  %v1059_v5 = vadd.f32 %v1058_v55, %v1040_v57 }
  0x67   : > { %s2297_s26 = sld [smem:[#allocation3 + $0x6a]]  ;;  %v877_v53 = vadd.f32 %v876_v41, %v858_v47  ;;  %v1076_v58 = vstv %s2279_s27  ;;  %v952_v2 = vmul.f32 0.0, %v951_v56 }
  0x68   : > { %s2300_s18 = sld [smem:[#allocation3 + $0x5f]]  ;;  %v970_v63 = vstv %s2282_s21  ;;  %v1077_v3 = vmul.f32 0.0, %v1076_v58  ;;  %v1044_v9 = vadd.f32 %v1043_v62, %v1025_v61 }
  0x69   : > { %s2303_s28 = sld [smem:[#allocation3 + $0x71]]  ;;  %v896_v59 = vadd.f32 %v895_v48, %v877_v53  ;;  %v1061_v0 = vstv %s2285_s12  ;;  %v971_v8 = vmul.f32 0.0, %v970_v63 }
  0x6a   : > { %s2306_s20 = sld [smem:[#allocation3 + $0x63]]  ;;  %v989_v4 = vstv %s2288_s0  ;;  %v1062_v10 = vmul.f32 0.0, %v1061_v0  ;;  %v1078_v19 = vadd.f32 %v1077_v3, %v1059_v5 }
  0x6b   : > { %s2309_s22 = sld [smem:[#allocation3 + $0x6e]]  ;;  %v915_v1 = vadd.f32 %v914_v54, %v896_v59  ;;  %v1095_v6 = vstv %s2291_s29  ;;  %v990_v14 = vmul.f32 0.0, %v989_v4 }
  0x6c   : > { %s2312_s25 = sld [smem:[#allocation3 + $0x67]]  ;;  %v1008_v11 = vstv %s2294_s23  ;;  %v1096_v15 = vmul.f32 0.0, %v1095_v6  ;;  %v1063_v23 = vadd.f32 %v1062_v10, %v1044_v9 }
  0x6d   : > { %s2315_s11 = sld [smem:[#allocation3 + $0x75]]  ;;  %v934_v7 = vadd.f32 %v933_v60, %v915_v1  ;;  %v1080_v12 = vstv %s2297_s26  ;;  %v1009_v22 = vmul.f32 0.0, %v1008_v11 }
  0x6e   : > { %s2318_s30 = sld [smem:[#allocation3 + $0x6b]]  ;;  %v1027_v18 = vstv %s2300_s18  ;;  %v1081_v25 = vmul.f32 0.0, %v1080_v12  ;;  %v1097_v34 = vadd.f32 %v1096_v15, %v1078_v19 }
  0x6f   : > { %s2321_s16 = sld [smem:[#allocation3 + $0x72]]  ;;  %v953_v13 = vadd.f32 %v952_v2, %v934_v7  ;;  %v1114_v20 = vstv %s2303_s28  ;;  %v1028_v30 = vmul.f32 0.0, %v1027_v18 }
  0x70   : > { %s2324_s1 = sld [smem:[#allocation3 + $0x6f]]  ;;  %v1046_v26 = vstv %s2306_s20  ;;  %v1115_v31 = vmul.f32 0.0, %v1114_v20  ;;  %v1082_v39 = vadd.f32 %v1081_v25, %v1063_v23 }
  0x71   : > { %s2327_s19 = sld [smem:[#allocation3 + $0x79]]  ;;  %v972_v21 = vadd.f32 %v971_v8, %v953_v13  ;;  %v1099_v27 = vstv %s2309_s22  ;;  %v1047_v38 = vmul.f32 0.0, %v1046_v26 }
  0x72   : > { %s2330_s2 = sld [smem:[#allocation3 + $0x73]]  ;;  %v1065_v33 = vstv %s2312_s25  ;;  %v1100_v41 = vmul.f32 0.0, %v1099_v27  ;;  %v1116_v49 = vadd.f32 %v1115_v31, %v1097_v34 }
  0x73   : > { %s2333_s27 = sld [smem:[#allocation3 + $0x76]]  ;;  %v991_v29 = vadd.f32 %v990_v14, %v972_v21  ;;  %v1133_v35 = vstv %s2315_s11  ;;  %v1066_v46 = vmul.f32 0.0, %v1065_v33 }
  0x74   : > { %s2337_s21 = sld [smem:[#allocation3 + $0x77]]  ;;  %v1084_v42 = vstv %s2318_s30  ;;  %v1134_v47 = vmul.f32 0.0, %v1133_v35  ;;  %v1101_v53 = vadd.f32 %v1100_v41, %v1082_v39 }
  0x75   : > { %v1010_v37 = vadd.f32 %v1009_v22, %v991_v29  ;;  %s2339_s12 = sld [smem:[#allocation3 + $0x7d]]  ;;  %v1118_v43 = vstv %s2321_s16  ;;  %v1085_v52 = vmul.f32 0.0, %v1084_v42 }
  0x76   : > { %s2343_s0 = sld [smem:[#allocation3 + $0x7a]]  ;;  %v1103_v48 = vstv %s2324_s1  ;;  %v1119_v54 = vmul.f32 0.0, %v1118_v43  ;;  %v1135_v60 = vadd.f32 %v1134_v47, %v1116_v49  ;;  %s2377_s1 = scalar_lea.vmem %s2547_s3, %s2088_s24 }
  0x77   : > { %v1029_v45 = vadd.f32 %v1028_v30, %v1010_v37  ;;  %s2346_s29 = sld [smem:[#allocation3 + $0x7b]]  ;;  %v1152_v50 = vstv %s2327_s19  ;;  %v1104_v58 = vmul.f32 0.0, %v1103_v48  ;;  %v538_v31 = vld [vmem:[%s2377_s1 + $0x4] sm:$0xf]  ;;  %v539_v48 = vld [vmem:[%s2377_s1 + $0x8] sm:$0xf] }
  0x78   : > { %s2349_s23 = sld [smem:[#allocation3 + $0x7e]]  ;;  %v1122_v55 = vstv %s2330_s2  ;;  %v1153_v59 = vmul.f32 0.0, %v1152_v50  ;;  %v1120_v1 = vadd.f32 %v1119_v54, %v1101_v53  ;;  %v540_v49 = vld [vmem:[%s2377_s1 + $0xc] sm:$0xf] }
  0x79   : > { %v1048_v51 = vadd.f32 %v1047_v38, %v1029_v45  ;;  %s2352_s26 = sld [smem:[#allocation3]]  ;;  %v1137_v56 = vstv %s2333_s27  ;;  %v1123_v62 = vmul.f32 0.0, %v1122_v55 }
  0x7a   : > { %s2355_s18 = sld [smem:[#allocation3 + $0x4]]  ;;  %v1141_v63 = vstv %s2337_s21  ;;  %v1138_v2 = vmul.f32 0.0, %v1137_v56  ;;  %v1154_v7 = vadd.f32 %v1153_v59, %v1135_v60 }
  0x7b   : > { %v1067_v57 = vadd.f32 %v1066_v46, %v1048_v51  ;;  %s2357_s28 = sld [smem:[#allocation3 + $0x7f]]  ;;  %v1171_v0 = vstv %s2339_s12  ;;  %v1142_v5 = vmul.f32 0.0, %v1141_v63  ;;  %v1386_v51 = vsel %vm1346_vm10, %v539_v48, 0 }
  0x7c   : > { %s1739_s20 = sld [smem:[#allocation3 + $0x8]]  ;;  %v1156_v3 = vstv %s2343_s0  ;;  %v1172_v8 = vmul.f32 0.0, %v1171_v0  ;;  %v1139_v10 = vadd.f32 %v1138_v2, %v1120_v1  ;;  %1395 = vmatpush.bf16.msrb.mxu2 %v1386_v51 }
  0x7d   : > { %v1086_v61 = vadd.f32 %v1085_v52, %v1067_v57  ;;  %s2362_s22 = sld [smem:[#allocation3 + $0xc]]  ;;  %v1160_v6 = vstv %s2346_s29  ;;  %v1157_v11 = vmul.f32 0.0, %v1156_v3  ;;  %v1405_v52 = vsel %vm1346_vm10, %v540_v49, 0 }
  0x7e   : > { %s2365_s25 = sld [smem:[#allocation3 + $0x10]]  ;;  %v1175_v12 = vstv %s2349_s23  ;;  %v1161_v13 = vmul.f32 0.0, %v1160_v6  ;;  %v1173_v22 = vadd.f32 %v1172_v8, %v1154_v7  ;;  %1414 = vmatpush.bf16.msrb.mxu3 %v1405_v52 }
  0x7f   : > { %v1105_v4 = vadd.f32 %v1104_v58, %v1086_v61  ;;  %v578_v14 = vstv %s2352_s26  ;;  %s2370_s11 = sld [smem:[#allocation3 + $0x14]]  ;;  %v1158_v25 = vadd.f32 %v1157_v11, %v1139_v10  ;;  %v1176_v29 = vmul.f32 0.0, %v1175_v12 }
  0x80   : > { %v597_v15 = vstv %s2355_s18  ;;  %v579_v20 = vmul.f32 %v2106_v16, %v578_v14  ;;  %s2381_s19 = sld [smem:[#allocation3 + $0x18]] }
  0x81   : > { %v1124_v9 = vadd.f32 %v1123_v62, %v1105_v4  ;;  %v1179_v19 = vstv %s2357_s28  ;;  %v598_v21 = vmul.f32 %v2108_v17, %v597_v15  ;;  %s2384_s2 = sld [smem:[#allocation3 + $0x1c]]  ;;  %v1367_v17 = vsel %vm1346_vm10, %v538_v31, 0 }
  0x82   : > { %v616_v23 = vstv %s1739_s20  ;;  %v1180_v30 = vmul.f32 0.0, %v1179_v19  ;;  %1376 = vmatpush.bf16.msrb.mxu1 %v1367_v17  ;;  %s2393_s24 = sld [smem:[#allocation3 + $0x20]]  ;;  %v1177_v43 = vadd.f32 %v1176_v29, %v1158_v25 }
  0x83   : > { %v1143_v18 = vadd.f32 %v1142_v5, %v1124_v9  ;;  %v599_v26 = vadd.f32 %v598_v21, %v579_v20  ;;  %v617_v27 = vmul.f32 %v2112_v24, %v616_v23  ;;  %v635_v33 = vstv %s2362_s22  ;;  %s2396_s27 = sld [smem:[#allocation3 + $0x24]] }
  0x84   : > { %v636_v37 = vmul.f32 %v2120_v28, %v635_v33  ;;  %v654_v24 = vstv %s2365_s25  ;;  %s2400_s21 = sld [smem:[#allocation3 + $0x28]] }
  0x85   : > { %v1162_v34 = vadd.f32 %v1161_v13, %v1143_v18  ;;  %v618_v35 = vadd.f32 %v617_v27, %v599_v26  ;;  %v655_v41 = vmul.f32 %v2123_v32, %v654_v24  ;;  %v673_v45 = vstv %s2370_s11  ;;  %s2403_s12 = sld [smem:[#allocation3 + $0x2c]] }
  0x86   : > { %v674_v47 = vmul.f32 %v2126_v36, %v673_v45  ;;  %v692_v50 = vstv %s2381_s19  ;;  %s2417_s0 = sld [smem:[#allocation3 + $0x30]] }
  0x87   : > { %v637_v39 = vadd.f32 %v636_v37, %v618_v35  ;;  %v1181_v28 = vadd.f32 %v1180_v30, %v1162_v34  ;;  %v693_v54 = vmul.f32 %v2129_v40, %v692_v50  ;;  %v711_v36 = vstv %s2384_s2  ;;  %s2423_s29 = sld [smem:[#allocation3 + $0x34]] }
  0x88   : > { %v712_v60 = vmul.f32 %v2132_v44, %v711_v36  ;;  %v730_v40 = vstv %s2393_s24  ;;  %s2427_s23 = sld [smem:[#allocation3 + $0x38]] }
  0x89   : > { %v656_v46 = vadd.f32 %v655_v41, %v637_v39  ;;  %v731_v0 = vmul.f32 0.0, %v730_v40  ;;  %v749_v1 = vstv %s2396_s27  ;;  %s2429_s26 = sld [smem:[#allocation3 + $0x3c]] }
  0x8a   : > { %v750_v3 = vmul.f32 0.0, %v749_v1  ;;  %v768_v4 = vstv %s2400_s21  ;;  %s2431_s18 = sld [smem:[#allocation3 + $0x40]] }
  0x8b   : > { %v675_v53 = vadd.f32 %v674_v47, %v656_v46  ;;  %v787_v6 = vstv %s2403_s12  ;;  %v769_v7 = vmul.f32 0.0, %v768_v4  ;;  %s2433_s28 = sld [smem:[#allocation3 + $0x44]] }
  0x8c   : > { %v788_v11 = vmul.f32 0.0, %v787_v6  ;;  %v806_v12 = vstv %s2417_s0  ;;  %s2436_s20 = sld [smem:[#allocation3 + $0x48]] }
  0x8d   : > { %v694_v59 = vadd.f32 %v693_v54, %v675_v53  ;;  %s2438_s22 = sld [smem:[#allocation3 + $0x4c]]  ;;  %v825_v19 = vstv %s2423_s29 }
  0x8e   : > { %v844_v25 = vstv %s2427_s23  ;;  %v826_v27 = vmul.f32 0.0, %v825_v19  ;;  %s2452_s25 = sld [smem:[#allocation3 + $0x50]]  ;;  %s2001_s23 = smov 16  }
  0x8f   : > { %v713_v63 = vadd.f32 %v712_v60, %v694_v59  ;;  %v863_v29 = vstv %s2429_s26  ;;  %v845_v34 = vmul.f32 0.0, %v844_v25  ;;  %s2459_s11 = sld [smem:[#allocation3 + $0x54]]  ;;  %s2002_s26 = smov 24  }
  0x90   : > { %v882_v17 = vstv %s2431_s18  ;;  %v864_v35 = vmul.f32 0.0, %v863_v29  ;;  %s2464_s30 = sld [smem:[#allocation3 + $0x58]]  ;;  %s1726_s18 = sshll.u32 %s2568_s13, 2 }
  0x91   : > { %v732_v44 = vadd.f32 %v731_v0, %v713_v63  ;;  %v901_v37 = vstv %s2433_s28  ;;  %v883_v46 = vmul.f32 0.0, %v882_v17  ;;  %s2473_s16 = sld [smem:[#allocation3 + $0x5c]] }
  0x92   : > { %v920_v24 = vstv %s2436_s20  ;;  %s2478_s19 = sld [smem:[#allocation3 + $0x60]] }
  0x93   : > { %v751_v10 = vadd.f32 %v750_v3, %v732_v44  ;;  %v921_v52 = vmul.f32 0.0, %v920_v24  ;;  %s2484_s2 = sld [smem:[#allocation3 + $0x64]] }
  0x94   : > { %v958_v4 = vstv %s2452_s25  ;;  %s1840_s24 = sld [smem:[#allocation3 + $0x68]] }
  0x95   : > { %v770_v14 = vadd.f32 %v769_v7, %v751_v10  ;;  %s1844_s27 = sld [smem:[#allocation3 + $0x6c]] }
  0x96   : > { %s1848_s21 = sld [smem:[#allocation3 + $0x70]] }
  0x97   : > { %v789_v21 = vadd.f32 %v788_v11, %v770_v14  ;;  %v1015_v25 = vstv %s2473_s16  ;;  %s1852_s12 = sld [smem:[#allocation3 + $0x74]] }
  0x98   : > { %s1856_s0 = sld [smem:[#allocation3 + $0x78]] }
  0x99   : > { %s1860_s29 = sld [smem:[#allocation3 + $0x7c]] }
  0x9b   : > { %v1091_v24 = vstv %s1844_s27 }
  0x9c   : > { %v1092_v45 = vmul.f32 0.0, %v1091_v24 }
  0xa3   : > { %v1217_v16 = vpop.f32.mrf.mxu1 }
  0xa4   : > { %v2390_v38 = vadd.f32 %v1217_v16, %v1173_v22  ;;  %v807_v22 = vmul.f32 0.0, %v806_v12  ;;  %v2467_v59 = vpop.f32.mrf.mxu0  ;;  %v959_v12 = vmul.f32 0.0, %v958_v4 }
  0xa6   : > { %v1869_v42 = vmul.f32 -1.442695, %v2390_v38  ;;  %v808_v16 = vadd.f32 %v807_v22, %v789_v21 }
  0xa8   : > { %1935 = vpow2.f32 %v1869_v42  ;;  %v827_v41 = vadd.f32 %v826_v27, %v808_v16  ;;  %v939_v42 = vstv %s2438_s22  ;;  %v1016_v16 = vmul.f32 0.0, %v1015_v25  ;;  %s513_s22 = scalar_lea.vmem %s2548_s4, %s1726_s18 }
  0xa9   : > { %v1236_v32 = vpop.f32.mrf.mxu2  ;;  %v940_v53 = vmul.f32 0.0, %v939_v42  ;;  %v1110_v42 = vstv %s1848_s21  ;;  %s1727_s21 = sshll.u32 %s2568_s13, 3 }
  0xaa   : > { %v2411_v55 = vadd.f32 %v1236_v32, %v1177_v43  ;;  %v1255_v56 = vpop.f32.mrf.mxu3  ;;  %v846_v50 = vadd.f32 %v845_v34, %v827_v41  ;;  %v902_v32 = vmul.f32 0.0, %v901_v37  ;;  %s527_s28 = scalar_lea.vmem %s2554_s10, %s1727_s21 }
  0xab   : > { %v2414_v57 = vadd.f32 %v1255_v56, %v1181_v28  ;;  %v1219_v58 = vpop.f32.mrf.mxu1 }
  0xac   : > { %v1870_v61 = vmul.f32 -1.442695, %v2411_v55  ;;  %v865_v58 = vadd.f32 %v864_v35, %v846_v50  ;;  %v1200_v22 = vpop.f32.mrf.mxu0  ;;  %v1072_v35 = vstv %s1840_s24 }
  0xad   : > { %v1871_v62 = vmul.f32 -1.442695, %v2414_v57  ;;  %v1073_v41 = vmul.f32 0.0, %v1072_v35 }
  0xae   : > { %v1936_v2 = vpop.eup %1935  ;;  %1937 = vpow2.f32 %v1870_v61  ;;  %v884_v1 = vadd.f32 %v883_v46, %v865_v58 }
  0xaf   : > { %v1272_v5 = vadd.f32 1.0, %v1936_v2  ;;  %1939 = vpow2.f32 %v1871_v62 }
  0xb0   : > { %v903_v6 = vadd.f32 %v902_v32, %v884_v1  ;;  %v1167_v32 = vstv %s1860_s29  ;;  %s520_s29 = scalar_lea.vmem %s2549_s5, %s1727_s21 }
  0xb1   : > { %1941 = vrcp.f32 %v1272_v5  ;;  %v1238_v8 = vpop.f32.mrf.mxu2  ;;  %v1299_v30 = vand.u32 2147483647, %v1272_v5  ;;  %v1301_v31 = vand.u32 2147483648, %v1272_v5  ;;  %vm1295_vm12 = vweird.f32 %v1272_v5 }
  0xb2   : > { %v1257_v9 = vpop.f32.mrf.mxu3  ;;  %v977_v8 = vstv %s2459_s11  ;;  %v922_v11 = vadd.f32 %v921_v52, %v903_v6 }
  0xb3   : > { %vm2455_vm13 = vcmp.eq.f32.partialorder %v1299_v30, 8.507059e+37  ;;  %v1302_v28 = vor.u32 1.1754944e-38, %v1301_v31  ;;  %v978_v21 = vmul.f32 0.0, %v977_v8  ;;  %v1034_v31 = vstv %s2478_s19 }
  0xb4   : > { %v1938_v13 = vpop.eup %1937  ;;  %v1035_v17 = vmul.f32 0.0, %v1034_v31 }
  0xb5   : > { %v1940_v15 = vpop.eup %1939  ;;  %v2440_v18 = vadd.f32 1.0, %v1938_v13 }
  0xb6   : > { %v2443_v20 = vadd.f32 1.0, %v1940_v15  ;;  %v996_v15 = vstv %s2464_s30 }
  0xb7   : > { %v1942_v23 = vpop.eup %1941  ;;  %1943 = vrcp.f32 %v2440_v18  ;;  %vm1310_vm15 = vweird.f32 %v2440_v18  ;;  %v1314_v36 = vand.u32 2147483647, %v2440_v18  ;;  %v1316_v61 = vand.u32 2147483648, %v2440_v18 }
  0xb8   : > { %v1291_v26 = vmul.f32 %v1942_v23, %v1272_v5  ;;  %1945 = vrcp.f32 %v2443_v20  ;;  %vm1296_vm11 = vweird.f32 %v1942_v23  ;;  %v1331_v62 = vand.u32 2147483648, %v2443_v20 }
  0xb9   : > { %vm1297_vm14 = vmor %vm1295_vm12, %vm1296_vm11  ;;  %v1329_v3 = vand.u32 2147483647, %v2443_v20  ;;  %vm1325_vm3 = vweird.f32 %v2443_v20  ;;  %vm1315_vm5 = vcmp.eq.f32.partialorder %v1314_v36, 8.507059e+37  ;;  %v997_v29 = vmul.f32 0.0, %v996_v15 }
  0xba   : > { %v1292_v33 = vsub.f32 1.0, %v1291_v26  ;;  %v1332_v10 = vor.u32 1.1754944e-38, %v1331_v62 }
  0xbb   : > { %vm1330_vm7 = vcmp.eq.f32.partialorder %v1329_v3, 8.507059e+37 }
  0xbc   : > { %v1293_v39 = vmul.f32 %v1942_v23, %v1292_v33 }
  0xbd   : > { %v1944_v43 = vpop.eup %1943 }
  0xbe   : > { %v1946_v47 = vpop.eup %1945  ;;  %v1294_v48 = vadd.f32 %v1942_v23, %v1293_v39  ;;  %v1306_v49 = vmul.f32 %v1944_v43, %v2440_v18  ;;  %vm1311_vm1 = vweird.f32 %v1944_v43 }
  0xbf   : > { %v1321_v51 = vmul.f32 %v1946_v47, %v2443_v20  ;;  %vm1326_vm2 = vweird.f32 %v1946_v47  ;;  %vm1312_vm4 = vmor %vm1310_vm15, %vm1311_vm1  ;;  %v941_v20 = vadd.f32 %v940_v53, %v922_v11 }
  0xc0   : > { %v1298_v54 = vsel %vm1297_vm14, %v1942_v23, %v1294_v48  ;;  %v1307_v56 = vsub.f32 1.0, %v1306_v49  ;;  %vm1327_vm6 = vmor %vm1325_vm3, %vm1326_vm2  ;;  %v1148_v48 = vstv %s1856_s0  ;;  %vm1474_vm14 = vcmask 261120  }
  0xc1   : > { %v1303_v60 = vsel %vm2455_vm13, %v1302_v28, %v1298_v54  ;;  %v1322_v40 = vsub.f32 1.0, %v1321_v51  ;;  %v960_v27 = vadd.f32 %v959_v12, %v941_v20  ;;  %v1129_v28 = vstv %s1852_s12 }
  0xc2   : > { %v1336_v63 = vmul.f32 %v1303_v60, %v2390_v38  ;;  %v1308_v0 = vmul.f32 %v1944_v43, %v1307_v56  ;;  %v1317_v38 = vor.u32 1.1754944e-38, %v1316_v61  ;;  %v1130_v50 = vmul.f32 0.0, %v1129_v28  ;;  %v537_v60 = vld [vmem:[%s2377_s1] sm:$0xf]  ;;  %s2000_s1 = smov 8  }
  0xc3   : > { %v1323_v2 = vmul.f32 %v1946_v47, %v1322_v40  ;;  %v979_v33 = vadd.f32 %v978_v21, %v960_v27  ;;  %v1149_v52 = vmul.f32 0.0, %v1148_v48  ;;  %v1168_v54 = vmul.f32 0.0, %v1167_v32 }
  0xc4   : > { %v1340_v5 = vpack.c.bf16 %v1336_v63, %v1336_v63  ;;  %v1309_v44 = vadd.f32 %v1944_v43, %v1308_v0  ;;  %v1348_v61 = vsel %vm1346_vm10, %v537_v60, 0  ;;  %vm1467_vm10 = vcmask 130048  }
  0xc5   : > { %v1324_v7 = vadd.f32 %v1946_v47, %v1323_v2  ;;  %v998_v34 = vadd.f32 %v997_v29, %v979_v33  ;;  %1357 = vmatpush.bf16.msrb.mxu0 %v1348_v61  ;;  %vm1469_vm13 = vcmask 195584   ;;  %v1933_v61 = vld [vmem:[%s2551_s7] ss:$0 sm:$0xff] }
  0xc6   : > { %v1313_v9 = vsel %vm1312_vm4, %v1944_v43, %v1309_v44  ;;  %1873 = vmatmul.msk.bf16.vlgmr.msrb.gmra.mxu1 %vm1182_vm0, %v1340_v5 }
  0xc7   : > { %v1318_v13 = vsel %vm1315_vm5, %v1317_v38, %v1313_v9  ;;  %v1328_v14 = vsel %vm1327_vm6, %v1946_v47, %v1324_v7  ;;  %v1111_v47 = vmul.f32 0.0, %v1110_v42 }
  0xc8   : > { %v1337_v18 = vmul.f32 %v1318_v13, %v2411_v55  ;;  %v1333_v19 = vsel %vm1330_vm7, %v1332_v10, %v1328_v14  ;;  %v1053_v55 = vstv %s2484_s2 }
  0xc9   : > { %v1338_v23 = vmul.f32 %v1333_v19, %v2414_v57  ;;  %v1017_v57 = vadd.f32 %v1016_v16, %v998_v34  ;;  %v1054_v37 = vmul.f32 0.0, %v1053_v55  ;;  %v2003_v34 = vmov 32.0  }
  0xca   : > { %v1341_v26 = vpack.c.bf16 %v1337_v18, %v1337_v18 }
  0xcb   : > { %v1342_v30 = vpack.c.bf16 %v1338_v23, %v1338_v23  ;;  %v1036_v39 = vadd.f32 %v1035_v17, %v1017_v57  ;;  %v1471_v23 = vld [vmem:[%s513_s22] sm:$0xf] }
  0xcc   : > { %1874 = vmatmul.msk.bf16.vlgmr.msrb.gmra.mxu2 %vm1182_vm0, %v1341_v26  ;;  %v1472_v26 = vunpack.c.l.bf16 %v1471_v23 }
  0xcd   : > { %1875 = vmatmul.msk.bf16.vlgmr.msrb.gmra.mxu3 %vm1182_vm0, %v1342_v30  ;;  %v1055_v43 = vadd.f32 %v1054_v37, %v1036_v39 }
  0xcf   : > { %v1074_v46 = vadd.f32 %v1073_v41, %v1055_v43 }
  0xd1   : > { %v1093_v49 = vadd.f32 %v1092_v45, %v1074_v46  ;;  %v1891_v46 = vld [vmem:[%s2552_s8 + $0x8] sm:$0xff] }
  0xd2   : > { %1544 = vmatpush.bf16.msra.mxu0 %v1891_v46 }
  0xd3   : > { %v1112_v51 = vadd.f32 %v1111_v47, %v1093_v49  ;;  %v1890_v47 = vld [vmem:[%s2552_s8] sm:$0xff] }
  0xd5   : > { %v1131_v53 = vadd.f32 %v1130_v50, %v1112_v51 }
  0xd6   : > { %1545 = vmatpush.bf16.msra.mxu0 %v1890_v47 }
  0xd7   : > { %v1150_v56 = vadd.f32 %v1149_v52, %v1131_v53 }
  0xd9   : > { %v1169_v36 = vadd.f32 %v1168_v54, %v1150_v56 }
  0xdb   : > { %v1199_v58 = vadd.f32 %v2467_v59, %v1169_v36  ;;  %v1932_v36 = vld [vmem:[%s2550_s6] ss:$0 sm:$0xff] }
  0xdd   : > { %v1868_v40 = vmul.f32 -1.442695, %v1199_v58 }
  0xdf   : > { %1947 = vpow2.f32 %v1868_v40 }
  0xe5   : > { %v1948_v62 = vpop.eup %1947 }
  0xe6   : > { %v1271_v63 = vadd.f32 1.0, %v1948_v62 }
  0xe8   : > { %1949 = vrcp.f32 %v1271_v63  ;;  %v1286_v2 = vand.u32 2147483648, %v1271_v63  ;;  %vm1280_vm8 = vweird.f32 %v1271_v63  ;;  %v1284_v4 = vand.u32 2147483647, %v1271_v63 }
  0xe9   : > { %1951 = vrcp.f32 %v2003_v34 }
  0xea   : > { %v1287_v44 = vor.u32 1.1754944e-38, %v1286_v2  ;;  %vm1285_vm12 = vcmp.eq.f32.partialorder %v1284_v4, 8.507059e+37  ;;  %v1551_v2 = vld [vmem:[%s520_s29] sm:$0xff] }
  0xee   : > { %v1950_v0 = vpop.eup %1949 }
  0xef   : > { %v1276_v1 = vmul.f32 %v1950_v0, %v1271_v63  ;;  %vm1281_vm9 = vweird.f32 %v1950_v0  ;;  %v1952_v17 = vpop.eup %1951 }
  0xf0   : > { %vm1282_vm11 = vmor %vm1280_vm8, %vm1281_vm9  ;;  %v1479_v35 = vmul.f32 32.0, %v1952_v17  ;;  %vm1483_vm15 = vweird.f32 %v1952_v17 }
  0xf1   : > { %v1277_v3 = vsub.f32 1.0, %v1276_v1 }
  0xf2   : > { %v1480_v57 = vsub.f32 1.0, %v1479_v35 }
  0xf3   : > { %v1278_v5 = vmul.f32 %v1950_v0, %v1277_v3 }
  0xf4   : > { %v1481_v37 = vmul.f32 %v1952_v17, %v1480_v57 }
  0xf5   : > { %v1279_v59 = vadd.f32 %v1950_v0, %v1278_v5 }
  0xf6   : > { %v1482_v24 = vadd.f32 %v1952_v17, %v1481_v37 }
  0xf7   : > { %v1283_v6 = vsel %vm1282_vm11, %v1950_v0, %v1279_v59  ;;  %v1934_v0 = vld [vmem:[%s2553_s9] ss:$0 sm:$0xff] }
  0xf8   : > { %v1288_v38 = vsel %vm1285_vm12, %v1287_v44, %v1283_v6  ;;  %v1484_v39 = vsel %vm1483_vm15, %v1952_v17, %v1482_v24 }
  0xf9   : > { %v1335_v7 = vmul.f32 %v1288_v38, %v1199_v58 }
  0xfb   : > { %v1339_v8 = vpack.c.bf16 %v1335_v7, %v1335_v7 }
  0xfd   : > { %1872 = vmatmul.msk.bf16.vlgmr.msrb.gmra.mxu0 %vm1182_vm0, %v1339_v8 }
 0x143   : > { %v1378_v9 = vpop.f32.mrf.mxu1 }
 0x144   : > { %1425 = vst.msk [vmem:[#allocation2 + $0x8] sm:$0xff] %vm1182_vm0, %v1378_v9 }
 0x14b   : > { %v1380_v10 = vpop.f32.mrf.mxu1  ;;  %v1449_v11 = vld [vmem:[#allocation2 + $0x8] sm:$0xff] }
 0x14c   : > { %1455 = vrot.lane.b32.xlu0 %v1449_v11, %s2000_s1 }
 0x14f   : > { %v1397_v12 = vpop.f32.mrf.mxu2 }
 0x150   : > { %1426 = vst.msk [vmem:[#allocation2 + $0x10] sm:$0xff] %vm1182_vm0, %v1397_v12  ;;  %v1416_v13 = vpop.f32.mrf.mxu3 }
 0x151   : > { %1427 = vst.msk [vmem:[#allocation2 + $0x18] sm:$0xff] %vm1182_vm0, %v1416_v13 }
 0x157   : > { %v1399_v14 = vpop.f32.mrf.mxu2  ;;  %v1451_v15 = vld [vmem:[#allocation2 + $0x10] sm:$0xff] }
 0x158   : > { %v1418_v18 = vpop.f32.mrf.mxu3  ;;  %v1453_v19 = vld [vmem:[#allocation2 + $0x18] sm:$0xff]  ;;  %1459 = vrot.lane.b32.xlu0 %v1451_v15, %s2001_s23 }
 0x159   : > { %1463 = vrot.lane.b32.xlu1 %v1453_v19, %s2002_s26 }
 0x17a   : > { %v1359_v20 = vpop.f32.mrf.mxu0 }
 0x17b   : > { %1424 = vst.msk [vmem:[#allocation2] sm:$0xff] %vm1182_vm0, %v1359_v20 }
 0x182   : > { %v1361_v21 = vpop.f32.mrf.mxu0  ;;  %v1447_v25 = vld [vmem:[#allocation2] sm:$0xff] }
 0x1be   : > { %v1456_v22 = vpop.permute.xlu0 %1455 }
 0x1bf   : > { %v1466_v27 = vsel %vm1182_vm0, %v1447_v25, %v1456_v22 }
 0x1ca   : > { %v1460_v29 = vpop.permute.xlu0 %1459 }
 0x1cb   : > { %v1464_v30 = vpop.permute.xlu1 %1463  ;;  %v1468_v31 = vsel %vm1467_vm10, %v1466_v27, %v1460_v29 }
 0x1cc   : > { %v1470_v33 = vsel %vm1469_vm13, %v1468_v31, %v1464_v30 }
 0x1cd   : > { %v1473_v16 = vmul.f32 %v1472_v26, %v1470_v33 }
 0x1cf   : > { %v1475_v55 = vsel %vm1474_vm14, %v1473_v16, 0.0 }
 0x1d0   : > { %1476 = vadd.xlane.f32.xlu1 %v1475_v55 }
 0x243   : > { %v1477_v41 = vpop.xlane.xlu1 %1476 }
 0x244   : > { %v1485_v42 = vmul.f32 %v1484_v39, %v1477_v41 }
 0x246   : > { %v1486_v43 = vsub.f32 %v1473_v16, %v1485_v42 }
 0x248   : > { %v1487_v45 = vmul.f32 %v1486_v43, %v1486_v43 }
 0x24a   : > { %v1488_v28 = vsel %vm1474_vm14, %v1487_v45, 0.0 }
 0x24b   : > { %1489 = vadd.xlane.f32.xlu2 %v1488_v28 }
 0x2be   : > { %v1490_v48 = vpop.xlane.xlu2 %1489 }
 0x2bf   : > { %v1491_v49 = vmul.f32 %v1490_v48, %v1484_v39 }
 0x2c1   : > { %v1492_v50 = vadd.f32 1e-05, %v1491_v49 }
 0x2c3   : > { %1953 = vrsqrt.f32 %v1492_v50  ;;  %vm1499_vm1 = vweird.f32 %v1492_v50 }
 0x2c9   : > { %v1954_v32 = vpop.eup %1953 }
 0x2ca   : > { %v1494_v51 = vmul.f32 %v1954_v32, %v1492_v50  ;;  %vm1500_vm0 = vweird.f32 %v1954_v32 }
 0x2cb   : > { %vm1501_vm2 = vmor %vm1499_vm1, %vm1500_vm0 }
 0x2cc   : > { %v1495_v52 = vmul.f32 %v1954_v32, %v1494_v51 }
 0x2ce   : > { %v1496_v53 = vmul.f32 0.5, %v1495_v52 }
 0x2d0   : > { %v1497_v54 = vsub.f32 1.5, %v1496_v53 }
 0x2d2   : > { %v1498_v56 = vmul.f32 %v1954_v32, %v1497_v54 }
 0x2d4   : > { %v1502_v58 = vsel %vm1501_vm2, %v1954_v32, %v1498_v56 }
 0x2d5   : > { %v1503_v60 = vmul.f32 %v1502_v58, %v1486_v43 }
 0x2d7   : > { %v1508_v40 = vmul.f32 %v1932_v36, %v1503_v60 }
 0x2d9   : > { %v1513_v62 = vadd.f32 %v1933_v61, %v1508_v40 }
 0x2db   : > { %v1514_v63 = vpack.c.bf16 %v1513_v62, %v1513_v62 }
 0x2dd   : > { %1884 = vmatmul.msk.bf16.vlgmr.msra.gmra.mxu0 %vm1474_vm14, %v1514_v63 }
 0x35a   : > { %v1547_v1 = vpop.f32.mrf.mxu0 }
 0x35b   : > { %v1548_v3 = vadd.f32 %v1934_v0, %v1547_v1 }
 0x35d   : > { %v1552_v4 = vadd.f32 %v1551_v2, %v1548_v3 }
 0x35f   : > { %1553 = vst.msk [vmem:[%s527_s28] sm:$0xff] %vm1474_vm14, %v1552_v4 }
 0x362   : > { %v1549_v5 = vpop.f32.mrf.mxu0 }
 0x363 PF: > { %s21_s15 = sadd.s32 1, %s1996_s15   ;;  %s2563_s13 = smov %s1992_s14 }
 0x364   : > { %p18_p8 = scmp.ge.s32.totalorder %s21_s15, 4   ;;  %s2564_s14 = smov %s2566_s17 }
 0x366   :  { %20 = sbr.rel (!%p18_p8) target bundleno = 6 (0x6), region = 122 }
 0x36b   :  { %1579 = vsyncpa [#allocation4], 1 }
 0x36c   :  { %1581 = vsyncpa [#allocation4 + $0x1], 1 }

// kernel: genrec_forward.7
= control target key start
LH: loop header
LB: loop body
LE: loop exit
PB: predicated region body
PF: predicated region fallthrough
CT: control target
= control target key end

     0   :  { %s2703_s0 = inlined_call_operand.vmem [shape: f32[128], index: 0, kind: input, shape index: {}]   ;;  %s2704_s1 = inlined_call_operand.vmem [shape: bf16[2,4,8,8], index: 1, kind: input, shape index: {}]   ;;  %s2705_s2 = inlined_call_operand.vmem [shape: bf16[2,4,8,8], index: 2, kind: input, shape index: {}]   ;;  %s2706_s3 = inlined_call_operand.vmem [shape: bf16[2,4,8,8], index: 3, kind: input, shape index: {}]   ;;  %s2707_s4 = inlined_call_operand.vmem [shape: bf16[2,8,32], index: 4, kind: input, shape index: {}]   ;;  %s2708_s5 = inlined_call_operand.vmem [shape: f32[2,8,32], index: 5, kind: input, shape index: {}]   ;;  %s2709_s6 = inlined_call_operand.vmem [shape: f32[1,32], index: 6, kind: input, shape index: {}]   ;;  %s2710_s7 = inlined_call_operand.vmem [shape: f32[1,32], index: 7, kind: input, shape index: {}]   ;;  %s2711_s8 = inlined_call_operand.vmem [shape: bf16[32,32], index: 8, kind: input, shape index: {}]   ;;  %s2712_s9 = inlined_call_operand.vmem [shape: f32[1,32], index: 9, kind: input, shape index: {}]   ;;  %s2713_s10 = inlined_call_operand.hbm [shape: f32[2,8,32], index: 10, kind: output, shape index: {}]  }
   0x1   :  { %2721 = sst [smem:[#allocation16_spill]] %s2703_s0 }
   0x2   :  { %2722 = sst [smem:[#allocation17_spill]] %s2704_s1 }
   0x3   :  { %2723 = sst [smem:[#allocation18_spill]] %s2705_s2 }
   0x4   :  { %15 = vsyncpa [#allocation5], 0 }
   0x5   :  { %16 = vsyncpa [#allocation4], 0 }
   0x6   :  { %18 = vsyncpa [#allocation4 + $0x1], 0  ;;  %s2155_s13 = smov 0   ;;  %s2157_s14 = smov 0  }
   0x7   :  { %s2159_s15 = smov 0   ;;  %s2161_s16 = smov 0  }
   0x8   :  { %s2163_s17 = smov 0   ;;  %s2165_s18 = smov 0  }
   0x9 LB: > { %2724 = sst [smem:[#allocation9_spill]] %s2072_s13  ;;  %s1720_s19 = sadd.s32 4294967295, %s2092_s18   ;;  %s2092_s18 = sphi %s2165_s18, %s24_s18   ;;  %s2088_s17 = sphi %s2163_s17, %s2744_s17   ;;  %s2084_s16 = sphi %s2161_s16, %s2743_s16   ;;  %s2080_s15 = sphi %s2159_s15, %s2742_s15   ;;  %s2076_s14 = sphi %s2157_s14, %s2746_s14   ;;  %s2072_s13 = sphi %s2155_s13, %s2745_s13  }
   0xa   : > { %2725 = sst [smem:[#allocation10_spill]] %s2080_s15  ;;  %s1721_s20 = sadd.s32 4294967294, %s2092_s18  }
   0xb   : > { %2726 = sst [smem:[#allocation11_spill]] %s2088_s17  ;;  %s43_s21 = sadd.s32 1, %s2088_s17 }
   0xc   : > { %2727 = sst [smem:[#allocation12_spill]] %s2092_s18  ;;  %s297_s22 = sadd.s32 1, %s2080_s15 }
   0xd   : > { %p45_p0 = scmp.ge.s32.totalorder %s43_s21, 2  ;;  %p307_p1 = scmp.ne.s32.totalorder %s2080_s15, %s2076_s14 }
   0xe   : > { %p308_p2 = scmp.eq.s32.totalorder %s1720_s19, 1  ;;  %p313_p3 = scmp.ne.s32.totalorder %s2076_s14, %s2072_s13 }
   0xf   : > { %s2748_s21 = smov (%p45_p0, %s43_s21), 0  ;;  %p314_p5 = scmp.eq.s32.totalorder %s1721_s20, 1 }
  0x10   : > { %2728 = sst [smem:[#allocation13_spill]] %s2748_s21  ;;  %p2195_p4 = por %p308_p2, %p307_p1 }
  0x11   : > { %s292_s24 = ssub.s32 %s2088_s17, %s2748_s21  ;;  %p1722_p6 = scmp.ge.s32.totalorder %s2092_s18, 1 }
  0x12   : > { %p295_p7 = scmp.eq.s32.totalorder %s292_s24, 0  ;;  %p2202_p8 = por %p314_p5, %p313_p3 }
  0x13   : > { %p321_p9 = scmp.lt.s32.totalorder %s2092_s18, 3  ;;  %p1915_p11 = scmp.eq.s32.totalorder %s1720_s19, 0 }
  0x14   : > { %s2730_s25 = scalar_select %p2202_p8, 1, 0 }
  0x15   : > { %s2208_s26 = scalar_select %p295_p7, %s2080_s15, %s297_s22  }
  0x16   : > { %2731 = sst [smem:[#allocation14_spill]] %s2730_s25  ;;  %p322_p10 = pnand %p1722_p6, %p321_p9 }
  0x17   : > { %2732 = sst [smem:[#allocation15_spill]] %s2208_s26  ;;  %s2094_s30 = smov [#allocation3]  }
  0x18   : > { %s2733_s0 = sld [smem:[#allocation16_spill]]  ;;  %p1907_p12 = pneg %p322_p10 }
  0x1a   : > { %p1908_p13 = pnand %p1915_p11, %p1907_p12 }
  0x1b   : > { %411 = sbr.rel (%p322_p10) target bundleno = 883 (0x373), region = 60 }
  0x1e   : > { %s333_s29 = sshll.u32 %s2733_s0, 4  ;;  %s334_s29 = int_to_ptr.vmem [resolvable:$true] %s333_s29 }
  0x1f   : > { %1910 = dma.vmem_to_smem (!%p1908_p13), %s334_s29, 16, %s2094_s30, [#allocation5]  }
  0x20   : > { %2063 = dma.done.wait (%p1915_p11), [#allocation5], 16  }
  0x21   : > { %2065 = vsyncadd (%p1915_p11), [#allocation5], 4294967280 }
  0x22   : > { %418 = sfence }
  0x23   : > { %p484_p0 = scmp.lt.s32.totalorder %s2084_s16, 1  ;;  %v536_v0 = vlaneseq  ;;  %s2214_s11 = sld [smem:[#allocation3 + $0x1]]  ;;  %vm1176_vm0 = vcmask 64512   ;;  %v2095_v15 = vmov 0.0   ;;  %vm1340_vm10 = vcmask 1043456  }
  0x24   : > { %s2216_s12 = sld [smem:[#allocation3 + $0x5]] }
  0x25   : > { %s2219_s19 = scalar_select %p484_p0, %s2084_s16, 1  ;;  %v537_v1 = vshrl.u32 %v536_v0, 7  ;;  %v542_v2 = vand.u32 127, %v536_v0 }
  0x26   : > { %s2734_s2 = sld [smem:[#allocation18_spill]] }
  0x27   : > { %s2222_s20 = sshll.u32 %s2219_s19, 4  ;;  %v545_v3 = vsub.s32 %v537_v1, %v542_v2  ;;  %s2228_s28 = sld [smem:[#allocation3 + $0x9]] }
  0x28   : > { %s2735_s1 = sld [smem:[#allocation17_spill]] }
  0x29   : > { %vm546_vm1 = vcmp.gt.s32.totalorder %v545_v3, 0  ;;  %v576_v13 = vstv %s2214_s11  ;;  %s1752_s24 = sld [smem:[#allocation3 + $0xd]] }
  0x2a   : > { %v547_v12 = vsel %vm546_vm1, %v545_v3, 0  ;;  %v595_v14 = vstv %s2216_s12  ;;  %s1757_s11 = sld [smem:[#allocation3 + $0x11]] }
  0x2b   : > { %vm568_vm2 = vcmp.eq.s32.totalorder %v547_v12, 0  ;;  %vm587_vm3 = vcmp.eq.s32.totalorder %v547_v12, 1  ;;  %vm606_vm4 = vcmp.eq.s32.totalorder %v547_v12, 2  ;;  %vm625_vm5 = vcmp.eq.s32.totalorder %v547_v12, 3  ;;  %s1762_s12 = sld [smem:[#allocation3 + $0x15]] }
  0x2c   : > { %s499_s27 = scalar_lea.vmem %s2734_s2, %s2222_s20  ;;  %v2240_v16 = vsel %vm568_vm2, 1.0, %v2095_v15  ;;  %v2242_v17 = vsel %vm587_vm3, 1.0, %v2095_v15  ;;  %v2246_v24 = vsel %vm606_vm4, 1.0, %v2095_v15  ;;  %v2254_v28 = vsel %vm625_vm5, 1.0, %v2095_v15  ;;  %s1776_s29 = sld [smem:[#allocation3 + $0x21]] }
  0x2d   : > { %v528_v4 = vld [vmem:[%s499_s27 + $0x4] sm:$0xf]  ;;  %v529_v5 = vld [vmem:[%s499_s27 + $0x8] sm:$0xf]  ;;  %v530_v6 = vld [vmem:[%s499_s27 + $0xc] sm:$0xf]  ;;  %v577_v21 = vmul.f32 %v2240_v16, %v576_v13  ;;  %v596_v22 = vmul.f32 %v2242_v17, %v595_v14  ;;  %v614_v25 = vstv %s2228_s28 }
  0x2e   : > { %v1200_v7 = vsel %vm1176_vm0, %v528_v4, 0  ;;  %v1219_v8 = vsel %vm1176_vm0, %v529_v5, 0  ;;  %v1238_v9 = vsel %vm1176_vm0, %v530_v6, 0  ;;  %v527_v10 = vld [vmem:[%s499_s27] sm:$0xf]  ;;  %s491_s22 = scalar_lea.vmem %s2735_s1, %s2222_s20  ;;  %v615_v27 = vmul.f32 %v2246_v24, %v614_v25  ;;  %s1767_s27 = sld [smem:[#allocation3 + $0x19]] }
  0x2f   : > { %1209 = vmatpush.bf16.xpose.msra.mxu1 %v1200_v7  ;;  %1228 = vmatpush.bf16.xpose.msra.mxu2 %v1219_v8  ;;  %v1181_v11 = vsel %vm1176_vm0, %v527_v10, 0  ;;  %v524_v18 = vld [vmem:[%s491_s22 + $0x4] sm:$0xf]  ;;  %v525_v19 = vld [vmem:[%s491_s22 + $0x8] sm:$0xf]  ;;  %v597_v26 = vadd.f32 %v596_v22, %v577_v21  ;;  %v633_v29 = vstv %s1752_s24  ;;  %vm644_vm6 = vcmp.eq.s32.totalorder %v547_v12, 4 }
  0x30   : > { %1247 = vmatpush.bf16.xpose.msra.mxu3 %v1238_v9  ;;  %1190 = vmatpush.bf16.xpose.msra.mxu0 %v1181_v11  ;;  %v526_v20 = vld [vmem:[%s491_s22 + $0xc] sm:$0xf]  ;;  %v523_v23 = vld [vmem:[%s491_s22] sm:$0xf]  ;;  %v634_v31 = vmul.f32 %v2254_v28, %v633_v29  ;;  %v2257_v32 = vsel %vm644_vm6, 1.0, %v2095_v15  ;;  %v652_v33 = vstv %s1757_s11  ;;  %vm663_vm7 = vcmp.eq.s32.totalorder %v547_v12, 5 }
  0x31   : > { %v616_v30 = vadd.f32 %v615_v27, %v597_v26  ;;  %v653_v35 = vmul.f32 %v2257_v32, %v652_v33  ;;  %v2260_v36 = vsel %vm663_vm7, 1.0, %v2095_v15  ;;  %v671_v37 = vstv %s1762_s12  ;;  %s1772_s28 = sld [smem:[#allocation3 + $0x1d]] }
  0x32   : > { %vm682_vm8 = vcmp.eq.s32.totalorder %v547_v12, 6  ;;  %v672_v39 = vmul.f32 %v2260_v36, %v671_v37  ;;  %vm701_vm9 = vcmp.eq.s32.totalorder %v547_v12, 7  ;;  %s1780_s30 = sld [smem:[#allocation3 + $0x25]]  ;;  %v728_v48 = vstv %s1776_s29 }
  0x33   : > { %v635_v34 = vadd.f32 %v634_v31, %v616_v30  ;;  %v2263_v40 = vsel %vm682_vm8, 1.0, %v2095_v15  ;;  %v2266_v44 = vsel %vm701_vm9, 1.0, %v2095_v15  ;;  %s1784_s22 = sld [smem:[#allocation3 + $0x29]]  ;;  %v729_v50 = vmul.f32 0.0, %v728_v48 }
  0x34   : > { %v690_v41 = vstv %s1767_s27  ;;  %s1788_s24 = sld [smem:[#allocation3 + $0x2d]] }
  0x35   : > { %v654_v38 = vadd.f32 %v653_v35, %v635_v34  ;;  %v691_v43 = vmul.f32 %v2263_v40, %v690_v41  ;;  %s1738_s11 = sld [smem:[#allocation3 + $0x2]] }
  0x36   : > { %1872 = vmatmul.msk.bf16.vlgmr.msra.gmra.mxu1 %vm1176_vm0, %v524_v18  ;;  %1873 = vmatmul.msk.bf16.vlgmr.msra.gmra.mxu2 %vm1176_vm0, %v525_v19  ;;  %s1743_s12 = sld [smem:[#allocation3 + $0x6]] }
  0x37   : > { %1874 = vmatmul.msk.bf16.vlgmr.msra.gmra.mxu3 %vm1176_vm0, %v526_v20  ;;  %1871 = vmatmul.msk.bf16.vlgmr.msra.gmra.mxu0 %vm1176_vm0, %v523_v23  ;;  %v673_v42 = vadd.f32 %v672_v39, %v654_v38  ;;  %v709_v45 = vstv %s1772_s28  ;;  %s2269_s27 = sld [smem:[#allocation3 + $0x31]] }
  0x38   : > { %v710_v47 = vmul.f32 %v2266_v44, %v709_v45  ;;  %v747_v51 = vstv %s1780_s30  ;;  %s1748_s0 = sld [smem:[#allocation3 + $0xa]] }
  0x39   : > { %v692_v46 = vadd.f32 %v691_v43, %v673_v42  ;;  %v748_v53 = vmul.f32 0.0, %v747_v51  ;;  %v766_v54 = vstv %s1784_s22  ;;  %s2271_s1 = sld [smem:[#allocation3 + $0x35]] }
  0x3a   : > { %s1753_s28 = sld [smem:[#allocation3 + $0xe]]  ;;  %v767_v56 = vmul.f32 0.0, %v766_v54  ;;  %v785_v57 = vstv %s1788_s24 }
  0x3b   : > { %v711_v49 = vadd.f32 %v710_v47, %v692_v46  ;;  %s2273_s2 = sld [smem:[#allocation3 + $0x39]]  ;;  %v580_v58 = vstv %s1738_s11  ;;  %v786_v63 = vmul.f32 0.0, %v785_v57 }
  0x3c   : > { %s1758_s29 = sld [smem:[#allocation3 + $0x12]]  ;;  %v599_v59 = vstv %s1743_s12  ;;  %v581_v60 = vmul.f32 %v2240_v16, %v580_v58 }
  0x3d   : > { %v730_v52 = vadd.f32 %v729_v50, %v711_v49  ;;  %s2275_s21 = sld [smem:[#allocation3 + $0x3d]]  ;;  %v600_v61 = vmul.f32 %v2242_v17, %v599_v59  ;;  %v804_v1 = vstv %s2269_s27 }
  0x3e   : > { %s1763_s30 = sld [smem:[#allocation3 + $0x16]]  ;;  %v618_v0 = vstv %s1748_s0  ;;  %v805_v8 = vmul.f32 0.0, %v804_v1 }
  0x3f   : > { %v749_v55 = vadd.f32 %v748_v53, %v730_v52  ;;  %s2277_s17 = sld [smem:[#allocation3 + $0x41]]  ;;  %v601_v2 = vadd.f32 %v600_v61, %v581_v60  ;;  %v619_v3 = vmul.f32 %v2246_v24, %v618_v0  ;;  %v823_v10 = vstv %s2271_s1 }
  0x40   : > { %s1768_s22 = sld [smem:[#allocation3 + $0x1a]]  ;;  %v637_v4 = vstv %s1753_s28  ;;  %v824_v19 = vmul.f32 0.0, %v823_v10 }
  0x41   : > { %v768_v62 = vadd.f32 %v767_v56, %v749_v55  ;;  %s2282_s26 = sld [smem:[#allocation3 + $0x45]]  ;;  %v620_v5 = vadd.f32 %v619_v3, %v601_v2  ;;  %v638_v6 = vmul.f32 %v2254_v28, %v637_v4  ;;  %v842_v21 = vstv %s2273_s2 }
  0x42   : > { %s1773_s24 = sld [smem:[#allocation3 + $0x1e]]  ;;  %v656_v9 = vstv %s1758_s29  ;;  %v843_v30 = vmul.f32 0.0, %v842_v21 }
  0x43   : > { %s2285_s11 = sld [smem:[#allocation3 + $0x49]]  ;;  %v787_v7 = vadd.f32 %v786_v63, %v768_v62  ;;  %v639_v11 = vadd.f32 %v638_v6, %v620_v5  ;;  %v657_v12 = vmul.f32 %v2257_v32, %v656_v9  ;;  %v861_v33 = vstv %s2275_s21 }
  0x44   : > { %s1777_s12 = sld [smem:[#allocation3 + $0x22]]  ;;  %v675_v13 = vstv %s1763_s30  ;;  %v862_v42 = vmul.f32 0.0, %v861_v33 }
  0x45   : > { %s2289_s0 = sld [smem:[#allocation3 + $0x4d]]  ;;  %v658_v14 = vadd.f32 %v657_v12, %v639_v11  ;;  %v676_v15 = vmul.f32 %v2260_v36, %v675_v13  ;;  %v806_v18 = vadd.f32 %v805_v8, %v787_v7  ;;  %v880_v45 = vstv %s2277_s17 }
  0x46   : > { %s1781_s27 = sld [smem:[#allocation3 + $0x26]]  ;;  %v694_v20 = vstv %s1768_s22  ;;  %v881_v54 = vmul.f32 0.0, %v880_v45 }
  0x47   : > { %s2292_s28 = sld [smem:[#allocation3 + $0x51]]  ;;  %v677_v22 = vadd.f32 %v676_v15, %v658_v14  ;;  %v695_v23 = vmul.f32 %v2263_v40, %v694_v20  ;;  %v825_v29 = vadd.f32 %v824_v19, %v806_v18  ;;  %v899_v49 = vstv %s2282_s26 }
  0x48   : > { %s1785_s15 = sld [smem:[#allocation3 + $0x2a]]  ;;  %v713_v25 = vstv %s1773_s24  ;;  %v900_v58 = vmul.f32 0.0, %v899_v49 }
  0x49   : > { %s2297_s1 = sld [smem:[#allocation3 + $0x2e]]  ;;  %v696_v26 = vadd.f32 %v695_v23, %v677_v22  ;;  %v714_v27 = vmul.f32 %v2266_v44, %v713_v25  ;;  %v844_v41 = vadd.f32 %v843_v30, %v825_v29  ;;  %v918_v50 = vstv %s2285_s11 }
  0x4a   : > { %s2299_s29 = sld [smem:[#allocation3 + $0x32]]  ;;  %v732_v31 = vstv %s1777_s12  ;;  %v919_v59 = vmul.f32 0.0, %v918_v50 }
  0x4b   : > { %s2302_s30 = sld [smem:[#allocation3 + $0x36]]  ;;  %v715_v34 = vadd.f32 %v714_v27, %v696_v26  ;;  %v733_v35 = vmul.f32 0.0, %v732_v31  ;;  %v863_v53 = vadd.f32 %v862_v42, %v844_v41  ;;  %v937_v14 = vstv %s2289_s0 }
  0x4c   : > { %s2304_s22 = sld [smem:[#allocation3 + $0x3a]]  ;;  %v751_v37 = vstv %s1781_s27  ;;  %v938_v29 = vmul.f32 0.0, %v937_v14 }
  0x4d   : > { %s2307_s2 = sld [smem:[#allocation3 + $0x3e]]  ;;  %v734_v38 = vadd.f32 %v733_v35, %v715_v34  ;;  %v752_v39 = vmul.f32 0.0, %v751_v37  ;;  %v882_v2 = vadd.f32 %v881_v54, %v863_v53  ;;  %v956_v34 = vstv %s2292_s28 }
  0x4e   : > { %s2309_s24 = sld [smem:[#allocation3 + $0x42]]  ;;  %v770_v43 = vstv %s1785_s15 }
  0x4f   : > { %s2311_s25 = sld [smem:[#allocation3 + $0x46]]  ;;  %v753_v46 = vadd.f32 %v752_v39, %v734_v38  ;;  %v771_v47 = vmul.f32 0.0, %v770_v43  ;;  %v789_v48 = vstv %s2297_s1  ;;  %v901_v20 = vadd.f32 %v900_v58, %v882_v2 }
  0x50   : > { %s1739_s12 = sld [smem:[#allocation3 + $0x3]]  ;;  %v790_v52 = vmul.f32 0.0, %v789_v48  ;;  %v808_v55 = vstv %s2299_s29 }
  0x51   : > { %s1744_s21 = sld [smem:[#allocation3 + $0x7]]  ;;  %v772_v51 = vadd.f32 %v771_v47, %v753_v46  ;;  %v809_v57 = vmul.f32 0.0, %v808_v55  ;;  %v827_v60 = vstv %s2302_s30  ;;  %v920_v39 = vadd.f32 %v919_v59, %v901_v20 }
  0x52   : > { %s1749_s13 = sld [smem:[#allocation3 + $0xb]]  ;;  %v828_v63 = vmul.f32 0.0, %v827_v60  ;;  %v846_v3 = vstv %s2304_s22 }
  0x53   : > { %s2317_s27 = sld [smem:[#allocation3 + $0xf]]  ;;  %v791_v56 = vadd.f32 %v790_v52, %v772_v51  ;;  %v847_v7 = vmul.f32 0.0, %v846_v3  ;;  %v865_v10 = vstv %s2307_s2  ;;  %v957_v51 = vmul.f32 0.0, %v956_v34 }
  0x54   : > { %s2320_s18 = sld [smem:[#allocation3 + $0x13]]  ;;  %v866_v18 = vmul.f32 0.0, %v865_v10  ;;  %v884_v21 = vstv %s2309_s24  ;;  %v939_v53 = vadd.f32 %v938_v29, %v920_v39 }
  0x55   : > { %s2322_s15 = sld [smem:[#allocation3 + $0x17]]  ;;  %v810_v62 = vadd.f32 %v809_v57, %v791_v56  ;;  %v885_v26 = vmul.f32 0.0, %v884_v21  ;;  %v903_v30 = vstv %s2311_s25 }
  0x56   : > { %v584_v61 = vstv %s1739_s12  ;;  %s2325_s17 = sld [smem:[#allocation3 + $0x1b]]  ;;  %v904_v37 = vmul.f32 0.0, %v903_v30 }
  0x57   : > { %v585_v0 = vmul.f32 %v2240_v16, %v584_v61  ;;  %v603_v1 = vstv %s1744_s21  ;;  %s2328_s26 = sld [smem:[#allocation3 + $0x1f]]  ;;  %v829_v6 = vadd.f32 %v828_v63, %v810_v62 }
  0x58   : > { %s2331_s11 = sld [smem:[#allocation3 + $0x4a]]  ;;  %v604_v4 = vmul.f32 %v2242_v17, %v603_v1  ;;  %v622_v5 = vstv %s1749_s13  ;;  %v958_v1 = vadd.f32 %v957_v51, %v939_v53 }
  0x59   : > { %v623_v8 = vmul.f32 %v2246_v24, %v622_v5  ;;  %v641_v9 = vstv %s2317_s27  ;;  %s2336_s1 = sld [smem:[#allocation3 + $0x23]]  ;;  %v848_v15 = vadd.f32 %v847_v7, %v829_v6 }
  0x5a   : > { %s2339_s29 = sld [smem:[#allocation3 + $0x4e]]  ;;  %v605_v11 = vadd.f32 %v604_v4, %v585_v0  ;;  %v642_v12 = vmul.f32 %v2254_v28, %v641_v9  ;;  %v660_v13 = vstv %s2320_s18 }
  0x5b   : > { %v679_v19 = vstv %s2322_s15  ;;  %s2345_s13 = sld [smem:[#allocation3 + $0x27]]  ;;  %v661_v23 = vmul.f32 %v2257_v32, %v660_v13  ;;  %v867_v25 = vadd.f32 %v866_v18, %v848_v15 }
  0x5c   : > { %s2347_s30 = sld [smem:[#allocation3 + $0x55]]  ;;  %v624_v22 = vadd.f32 %v623_v8, %v605_v11  ;;  %v698_v27 = vstv %s2325_s17  ;;  %v680_v33 = vmul.f32 %v2260_v36, %v679_v19 }
  0x5d   : > { %s2352_s18 = sld [smem:[#allocation3 + $0x2b]]  ;;  %v886_v35 = vadd.f32 %v885_v26, %v867_v25  ;;  %v717_v38 = vstv %s2328_s26  ;;  %v699_v43 = vmul.f32 %v2263_v40, %v698_v27 }
  0x5e   : > { %s2355_s0 = sld [smem:[#allocation3 + $0x52]]  ;;  %v643_v31 = vadd.f32 %v642_v12, %v624_v22  ;;  %v922_v41 = vstv %s2331_s11  ;;  %v718_v50 = vmul.f32 %v2266_v44, %v717_v38 }
  0x5f   : > { %s2360_s22 = sld [smem:[#allocation3 + $0x2f]]  ;;  %v905_v45 = vadd.f32 %v904_v37, %v886_v35  ;;  %v923_v46 = vmul.f32 0.0, %v922_v41  ;;  %v736_v47 = vstv %s2336_s1 }
  0x60   : > { %s2362_s2 = sld [smem:[#allocation3 + $0x59]]  ;;  %v662_v42 = vadd.f32 %v661_v23, %v643_v31  ;;  %v941_v48 = vstv %s2339_s29  ;;  %v737_v56 = vmul.f32 0.0, %v736_v47 }
  0x61   : > { %s2367_s25 = sld [smem:[#allocation3 + $0x33]]  ;;  %v755_v52 = vstv %s2345_s13  ;;  %v924_v57 = vadd.f32 %v923_v46, %v905_v45  ;;  %v942_v58 = vmul.f32 0.0, %v941_v48 }
  0x62   : > { %s2370_s28 = sld [smem:[#allocation3 + $0x56]]  ;;  %v681_v49 = vadd.f32 %v680_v33, %v662_v42  ;;  %v975_v54 = vstv %s2347_s30  ;;  %v756_v62 = vmul.f32 0.0, %v755_v52 }
  0x63   : > { %s2374_s24 = sld [smem:[#allocation3 + $0x37]]  ;;  %v774_v59 = vstv %s2352_s18  ;;  %v976_v63 = vmul.f32 0.0, %v975_v54  ;;  %v943_v5 = vadd.f32 %v942_v58, %v924_v57 }
  0x64   : > { %s2377_s12 = sld [smem:[#allocation3 + $0x5d]]  ;;  %v700_v55 = vadd.f32 %v699_v43, %v681_v49  ;;  %v960_v60 = vstv %s2355_s0  ;;  %v775_v4 = vmul.f32 0.0, %v774_v59 }
  0x65   : > { %s2380_s21 = sld [smem:[#allocation3 + $0x3b]]  ;;  %v793_v0 = vstv %s2360_s22  ;;  %v961_v6 = vmul.f32 0.0, %v960_v60  ;;  %v977_v13 = vadd.f32 %v976_v63, %v958_v1 }
  0x66   : > { %s2383_s27 = sld [smem:[#allocation3 + $0x5a]]  ;;  %v719_v61 = vadd.f32 %v718_v50, %v700_v55  ;;  %v994_v2 = vstv %s2362_s2  ;;  %v794_v10 = vmul.f32 0.0, %v793_v0 }
  0x67   : > { %s2386_s15 = sld [smem:[#allocation3 + $0x3f]]  ;;  %v812_v7 = vstv %s2367_s25  ;;  %v995_v11 = vmul.f32 0.0, %v994_v2  ;;  %v962_v19 = vadd.f32 %v961_v6, %v943_v5 }
  0x68   : > { %s2389_s17 = sld [smem:[#allocation3 + $0x61]]  ;;  %v738_v3 = vadd.f32 %v737_v56, %v719_v61  ;;  %v979_v8 = vstv %s2370_s28  ;;  %v813_v18 = vmul.f32 0.0, %v812_v7 }
  0x69   : > { %s2392_s26 = sld [smem:[#allocation3 + $0x43]]  ;;  %v831_v12 = vstv %s2374_s24  ;;  %v980_v20 = vmul.f32 0.0, %v979_v8  ;;  %v996_v29 = vadd.f32 %v995_v11, %v977_v13 }
  0x6a   : > { %s2395_s11 = sld [smem:[#allocation3 + $0x5e]]  ;;  %v757_v9 = vadd.f32 %v756_v62, %v738_v3  ;;  %v1013_v14 = vstv %s2377_s12  ;;  %v832_v25 = vmul.f32 0.0, %v831_v12 }
  0x6b   : > { %s2398_s1 = sld [smem:[#allocation3 + $0x47]]  ;;  %v850_v21 = vstv %s2380_s21  ;;  %v1014_v26 = vmul.f32 0.0, %v1013_v14  ;;  %v981_v34 = vadd.f32 %v980_v20, %v962_v19 }
  0x6c   : > { %s2401_s29 = sld [smem:[#allocation3 + $0x65]]  ;;  %v776_v15 = vadd.f32 %v775_v4, %v757_v9  ;;  %v998_v22 = vstv %s2383_s27  ;;  %v851_v33 = vmul.f32 0.0, %v850_v21 }
  0x6d   : > { %s2404_s13 = sld [smem:[#allocation3 + $0x4b]]  ;;  %v869_v27 = vstv %s2386_s15  ;;  %v999_v35 = vmul.f32 0.0, %v998_v22  ;;  %v1015_v45 = vadd.f32 %v1014_v26, %v996_v29 }
  0x6e   : > { %s2407_s30 = sld [smem:[#allocation3 + $0x62]]  ;;  %v795_v23 = vadd.f32 %v794_v10, %v776_v15  ;;  %v1032_v30 = vstv %s2389_s17  ;;  %v870_v41 = vmul.f32 0.0, %v869_v27 }
  0x6f   : > { %s2410_s18 = sld [smem:[#allocation3 + $0x4f]]  ;;  %v888_v37 = vstv %s2392_s26  ;;  %v1033_v42 = vmul.f32 0.0, %v1032_v30  ;;  %v1000_v49 = vadd.f32 %v999_v35, %v981_v34 }
  0x70   : > { %s2413_s0 = sld [smem:[#allocation3 + $0x69]]  ;;  %v814_v31 = vadd.f32 %v813_v18, %v795_v23  ;;  %v1017_v38 = vstv %s2395_s11  ;;  %v889_v48 = vmul.f32 0.0, %v888_v37 }
  0x71   : > { %s2416_s22 = sld [smem:[#allocation3 + $0x53]]  ;;  %v907_v43 = vstv %s2398_s1  ;;  %v1018_v50 = vmul.f32 0.0, %v1017_v38  ;;  %v1034_v57 = vadd.f32 %v1033_v42, %v1015_v45 }
  0x72   : > { %s2419_s2 = sld [smem:[#allocation3 + $0x66]]  ;;  %v833_v39 = vadd.f32 %v832_v25, %v814_v31  ;;  %v1051_v46 = vstv %s2401_s29  ;;  %v908_v54 = vmul.f32 0.0, %v907_v43 }
  0x73   : > { %s2422_s25 = sld [smem:[#allocation3 + $0x57]]  ;;  %v926_v51 = vstv %s2404_s13  ;;  %v1052_v55 = vmul.f32 0.0, %v1051_v46  ;;  %v1019_v61 = vadd.f32 %v1018_v50, %v1000_v49 }
  0x74   : > { %s2425_s28 = sld [smem:[#allocation3 + $0x6d]]  ;;  %v852_v47 = vadd.f32 %v851_v33, %v833_v39  ;;  %v1036_v52 = vstv %s2407_s30  ;;  %v927_v60 = vmul.f32 0.0, %v926_v51 }
  0x75   : > { %s2428_s24 = sld [smem:[#allocation3 + $0x5b]]  ;;  %v945_v56 = vstv %s2410_s18  ;;  %v1037_v62 = vmul.f32 0.0, %v1036_v52  ;;  %v1053_v5 = vadd.f32 %v1052_v55, %v1034_v57 }
  0x76   : > { %s2431_s12 = sld [smem:[#allocation3 + $0x6a]]  ;;  %v871_v53 = vadd.f32 %v870_v41, %v852_v47  ;;  %v1070_v58 = vstv %s2413_s0  ;;  %v946_v2 = vmul.f32 0.0, %v945_v56 }
  0x77   : > { %s2434_s21 = sld [smem:[#allocation3 + $0x5f]]  ;;  %v964_v63 = vstv %s2416_s22  ;;  %v1071_v3 = vmul.f32 0.0, %v1070_v58  ;;  %v1038_v9 = vadd.f32 %v1037_v62, %v1019_v61 }
  0x78   : > { %s2437_s27 = sld [smem:[#allocation3 + $0x71]]  ;;  %v890_v59 = vadd.f32 %v889_v48, %v871_v53  ;;  %v1055_v0 = vstv %s2419_s2  ;;  %v965_v8 = vmul.f32 0.0, %v964_v63 }
  0x79   : > { %s2440_s15 = sld [smem:[#allocation3 + $0x63]]  ;;  %v983_v4 = vstv %s2422_s25  ;;  %v1056_v10 = vmul.f32 0.0, %v1055_v0  ;;  %v1072_v19 = vadd.f32 %v1071_v3, %v1053_v5 }
  0x7a   : > { %s2443_s17 = sld [smem:[#allocation3 + $0x6e]]  ;;  %v909_v1 = vadd.f32 %v908_v54, %v890_v59  ;;  %v1089_v6 = vstv %s2425_s28  ;;  %v984_v14 = vmul.f32 0.0, %v983_v4 }
  0x7b   : > { %s2446_s26 = sld [smem:[#allocation3 + $0x67]]  ;;  %v1002_v11 = vstv %s2428_s24  ;;  %v1090_v15 = vmul.f32 0.0, %v1089_v6  ;;  %v1057_v23 = vadd.f32 %v1056_v10, %v1038_v9 }
  0x7c   : > { %s2449_s11 = sld [smem:[#allocation3 + $0x75]]  ;;  %v928_v7 = vadd.f32 %v927_v60, %v909_v1  ;;  %v1074_v12 = vstv %s2431_s12  ;;  %v1003_v22 = vmul.f32 0.0, %v1002_v11 }
  0x7d   : > { %s2452_s1 = sld [smem:[#allocation3 + $0x6b]]  ;;  %v1021_v18 = vstv %s2434_s21  ;;  %v1075_v25 = vmul.f32 0.0, %v1074_v12  ;;  %v1091_v34 = vadd.f32 %v1090_v15, %v1072_v19 }
  0x7e   : > { %s2455_s29 = sld [smem:[#allocation3 + $0x72]]  ;;  %v947_v13 = vadd.f32 %v946_v2, %v928_v7  ;;  %v1108_v20 = vstv %s2437_s27  ;;  %v1022_v30 = vmul.f32 0.0, %v1021_v18 }
  0x7f   : > { %s2458_s13 = sld [smem:[#allocation3 + $0x6f]]  ;;  %v1040_v26 = vstv %s2440_s15  ;;  %v1109_v31 = vmul.f32 0.0, %v1108_v20  ;;  %v1076_v39 = vadd.f32 %v1075_v25, %v1057_v23 }
  0x80   : > { %s2461_s30 = sld [smem:[#allocation3 + $0x79]]  ;;  %v966_v21 = vadd.f32 %v965_v8, %v947_v13  ;;  %v1093_v27 = vstv %s2443_s17  ;;  %v1041_v38 = vmul.f32 0.0, %v1040_v26 }
  0x81   : > { %s2464_s18 = sld [smem:[#allocation3 + $0x73]]  ;;  %v1059_v33 = vstv %s2446_s26  ;;  %v1094_v41 = vmul.f32 0.0, %v1093_v27  ;;  %v1110_v49 = vadd.f32 %v1109_v31, %v1091_v34 }
  0x82   : > { %s2467_s0 = sld [smem:[#allocation3 + $0x76]]  ;;  %v985_v29 = vadd.f32 %v984_v14, %v966_v21  ;;  %v1127_v35 = vstv %s2449_s11  ;;  %v1060_v46 = vmul.f32 0.0, %v1059_v33 }
  0x83   : > { %s2471_s22 = sld [smem:[#allocation3 + $0x77]]  ;;  %v1078_v42 = vstv %s2452_s1  ;;  %v1128_v47 = vmul.f32 0.0, %v1127_v35  ;;  %v1095_v53 = vadd.f32 %v1094_v41, %v1076_v39 }
  0x84   : > { %v1004_v37 = vadd.f32 %v1003_v22, %v985_v29  ;;  %s2473_s2 = sld [smem:[#allocation3 + $0x7d]]  ;;  %v1112_v43 = vstv %s2455_s29  ;;  %v1079_v52 = vmul.f32 0.0, %v1078_v42 }
  0x85   : > { %s2477_s25 = sld [smem:[#allocation3 + $0x7a]]  ;;  %v1097_v48 = vstv %s2458_s13  ;;  %v1113_v54 = vmul.f32 0.0, %v1112_v43  ;;  %v1129_v60 = vadd.f32 %v1128_v47, %v1110_v49  ;;  %s2511_s13 = scalar_lea.vmem %s2706_s3, %s2222_s20 }
  0x86   : > { %v1023_v45 = vadd.f32 %v1022_v30, %v1004_v37  ;;  %s2480_s28 = sld [smem:[#allocation3 + $0x7b]]  ;;  %v1146_v50 = vstv %s2461_s30  ;;  %v1098_v58 = vmul.f32 0.0, %v1097_v48  ;;  %v532_v31 = vld [vmem:[%s2511_s13 + $0x4] sm:$0xf]  ;;  %v533_v48 = vld [vmem:[%s2511_s13 + $0x8] sm:$0xf] }
  0x87   : > { %s2483_s24 = sld [smem:[#allocation3 + $0x7e]]  ;;  %v1116_v55 = vstv %s2464_s18  ;;  %v1147_v59 = vmul.f32 0.0, %v1146_v50  ;;  %v1114_v1 = vadd.f32 %v1113_v54, %v1095_v53  ;;  %v534_v49 = vld [vmem:[%s2511_s13 + $0xc] sm:$0xf] }
  0x88   : > { %v1042_v51 = vadd.f32 %v1041_v38, %v1023_v45  ;;  %s2486_s12 = sld [smem:[#allocation3]]  ;;  %v1131_v56 = vstv %s2467_s0  ;;  %v1117_v62 = vmul.f32 0.0, %v1116_v55 }
  0x89   : > { %s2489_s21 = sld [smem:[#allocation3 + $0x4]]  ;;  %v1135_v63 = vstv %s2471_s22  ;;  %v1132_v2 = vmul.f32 0.0, %v1131_v56  ;;  %v1148_v7 = vadd.f32 %v1147_v59, %v1129_v60 }
  0x8a   : > { %v1061_v57 = vadd.f32 %v1060_v46, %v1042_v51  ;;  %s2491_s27 = sld [smem:[#allocation3 + $0x7f]]  ;;  %v1165_v0 = vstv %s2473_s2  ;;  %v1136_v5 = vmul.f32 0.0, %v1135_v63  ;;  %v1380_v51 = vsel %vm1340_vm10, %v533_v48, 0 }
  0x8b   : > { %s1746_s15 = sld [smem:[#allocation3 + $0x8]]  ;;  %v1150_v3 = vstv %s2477_s25  ;;  %v1166_v8 = vmul.f32 0.0, %v1165_v0  ;;  %v1133_v10 = vadd.f32 %v1132_v2, %v1114_v1  ;;  %1389 = vmatpush.bf16.msrb.mxu2 %v1380_v51 }
  0x8c   : > { %v1080_v61 = vadd.f32 %v1079_v52, %v1061_v57  ;;  %s2496_s17 = sld [smem:[#allocation3 + $0xc]]  ;;  %v1154_v6 = vstv %s2480_s28  ;;  %v1151_v11 = vmul.f32 0.0, %v1150_v3  ;;  %v1399_v52 = vsel %vm1340_vm10, %v534_v49, 0 }
  0x8d   : > { %s2499_s26 = sld [smem:[#allocation3 + $0x10]]  ;;  %v1169_v12 = vstv %s2483_s24  ;;  %v1155_v13 = vmul.f32 0.0, %v1154_v6  ;;  %v1167_v22 = vadd.f32 %v1166_v8, %v1148_v7  ;;  %1408 = vmatpush.bf16.msrb.mxu3 %v1399_v52 }
  0x8e   : > { %v1099_v4 = vadd.f32 %v1098_v58, %v1080_v61  ;;  %v572_v14 = vstv %s2486_s12  ;;  %s2504_s11 = sld [smem:[#allocation3 + $0x14]]  ;;  %v1152_v25 = vadd.f32 %v1151_v11, %v1133_v10  ;;  %v1170_v29 = vmul.f32 0.0, %v1169_v12 }
  0x8f   : > { %v591_v15 = vstv %s2489_s21  ;;  %v573_v20 = vmul.f32 %v2240_v16, %v572_v14  ;;  %s2515_s30 = sld [smem:[#allocation3 + $0x18]] }
  0x90   : > { %v1118_v9 = vadd.f32 %v1117_v62, %v1099_v4  ;;  %v1173_v19 = vstv %s2491_s27  ;;  %v592_v21 = vmul.f32 %v2242_v17, %v591_v15  ;;  %s2518_s18 = sld [smem:[#allocation3 + $0x1c]]  ;;  %v1361_v17 = vsel %vm1340_vm10, %v532_v31, 0 }
  0x91   : > { %v610_v23 = vstv %s1746_s15  ;;  %v1174_v30 = vmul.f32 0.0, %v1173_v19  ;;  %1370 = vmatpush.bf16.msrb.mxu1 %v1361_v17  ;;  %s2527_s20 = sld [smem:[#allocation3 + $0x20]]  ;;  %v1171_v43 = vadd.f32 %v1170_v29, %v1152_v25 }
  0x92   : > { %v1137_v18 = vadd.f32 %v1136_v5, %v1118_v9  ;;  %v593_v26 = vadd.f32 %v592_v21, %v573_v20  ;;  %v611_v27 = vmul.f32 %v2246_v24, %v610_v23  ;;  %v629_v33 = vstv %s2496_s17  ;;  %s2530_s0 = sld [smem:[#allocation3 + $0x24]] }
  0x93   : > { %v630_v37 = vmul.f32 %v2254_v28, %v629_v33  ;;  %v648_v24 = vstv %s2499_s26  ;;  %s2534_s22 = sld [smem:[#allocation3 + $0x28]] }
  0x94   : > { %v1156_v34 = vadd.f32 %v1155_v13, %v1137_v18  ;;  %v612_v35 = vadd.f32 %v611_v27, %v593_v26  ;;  %v649_v41 = vmul.f32 %v2257_v32, %v648_v24  ;;  %v667_v45 = vstv %s2504_s11  ;;  %s2537_s2 = sld [smem:[#allocation3 + $0x2c]] }
  0x95   : > { %v668_v47 = vmul.f32 %v2260_v36, %v667_v45  ;;  %v686_v50 = vstv %s2515_s30  ;;  %s2551_s25 = sld [smem:[#allocation3 + $0x30]] }
  0x96   : > { %v631_v39 = vadd.f32 %v630_v37, %v612_v35  ;;  %v1175_v28 = vadd.f32 %v1174_v30, %v1156_v34  ;;  %v687_v54 = vmul.f32 %v2263_v40, %v686_v50  ;;  %v705_v36 = vstv %s2518_s18  ;;  %s2557_s28 = sld [smem:[#allocation3 + $0x34]] }
  0x97   : > { %v706_v60 = vmul.f32 %v2266_v44, %v705_v36  ;;  %v724_v40 = vstv %s2527_s20  ;;  %s2561_s24 = sld [smem:[#allocation3 + $0x38]] }
  0x98   : > { %v650_v46 = vadd.f32 %v649_v41, %v631_v39  ;;  %v725_v0 = vmul.f32 0.0, %v724_v40  ;;  %v743_v1 = vstv %s2530_s0  ;;  %s2563_s12 = sld [smem:[#allocation3 + $0x3c]] }
  0x99   : > { %v744_v3 = vmul.f32 0.0, %v743_v1  ;;  %v762_v4 = vstv %s2534_s22  ;;  %s2565_s21 = sld [smem:[#allocation3 + $0x40]] }
  0x9a   : > { %v669_v53 = vadd.f32 %v668_v47, %v650_v46  ;;  %v781_v6 = vstv %s2537_s2  ;;  %v763_v7 = vmul.f32 0.0, %v762_v4  ;;  %s2567_s27 = sld [smem:[#allocation3 + $0x44]] }
  0x9b   : > { %v782_v11 = vmul.f32 0.0, %v781_v6  ;;  %v800_v12 = vstv %s2551_s25  ;;  %s2570_s15 = sld [smem:[#allocation3 + $0x48]] }
  0x9c   : > { %v688_v59 = vadd.f32 %v687_v54, %v669_v53  ;;  %s2572_s17 = sld [smem:[#allocation3 + $0x4c]]  ;;  %v819_v19 = vstv %s2557_s28 }
  0x9d   : > { %v838_v25 = vstv %s2561_s24  ;;  %v820_v27 = vmul.f32 0.0, %v819_v19  ;;  %s2586_s26 = sld [smem:[#allocation3 + $0x50]]  ;;  %s2097_s24 = smov 16  }
  0x9e   : > { %v707_v63 = vadd.f32 %v706_v60, %v688_v59  ;;  %v857_v29 = vstv %s2563_s12  ;;  %v839_v34 = vmul.f32 0.0, %v838_v25  ;;  %s2593_s11 = sld [smem:[#allocation3 + $0x54]]  ;;  %s2098_s12 = smov 24  }
  0x9f   : > { %v876_v17 = vstv %s2565_s21  ;;  %v858_v35 = vmul.f32 0.0, %v857_v29  ;;  %s2598_s1 = sld [smem:[#allocation3 + $0x58]]  ;;  %s1734_s21 = sshll.u32 %s2219_s19, 2 }
  0xa0   : > { %v726_v44 = vadd.f32 %v725_v0, %v707_v63  ;;  %v895_v37 = vstv %s2567_s27  ;;  %v877_v46 = vmul.f32 0.0, %v876_v17  ;;  %s2607_s29 = sld [smem:[#allocation3 + $0x5c]] }
  0xa1   : > { %v914_v24 = vstv %s2570_s15  ;;  %s2612_s30 = sld [smem:[#allocation3 + $0x60]] }
  0xa2   : > { %v745_v10 = vadd.f32 %v744_v3, %v726_v44  ;;  %v915_v52 = vmul.f32 0.0, %v914_v24  ;;  %s2618_s18 = sld [smem:[#allocation3 + $0x64]] }
  0xa3   : > { %v952_v4 = vstv %s2586_s26  ;;  %s1847_s20 = sld [smem:[#allocation3 + $0x68]] }
  0xa4   : > { %v764_v14 = vadd.f32 %v763_v7, %v745_v10  ;;  %s1851_s0 = sld [smem:[#allocation3 + $0x6c]] }
  0xa5   : > { %s1855_s22 = sld [smem:[#allocation3 + $0x70]] }
  0xa6   : > { %v783_v21 = vadd.f32 %v782_v11, %v764_v14  ;;  %v1009_v25 = vstv %s2607_s29  ;;  %s1859_s2 = sld [smem:[#allocation3 + $0x74]] }
  0xa7   : > { %s1863_s25 = sld [smem:[#allocation3 + $0x78]] }
  0xa8   : > { %s1867_s28 = sld [smem:[#allocation3 + $0x7c]] }
  0xaa   : > { %v1085_v24 = vstv %s1851_s0  ;;  %s2030_s0 = scalar_lea.hbm %s2713_s10, 16 }
  0xab   : > { %v1086_v45 = vmul.f32 0.0, %v1085_v24 }
  0xb3   : > { %v1211_v16 = vpop.f32.mrf.mxu1 }
  0xb4   : > { %v2524_v38 = vadd.f32 %v1211_v16, %v1167_v22  ;;  %v801_v22 = vmul.f32 0.0, %v800_v12  ;;  %v2601_v59 = vpop.f32.mrf.mxu0  ;;  %v953_v12 = vmul.f32 0.0, %v952_v4 }
  0xb6   : > { %v1876_v42 = vmul.f32 -1.442695, %v2524_v38  ;;  %v802_v16 = vadd.f32 %v801_v22, %v783_v21 }
  0xb8   : > { %1975 = vpow2.f32 %v1876_v42  ;;  %v821_v41 = vadd.f32 %v820_v27, %v802_v16  ;;  %v933_v42 = vstv %s2572_s17  ;;  %v1010_v16 = vmul.f32 0.0, %v1009_v25  ;;  %s514_s17 = scalar_lea.vmem %s2707_s4, %s1734_s21 }
  0xb9   : > { %v1230_v32 = vpop.f32.mrf.mxu2  ;;  %v934_v53 = vmul.f32 0.0, %v933_v42  ;;  %v1104_v42 = vstv %s1855_s22  ;;  %s481_s22 = sand.u32 1, %s2076_s14  }
  0xba   : > { %v2545_v55 = vadd.f32 %v1230_v32, %v1171_v43  ;;  %v1249_v56 = vpop.f32.mrf.mxu3  ;;  %v840_v50 = vadd.f32 %v839_v34, %v821_v41  ;;  %v896_v32 = vmul.f32 0.0, %v895_v37 }
  0xbb   : > { %v2548_v57 = vadd.f32 %v1249_v56, %v1175_v28  ;;  %v1213_v58 = vpop.f32.mrf.mxu1 }
  0xbc   : > { %v1877_v61 = vmul.f32 -1.442695, %v2545_v55  ;;  %v859_v58 = vadd.f32 %v858_v35, %v840_v50  ;;  %v1194_v22 = vpop.f32.mrf.mxu0  ;;  %v1066_v35 = vstv %s1847_s20 }
  0xbd   : > { %v1878_v62 = vmul.f32 -1.442695, %v2548_v57  ;;  %v1067_v41 = vmul.f32 0.0, %v1066_v35 }
  0xbe   : > { %v1976_v2 = vpop.eup %1975  ;;  %1977 = vpow2.f32 %v1877_v61  ;;  %v878_v1 = vadd.f32 %v877_v46, %v859_v58 }
  0xbf   : > { %v1266_v5 = vadd.f32 1.0, %v1976_v2  ;;  %1979 = vpow2.f32 %v1878_v62 }
  0xc0   : > { %v897_v6 = vadd.f32 %v896_v32, %v878_v1  ;;  %v1161_v32 = vstv %s1867_s28  ;;  %s1893_s28 = sshll.u32 %s2084_s16, 3  ;;  %s1549_s16 = scalar_lea.sflag [#allocation4], %s481_s22 }
  0xc1   : > { %1981 = vrcp.f32 %v1266_v5  ;;  %v1232_v8 = vpop.f32.mrf.mxu2  ;;  %v1293_v30 = vand.u32 2147483647, %v1266_v5  ;;  %v1295_v31 = vand.u32 2147483648, %v1266_v5  ;;  %vm1289_vm12 = vweird.f32 %v1266_v5  ;;  %s1560_s26 = scalar_lea.hbm %s2713_s10, %s1893_s28 }
  0xc2   : > { %v1251_v9 = vpop.f32.mrf.mxu3  ;;  %v971_v8 = vstv %s2593_s11  ;;  %v916_v11 = vadd.f32 %v915_v52, %v897_v6 }
  0xc3   : > { %vm2589_vm13 = vcmp.eq.f32.partialorder %v1293_v30, 8.507059e+37  ;;  %v1296_v28 = vor.u32 1.1754944e-38, %v1295_v31  ;;  %v972_v21 = vmul.f32 0.0, %v971_v8  ;;  %v1028_v31 = vstv %s2612_s30 }
  0xc4   : > { %v1978_v13 = vpop.eup %1977  ;;  %v1029_v17 = vmul.f32 0.0, %v1028_v31 }
  0xc5   : > { %v1980_v15 = vpop.eup %1979  ;;  %v2574_v18 = vadd.f32 1.0, %v1978_v13 }
  0xc6   : > { %v2577_v20 = vadd.f32 1.0, %v1980_v15  ;;  %v990_v15 = vstv %s2598_s1 }
  0xc7   : > { %v1982_v23 = vpop.eup %1981  ;;  %1983 = vrcp.f32 %v2574_v18  ;;  %vm1304_vm15 = vweird.f32 %v2574_v18  ;;  %v1308_v36 = vand.u32 2147483647, %v2574_v18  ;;  %v1310_v61 = vand.u32 2147483648, %v2574_v18 }
  0xc8   : > { %v1285_v26 = vmul.f32 %v1982_v23, %v1266_v5  ;;  %1985 = vrcp.f32 %v2577_v20  ;;  %vm1290_vm11 = vweird.f32 %v1982_v23  ;;  %v1325_v62 = vand.u32 2147483648, %v2577_v20 }
  0xc9   : > { %vm1291_vm14 = vmor %vm1289_vm12, %vm1290_vm11  ;;  %v1323_v3 = vand.u32 2147483647, %v2577_v20  ;;  %vm1319_vm3 = vweird.f32 %v2577_v20  ;;  %vm1309_vm5 = vcmp.eq.f32.partialorder %v1308_v36, 8.507059e+37  ;;  %v991_v29 = vmul.f32 0.0, %v990_v15 }
  0xca   : > { %v1286_v33 = vsub.f32 1.0, %v1285_v26  ;;  %v1326_v10 = vor.u32 1.1754944e-38, %v1325_v62 }
  0xcb   : > { %vm1324_vm7 = vcmp.eq.f32.partialorder %v1323_v3, 8.507059e+37 }
  0xcc   : > { %v1287_v39 = vmul.f32 %v1982_v23, %v1286_v33 }
  0xcd   : > { %v1984_v43 = vpop.eup %1983 }
  0xce   : > { %v1986_v47 = vpop.eup %1985  ;;  %v1288_v48 = vadd.f32 %v1982_v23, %v1287_v39  ;;  %v1300_v49 = vmul.f32 %v1984_v43, %v2574_v18  ;;  %vm1305_vm1 = vweird.f32 %v1984_v43 }
  0xcf   : > { %v1315_v51 = vmul.f32 %v1986_v47, %v2577_v20  ;;  %vm1320_vm2 = vweird.f32 %v1986_v47  ;;  %vm1306_vm4 = vmor %vm1304_vm15, %vm1305_vm1  ;;  %v935_v20 = vadd.f32 %v934_v53, %v916_v11 }
  0xd0   : > { %v1292_v54 = vsel %vm1291_vm14, %v1982_v23, %v1288_v48  ;;  %v1301_v56 = vsub.f32 1.0, %v1300_v49  ;;  %vm1321_vm6 = vmor %vm1319_vm3, %vm1320_vm2  ;;  %v1142_v48 = vstv %s1863_s25  ;;  %vm1468_vm14 = vcmask 261120   ;;  %s1727_s25 = sshll.u32 %s481_s22, 3 }
  0xd1   : > { %v1297_v60 = vsel %vm2589_vm13, %v1296_v28, %v1292_v54  ;;  %v1316_v40 = vsub.f32 1.0, %v1315_v51  ;;  %v954_v27 = vadd.f32 %v953_v12, %v935_v20  ;;  %v1123_v28 = vstv %s1859_s2  ;;  %s1735_s2 = sshll.u32 %s2219_s19, 3  ;;  %s483_s11 = scalar_lea.vmem [#allocation6], %s1727_s25 }
  0xd2   : > { %v1330_v63 = vmul.f32 %v1297_v60, %v2524_v38  ;;  %v1302_v0 = vmul.f32 %v1984_v43, %v1301_v56  ;;  %v1311_v38 = vor.u32 1.1754944e-38, %v1310_v61  ;;  %v1124_v50 = vmul.f32 0.0, %v1123_v28  ;;  %v531_v60 = vld [vmem:[%s2511_s13] sm:$0xf]  ;;  %s2096_s13 = smov 8   ;;  %s1562_s1 = sshll.u32 %s483_s11, 4  ;;  %s1563_s1 = int_to_ptr.vmem [resolvable:$true] %s1562_s1 }
  0xd3   : > { %v1317_v2 = vmul.f32 %v1986_v47, %v1316_v40  ;;  %v973_v33 = vadd.f32 %v972_v21, %v954_v27  ;;  %v1143_v52 = vmul.f32 0.0, %v1142_v48  ;;  %v1162_v54 = vmul.f32 0.0, %v1161_v32  ;;  %s1564_s19 = sshll.u32 %s1560_s26, 4  ;;  %s1565_s19 = int_to_ptr.hbm [resolvable:$true] %s1564_s19 }
  0xd4   : > { %v1334_v5 = vpack.c.bf16 %v1330_v63, %v1330_v63  ;;  %v1303_v44 = vadd.f32 %v1984_v43, %v1302_v0  ;;  %v1342_v61 = vsel %vm1340_vm10, %v531_v60, 0  ;;  %vm1461_vm10 = vcmask 130048   ;;  %s2024_s29 = sshra.s32 %s1565_s19, 4  ;;  %s2025_s29 = int_to_ptr.hbm [resolvable:$true] %s2024_s29 }
  0xd5   : > { %v1318_v7 = vadd.f32 %v1986_v47, %v1317_v2  ;;  %v992_v34 = vadd.f32 %v991_v29, %v973_v33  ;;  %1351 = vmatpush.bf16.msrb.mxu0 %v1342_v61  ;;  %vm1463_vm13 = vcmask 195584   ;;  %v1973_v61 = vld [vmem:[%s2710_s7] ss:$0 sm:$0xff]  ;;  %s2026_s30 = scalar_lea.hbm %s2025_s29, 8  ;;  %p2031_p5 = scmp.lt.s32.totalorder %s2025_s29, %s2713_s10 }
  0xd6   : > { %v1307_v9 = vsel %vm1306_vm4, %v1984_v43, %v1303_v44  ;;  %1880 = vmatmul.msk.bf16.vlgmr.msrb.gmra.mxu1 %vm1176_vm0, %v1334_v5  ;;  %p2027_p1 = scmp.ne.s32.totalorder %s2025_s29, %s2026_s30  ;;  %p2032_p6 = scmp.lt.s32.totalorder %s2030_s0, %s2026_s30 }
  0xd7   : > { %v1312_v13 = vsel %vm1309_vm5, %v1311_v38, %v1307_v9  ;;  %v1322_v14 = vsel %vm1321_vm6, %v1986_v47, %v1318_v7  ;;  %v1105_v47 = vmul.f32 0.0, %v1104_v42 }
  0xd8   : > { %v1331_v18 = vmul.f32 %v1312_v13, %v2545_v55  ;;  %v1327_v19 = vsel %vm1324_vm7, %v1326_v10, %v1322_v14  ;;  %v1047_v55 = vstv %s2618_s18  ;;  %p2028_p2 = pnand %p2027_p1, %p2195_p4  ;;  %p2033_p7 = por %p2032_p6, %p2031_p5 }
  0xd9   : > { %v1332_v23 = vmul.f32 %v1327_v19, %v2548_v57  ;;  %v1011_v57 = vadd.f32 %v1010_v16, %v992_v34  ;;  %v1048_v37 = vmul.f32 0.0, %v1047_v55  ;;  %v2099_v34 = vmov 32.0  }
  0xda   : > { %v1335_v26 = vpack.c.bf16 %v1331_v18, %v1331_v18  ;;  %p2029_p3 = pneg %p2028_p2 }
  0xdb   : > { %v1336_v30 = vpack.c.bf16 %v1332_v23, %v1332_v23  ;;  %v1030_v39 = vadd.f32 %v1029_v17, %v1011_v57  ;;  %v1465_v23 = vld [vmem:[%s514_s17] sm:$0xf] }
  0xdc   : > { %1881 = vmatmul.msk.bf16.vlgmr.msrb.gmra.mxu2 %vm1176_vm0, %v1335_v26  ;;  %v1466_v26 = vunpack.c.l.bf16 %v1465_v23  ;;  %p2034_p9 = pnand %p2033_p7, %p2029_p3 }
  0xdd   : > { %1882 = vmatmul.msk.bf16.vlgmr.msrb.gmra.mxu3 %vm1176_vm0, %v1336_v30  ;;  %v1049_v43 = vadd.f32 %v1048_v37, %v1030_v39 }
  0xdf   : > { %v1068_v46 = vadd.f32 %v1067_v41, %v1049_v43 }
  0xe1   : > { %v1087_v49 = vadd.f32 %v1086_v45, %v1068_v46  ;;  %v1900_v46 = vld [vmem:[%s2711_s8 + $0x8] sm:$0xff] }
  0xe2   : > { %1538 = vmatpush.bf16.msra.mxu0 %v1900_v46 }
  0xe3   : > { %v1106_v51 = vadd.f32 %v1105_v47, %v1087_v49  ;;  %v1899_v47 = vld [vmem:[%s2711_s8] sm:$0xff] }
  0xe5   : > { %v1125_v53 = vadd.f32 %v1124_v50, %v1106_v51 }
  0xe6   : > { %1539 = vmatpush.bf16.msra.mxu0 %v1899_v47 }
  0xe7   : > { %v1144_v56 = vadd.f32 %v1143_v52, %v1125_v53 }
  0xe9   : > { %v1163_v36 = vadd.f32 %v1162_v54, %v1144_v56 }
  0xeb   : > { %v1193_v58 = vadd.f32 %v2601_v59, %v1163_v36  ;;  %v1972_v36 = vld [vmem:[%s2709_s6] ss:$0 sm:$0xff] }
  0xed   : > { %v1875_v40 = vmul.f32 -1.442695, %v1193_v58 }
  0xef   : > { %1987 = vpow2.f32 %v1875_v40 }
  0xf5   : > { %v1988_v62 = vpop.eup %1987 }
  0xf6   : > { %v1265_v63 = vadd.f32 1.0, %v1988_v62 }
  0xf8   : > { %1989 = vrcp.f32 %v1265_v63  ;;  %v1280_v2 = vand.u32 2147483648, %v1265_v63  ;;  %vm1274_vm8 = vweird.f32 %v1265_v63  ;;  %v1278_v4 = vand.u32 2147483647, %v1265_v63 }
  0xf9   : > { %1991 = vrcp.f32 %v2099_v34 }
  0xfa   : > { %v1281_v44 = vor.u32 1.1754944e-38, %v1280_v2  ;;  %vm1279_vm12 = vcmp.eq.f32.partialorder %v1278_v4, 8.507059e+37 }
  0xfe   : > { %v1990_v0 = vpop.eup %1989 }
  0xff   : > { %v1270_v1 = vmul.f32 %v1990_v0, %v1265_v63  ;;  %vm1275_vm9 = vweird.f32 %v1990_v0  ;;  %v1992_v17 = vpop.eup %1991 }
 0x100   : > { %vm1276_vm11 = vmor %vm1274_vm8, %vm1275_vm9  ;;  %v1473_v35 = vmul.f32 32.0, %v1992_v17  ;;  %vm1477_vm15 = vweird.f32 %v1992_v17 }
 0x101   : > { %v1271_v3 = vsub.f32 1.0, %v1270_v1 }
 0x102   : > { %v1474_v57 = vsub.f32 1.0, %v1473_v35 }
 0x103   : > { %v1272_v5 = vmul.f32 %v1990_v0, %v1271_v3 }
 0x104   : > { %v1475_v37 = vmul.f32 %v1992_v17, %v1474_v57 }
 0x105   : > { %v1273_v59 = vadd.f32 %v1990_v0, %v1272_v5 }
 0x106   : > { %v1476_v24 = vadd.f32 %v1992_v17, %v1475_v37 }
 0x107   : > { %v1277_v6 = vsel %vm1276_vm11, %v1990_v0, %v1273_v59  ;;  %v1974_v0 = vld [vmem:[%s2712_s9] ss:$0 sm:$0xff] }
 0x108   : > { %v1282_v38 = vsel %vm1279_vm12, %v1281_v44, %v1277_v6  ;;  %v1478_v39 = vsel %vm1477_vm15, %v1992_v17, %v1476_v24 }
 0x109   : > { %v1329_v7 = vmul.f32 %v1282_v38, %v1193_v58 }
 0x10b   : > { %v1333_v8 = vpack.c.bf16 %v1329_v7, %v1329_v7 }
 0x10d   : > { %1879 = vmatmul.msk.bf16.vlgmr.msrb.gmra.mxu0 %vm1176_vm0, %v1333_v8 }
 0x153   : > { %v1372_v9 = vpop.f32.mrf.mxu1 }
 0x154   : > { %1419 = vst.msk [vmem:[#allocation2 + $0x8] sm:$0xff] %vm1176_vm0, %v1372_v9 }
 0x15b   : > { %v1374_v10 = vpop.f32.mrf.mxu1  ;;  %v1443_v11 = vld [vmem:[#allocation2 + $0x8] sm:$0xff] }
 0x15c   : > { %1449 = vrot.lane.b32.xlu0 %v1443_v11, %s2096_s13 }
 0x15f   : > { %v1391_v12 = vpop.f32.mrf.mxu2 }
 0x160   : > { %1420 = vst.msk [vmem:[#allocation2 + $0x10] sm:$0xff] %vm1176_vm0, %v1391_v12  ;;  %v1410_v13 = vpop.f32.mrf.mxu3 }
 0x161   : > { %1421 = vst.msk [vmem:[#allocation2 + $0x18] sm:$0xff] %vm1176_vm0, %v1410_v13 }
 0x167   : > { %v1393_v14 = vpop.f32.mrf.mxu2  ;;  %v1445_v15 = vld [vmem:[#allocation2 + $0x10] sm:$0xff] }
 0x168   : > { %v1412_v18 = vpop.f32.mrf.mxu3  ;;  %v1447_v19 = vld [vmem:[#allocation2 + $0x18] sm:$0xff]  ;;  %1453 = vrot.lane.b32.xlu0 %v1445_v15, %s2097_s24 }
 0x169   : > { %1457 = vrot.lane.b32.xlu1 %v1447_v19, %s2098_s12  ;;  %s521_s12 = scalar_lea.vmem %s2708_s5, %s1735_s2 }
 0x16a   : > { %v1545_v2 = vld [vmem:[%s521_s12] sm:$0xff] }
 0x18a   : > { %v1353_v20 = vpop.f32.mrf.mxu0 }
 0x18b   : > { %1418 = vst.msk [vmem:[#allocation2] sm:$0xff] %vm1176_vm0, %v1353_v20 }
 0x192   : > { %v1355_v21 = vpop.f32.mrf.mxu0  ;;  %v1441_v25 = vld [vmem:[#allocation2] sm:$0xff] }
 0x1ce   : > { %v1450_v22 = vpop.permute.xlu0 %1449 }
 0x1cf   : > { %v1460_v27 = vsel %vm1176_vm0, %v1441_v25, %v1450_v22 }
 0x1da   : > { %v1454_v29 = vpop.permute.xlu0 %1453 }
 0x1db   : > { %v1458_v30 = vpop.permute.xlu1 %1457  ;;  %v1462_v31 = vsel %vm1461_vm10, %v1460_v27, %v1454_v29 }
 0x1dc   : > { %v1464_v33 = vsel %vm1463_vm13, %v1462_v31, %v1458_v30 }
 0x1dd   : > { %v1467_v16 = vmul.f32 %v1466_v26, %v1464_v33 }
 0x1df   : > { %v1469_v55 = vsel %vm1468_vm14, %v1467_v16, 0.0 }
 0x1e0   : > { %1470 = vadd.xlane.f32.xlu1 %v1469_v55 }
 0x253   : > { %v1471_v41 = vpop.xlane.xlu1 %1470 }
 0x254   : > { %v1479_v42 = vmul.f32 %v1478_v39, %v1471_v41 }
 0x256   : > { %v1480_v43 = vsub.f32 %v1467_v16, %v1479_v42 }
 0x258   : > { %v1481_v45 = vmul.f32 %v1480_v43, %v1480_v43 }
 0x25a   : > { %v1482_v28 = vsel %vm1468_vm14, %v1481_v45, 0.0 }
 0x25b   : > { %1483 = vadd.xlane.f32.xlu2 %v1482_v28 }
 0x2ce   : > { %v1484_v48 = vpop.xlane.xlu2 %1483 }
 0x2cf   : > { %v1485_v49 = vmul.f32 %v1484_v48, %v1478_v39 }
 0x2d1   : > { %v1486_v50 = vadd.f32 1e-05, %v1485_v49 }
 0x2d3   : > { %1993 = vrsqrt.f32 %v1486_v50  ;;  %vm1493_vm1 = vweird.f32 %v1486_v50 }
 0x2d9   : > { %v1994_v32 = vpop.eup %1993 }
 0x2da   : > { %v1488_v51 = vmul.f32 %v1994_v32, %v1486_v50  ;;  %vm1494_vm0 = vweird.f32 %v1994_v32 }
 0x2db   : > { %vm1495_vm2 = vmor %vm1493_vm1, %vm1494_vm0 }
 0x2dc   : > { %v1489_v52 = vmul.f32 %v1994_v32, %v1488_v51 }
 0x2de   : > { %v1490_v53 = vmul.f32 0.5, %v1489_v52 }
 0x2e0   : > { %v1491_v54 = vsub.f32 1.5, %v1490_v53 }
 0x2e2   : > { %v1492_v56 = vmul.f32 %v1994_v32, %v1491_v54 }
 0x2e4   : > { %v1496_v58 = vsel %vm1495_vm2, %v1994_v32, %v1492_v56 }
 0x2e5   : > { %v1497_v60 = vmul.f32 %v1496_v58, %v1480_v43 }
 0x2e7   : > { %v1502_v40 = vmul.f32 %v1972_v36, %v1497_v60 }
 0x2e9   : > { %v1507_v62 = vadd.f32 %v1973_v61, %v1502_v40 }
 0x2eb   : > { %v1508_v63 = vpack.c.bf16 %v1507_v62, %v1507_v62 }
 0x2ed   : > { %1891 = vmatmul.msk.bf16.vlgmr.msra.gmra.mxu0 %vm1468_vm14, %v1508_v63 }
 0x36a   : > { %v1541_v1 = vpop.f32.mrf.mxu0 }
 0x36b   : > { %v1542_v3 = vadd.f32 %v1974_v0, %v1541_v1 }
 0x36d   : > { %v1546_v4 = vadd.f32 %v1545_v2, %v1542_v3 }
 0x36f   : > { %1547 = vst.msk [vmem:[%s483_s11] sm:$0xff] %vm1468_vm14, %v1546_v4 }
 0x370   : > { %2037 = shalt.err (!%p2034_p9)
}
 0x371   : > { %1905 = dma.vmem_to_hbm [thread:$0]  (%p2195_p4), %s1563_s1, 128, %s1565_s19, %s1549_s16  }
 0x372   : > { %v1543_v5 = vpop.f32.mrf.mxu0 }
 0x373 PF: > { %s2738_s22 = sld [smem:[#allocation12_spill]] }
 0x374   : > { %s2739_s28 = sld [smem:[#allocation9_spill]] }
 0x379   : > { %p1917_p10 = scmp.ge.s32.totalorder %s2738_s22, 2 }
 0x37a   : > { %s1576_s24 = sand.u32 1, %s2739_s28  }
 0x37b   : > { %p1912_p11 = pnand %p1917_p10, %p2202_p8  ;;  %s1577_s12 = scalar_lea.sflag [#allocation4], %s1576_s24 }
 0x37d   : > { %p1913_p12 = pneg %p1912_p11 }
 0x37f   : > { %2067 = dma.done.wait (%p1913_p12), %s1577_s12, 128  }
 0x380   : > { %2069 = vsyncadd (%p1913_p12), %s1577_s12, 4294967168  ;;  %s24_s18 = sadd.s32 1, %s2738_s22   ;;  %s2741_s21 = sld [smem:[#allocation10_spill]] }
 0x381   : > { %p21_p13 = scmp.ge.s32.totalorder %s24_s18, 4   ;;  %s2742_s15 = sld [smem:[#allocation15_spill]] }
 0x382   : > { %s2743_s16 = sld [smem:[#allocation11_spill]]  ;;  %s2745_s13 = smov %s2076_s14 }
 0x383   : > { %s2744_s17 = sld [smem:[#allocation13_spill]]  ;;  %23 = sbr.rel (!%p21_p13) target bundleno = 9 (0x9), region = 127 }
 0x386   : > { %s2746_s14 = smov %s2741_s21 }
 0x388   :  { %1583 = vsyncpa [#allocation4], 1 }
 0x389   :  { %1585 = vsyncpa [#allocation4 + $0x1], 1 }
 0x38a   :  { %1586 = vsyncpa [#allocation5], 1 }
 0x38b   :  { %1588 = vsyncpa [#allocation5 + $0x1], 1 }

</bundles_post_ra>
